<compile_context>
chip_gen: v7x
topology: tpu7x:2x2x1
jax: 0.10.0
libtpu: 0.0.40
codegen_flags: <defaults>
</compile_context>

<pallas_src>
import functools

import jax
import jax.numpy as jnp
from jax.experimental import pallas as pl
from jax.experimental.pallas import tpu as pltpu


def _block_rows(H, max_rows=32):
    """Input rows processed per grid step.  Grid uses cdiv, so no divisor needed."""
    return min(H, max_rows)


# --------------------------- upsample-only kernel ----------------------------

def _upsample_phase_kernel(x_ref, o_ref):
    # x_ref: (TH, W, C) input rows ; o_ref: (TH, 2, W, 2*C) lane-merged output.
    x = x_ref[...]
    xx = jnp.concatenate([x, x], axis=-1)          # (TH, W, 2*C): [e=0 | e=1]
    o_ref[:, 0, :, :] = xx                         # row phase a=0
    o_ref[:, 1, :, :] = xx                         # row phase a=1


def nearest_upsample_2x(x_nhwc, max_rows=32):
    """Nearest-neighbour 2x spatial upsample, NHWC."""
    N, H, W, C = x_nhwc.shape
    TH = _block_rows(H, max_rows)
    nh = (H + TH - 1) // TH
    out = pl.pallas_call(
        _upsample_phase_kernel,
        out_shape=jax.ShapeDtypeStruct((N, H, 2, W, 2 * C), x_nhwc.dtype),
        grid=(N, nh),
        in_specs=[pl.BlockSpec((None, TH, W, C), lambda n, h: (n, h, 0, 0))],
        out_specs=pl.BlockSpec((None, TH, 2, W, 2 * C),
                               lambda n, h: (n, h, 0, 0, 0)),
        compiler_params=pltpu.CompilerParams(
            dimension_semantics=("parallel", "parallel")),
    )(x_nhwc)
    # (H,2) and (W, [e|c]) are adjacent contiguous dims -> free reshape.
    return out.reshape(N, 2 * H, 2 * W, C)


# ---------------------- fused upsample + 3x3 conv kernel ----------------------

_ROW_OFFS = ((-1, 0), (0, 1))   # input-row offsets used by output row phase a
_COL_OFFS = ((-1, 0), (0, 1))   # input-col offsets used by output col phase e


def _phase_weights(w_oihw):
    """Collapse 3x3 weights of conv(upsample2x(x)) into 4 phase kernels.

    Returns (4, 4*Cin, Cout).  Phase index = 2*a + e.  Within a phase the K axis is
    the concat of the 4 taps (p, q) in the exact order the kernel packs its window,
    each tap contributing a Cin-wide slice.
    """
    Wt = jnp.transpose(w_oihw, (2, 3, 1, 0))           # (di, dj, Cin, Cout)
    Cin, Cout = Wt.shape[2], Wt.shape[3]
    row_parts = (
        (Wt[0], Wt[1] + Wt[2]),                        # a=0: row offsets (-1, 0)
        (Wt[0] + Wt[1], Wt[2]),                        # a=1: row offsets (0, +1)
    )
    phases = []
    for a in range(2):
        for e in range(2):
            taps = []
            for p in range(2):
                Tr = row_parts[a][p]                   # (dj, Cin, Cout)
                cols = ((Tr[0], Tr[1] + Tr[2]) if e == 0
                        else (Tr[0] + Tr[1], Tr[2]))   # col offsets (-1,0) / (0,+1)
                for q in range(2):
                    taps.append(cols[q])               # (Cin, Cout)
            phases.append(jnp.stack(taps, 0).reshape(4 * Cin, Cout))
    return jnp.stack(phases, 0)                        # (4, 4*Cin, Cout)


def _fused_up_conv_kernel(xp_ref, w_ref, b_ref, o_ref, *, cin, pack_taps):
    # xp_ref: (Hp, W+2, Cin)    zero-padded input image of one batch element
    # w_ref : (4, 4*Cin, Cout)  phase-collapsed weights (tap-major K)
    # b_ref : (1, Cout)
    # o_ref : (TH, 2, W, 2*Cout) lane-merged phase-major output rows for this step
    TH, _, W, two_cout = o_ref.shape
    cout = two_cout // 2
    hb = pl.program_id(1)
    start = pl.multiple_of(hb * TH, TH)
    bias = b_ref[...].astype(jnp.float32)              # (1, Cout)

    def window(roff, coff):
        # One shifted (TH, W, Cin) input window, flattened for the MXU.
        # Built on demand (NOT cached) so live intermediates stay bounded.
        w2 = xp_ref[pl.ds(start + 1 + roff, TH), 1 + coff:1 + coff + W, :]
        return w2.reshape(TH * W, cin)

    for a in range(2):                                 # output row phase
        cols = []
        for e in range(2):                             # output col phase
            phase = 2 * a + e
            taps = [(_ROW_OFFS[a][p], _COL_OFFS[e][q])
                    for p in range(2) for q in range(2)]
            if pack_taps:
                # Small Cin: pack the 4 taps along K -> one MXU dot, K = 4*Cin.
                xk = jnp.concatenate([window(r, c) for r, c in taps], axis=-1)
                acc = jnp.dot(xk, w_ref[phase],
                              preferred_element_type=jnp.float32)
            else:
                # Large Cin: one live window at a time, accumulate (K = Cin dots).
                acc = jnp.zeros((TH * W, cout), jnp.float32)
                for t, (r, c) in enumerate(taps):
                    acc = acc + jnp.dot(
                        window(r, c), w_ref[phase, t * cin:(t + 1) * cin, :],
                        preferred_element_type=jnp.float32)
            cols.append((acc + bias).reshape(TH, W, cout))
        # Single full-lane store per row phase: [e=0 | e=1] merged on the lane axis.
        o_ref[:, a, :, :] = jnp.concatenate(cols, axis=-1).astype(o_ref.dtype)


def upsample2x_conv3x3(x_nhwc, w_oihw, b, max_rows=32):
    """Fused nearest-2x upsample + 3x3 conv (stride 1, padding 1), NHWC in/out."""
    N, H, W, Cin = x_nhwc.shape
    Cout = w_oihw.shape[0]
    TH = _block_rows(H, max_rows)
    nh = (H + TH - 1) // TH
    # 1-pixel conv halo + extra bottom rows so the last (possibly partial) row block
    # never reads out of bounds of the VMEM-resident image.
    # TODO(synk): handle the halo in-kernel (masked boundary taps) to drop this
    #             extra HBM pass over the input.
    pad_bot = 1 + nh * TH - H
    xp = jnp.pad(x_nhwc, ((0, 0), (1, pad_bot), (1, 1), (0, 0)))
    Hp = xp.shape[1]
    w_phase = _phase_weights(w_oihw.astype(jnp.float32))
    b2 = b.reshape(1, Cout).astype(jnp.float32)
    pack_taps = Cin <= 128        # K-packing only pays off when K would be degenerate
    kernel = functools.partial(_fused_up_conv_kernel, cin=Cin, pack_taps=pack_taps)
    out = pl.pallas_call(
        kernel,
        out_shape=jax.ShapeDtypeStruct((N, H, 2, W, 2 * Cout), x_nhwc.dtype),
        grid=(N, nh),
        in_specs=[
            # Whole padded image of one batch element (block index constant in h,
            # so it is only DMA'd when n changes).
            pl.BlockSpec((None, Hp, W + 2, Cin), lambda n, h: (n, 0, 0, 0)),
            pl.BlockSpec((4, 4 * Cin, Cout), lambda n, h: (0, 0, 0)),
            pl.BlockSpec((1, Cout), lambda n, h: (0, 0)),
        ],
        out_specs=pl.BlockSpec((None, TH, 2, W, 2 * Cout),
                               lambda n, h: (n, h, 0, 0, 0)),
        compiler_params=pltpu.CompilerParams(
            dimension_semantics=("parallel", "parallel")),
    )(xp, w_phase, b2)
    return out.reshape(N, 2 * H, 2 * W, Cout)


# ------------------------------ module wrapper -------------------------------

class UpsamplePallas:
    """JAX/Pallas equivalent of the PyTorch `Upsample` module (dims=2)."""

    def __init__(self, channels, use_conv, dims=2, out_channels=None,
                 key=jax.random.PRNGKey(0)):
        assert dims == 2, "only dims=2 implemented"
        self.channels = channels
        self.out_channels = out_channels or channels
        self.use_conv = use_conv
        self.dims = dims
        if use_conv:
            kw, kb = jax.random.split(key)
            # Deterministic synthetic init (Conv2d(channels, out_channels, 3, padding=1))
            self.w = (jax.random.normal(
                kw, (self.out_channels, self.channels, 3, 3), jnp.float32) * 0.1)
            self.b = jax.random.normal(kb, (self.out_channels,), jnp.float32) * 0.1

    def __call__(self, x_nchw):
        assert x_nchw.shape[1] == self.channels
        x_nhwc = jnp.transpose(x_nchw, (0, 2, 3, 1))        # NCHW -> NHWC
        if self.use_conv:
            y = upsample2x_conv3x3(x_nhwc, self.w, self.b)
        else:
            y = nearest_upsample_2x(x_nhwc)
        return jnp.transpose(y, (0, 3, 1, 2))               # NHWC -> NCHW


# ------------------------------- reference -----------------------------------

def _reference_forward(x_nchw, module):
    x = jnp.repeat(jnp.repeat(x_nchw, 2, axis=2), 2, axis=3)
    if module.use_conv:
        x = jax.lax.conv_general_dilated(
            x, module.w, window_strides=(1, 1), padding=((1, 1), (1, 1)),
            dimension_numbers=("NCHW", "OIHW", "NCHW"))
        x = x + module.b[None, :, None, None]
    return x


if __name__ == "__main__":
    key = jax.random.PRNGKey(0)
    k_x, k_p = jax.random.split(key)

    N, C, H, W = 2, 4, 16, 16
    x = jax.random.normal(k_x, (N, C, H, W), jnp.float32)

    # with conv (fused upsample + 3x3 conv)
    mod = UpsamplePallas(channels=C, use_conv=True, dims=2, key=k_p)
    y = jax.block_until_ready(jax.jit(mod.__call__)(x))
    y_ref = _reference_forward(x, mod)
    assert y.shape == (N, C, 2 * H, 2 * W), y.shape
    assert jnp.allclose(y, y_ref, atol=1e-4, rtol=1e-4), "conv path mismatch"

    # without conv (pure nearest upsample)
    mod_nc = UpsamplePallas(channels=C, use_conv=False, dims=2, key=k_p)
    y_nc = jax.block_until_ready(jax.jit(mod_nc.__call__)(x))
    y_nc_ref = _reference_forward(x, mod_nc)
    assert y_nc.shape == (N, C, 2 * H, 2 * W), y_nc.shape
    assert jnp.allclose(y_nc, y_nc_ref, atol=1e-6), "upsample path mismatch"

    print("KERNEL_OK")
</pallas_src>

<mosaic_0001>
module attributes {stable_mosaic.version = 11 : i64} {
  func.func @_fused_up_conv_kernel(%arg0: i32, %arg1: i32, %arg2: memref<1x18x18x4xf32, #tpu.memory_space<vmem>>, %arg3: memref<4x16x4xf32, #tpu.memory_space<vmem>>, %arg4: memref<1x4xf32, #tpu.memory_space<vmem>>, %arg5: memref<1x16x2x16x8xf32, #tpu.memory_space<vmem>>) attributes {dimension_semantics = [#tpu.dimension_semantics<parallel>, #tpu.dimension_semantics<parallel>], iteration_bounds = array<i64: 2, 1>, scalar_prefetch = 0 : i64, scratch_operands = 0 : i64, tpu.core_type = #tpu.core_type<tc>, window_params = [{transform_indices = @transform_0, window_bounds = array<i64: 1, 18, 18, 4>}, {pipeline_mode = #tpu.pipeline_mode<synchronous>, transform_indices = @transform_1, window_bounds = array<i64: 4, 16, 4>}, {pipeline_mode = #tpu.pipeline_mode<synchronous>, transform_indices = @transform_2, window_bounds = array<i64: 1, 4>}, {transform_indices = @transform_3, window_bounds = array<i64: 1, 16, 2, 16, 8>}]} {
    %c16_i32 = arith.constant 16 : i32
    %0 = arith.muli %arg1, %c16_i32 : i32
    %1 = tpu.assume_multiple %0, 16 : i32
    %c0 = arith.constant 0 : index
    %c0_0 = arith.constant 0 : index
    %2 = vector.load %arg4[%c0, %c0_0] : memref<1x4xf32, #tpu.memory_space<vmem>>, vector<1x4xf32>
    %c1_i32 = arith.constant 1 : i32
    %3 = arith.addi %1, %c1_i32 : i32
    %c-1_i32 = arith.constant -1 : i32
    %4 = arith.addi %3, %c-1_i32 : i32
    %c0_1 = arith.constant 0 : index
    %5 = arith.index_cast %4 : i32 to index
    %c0_2 = arith.constant 0 : index
    %c0_3 = arith.constant 0 : index
    %6 = vector.load %arg2[%c0_1, %5, %c0_2, %c0_3] : memref<1x18x18x4xf32, #tpu.memory_space<vmem>>, vector<1x16x16x4xf32>
    %7 = vector.shape_cast %6 : vector<1x16x16x4xf32> to vector<16x16x4xf32>
    %8 = vector.shape_cast %7 : vector<16x16x4xf32> to vector<256x4xf32>
    %c1_i32_4 = arith.constant 1 : i32
    %9 = arith.addi %1, %c1_i32_4 : i32
    %c-1_i32_5 = arith.constant -1 : i32
    %10 = arith.addi %9, %c-1_i32_5 : i32
    %c0_6 = arith.constant 0 : index
    %11 = arith.index_cast %10 : i32 to index
    %c1 = arith.constant 1 : index
    %c0_7 = arith.constant 0 : index
    %12 = vector.load %arg2[%c0_6, %11, %c1, %c0_7] : memref<1x18x18x4xf32, #tpu.memory_space<vmem>>, vector<1x16x16x4xf32>
    %13 = vector.shape_cast %12 : vector<1x16x16x4xf32> to vector<16x16x4xf32>
    %14 = vector.shape_cast %13 : vector<16x16x4xf32> to vector<256x4xf32>
    %c1_i32_8 = arith.constant 1 : i32
    %15 = arith.addi %1, %c1_i32_8 : i32
    %c0_i32 = arith.constant 0 : i32
    %16 = arith.addi %15, %c0_i32 : i32
    %c0_9 = arith.constant 0 : index
    %17 = arith.index_cast %16 : i32 to index
    %c0_10 = arith.constant 0 : index
    %c0_11 = arith.constant 0 : index
    %18 = vector.load %arg2[%c0_9, %17, %c0_10, %c0_11] : memref<1x18x18x4xf32, #tpu.memory_space<vmem>>, vector<1x16x16x4xf32>
    %19 = vector.shape_cast %18 : vector<1x16x16x4xf32> to vector<16x16x4xf32>
    %20 = vector.shape_cast %19 : vector<16x16x4xf32> to vector<256x4xf32>
    %c1_i32_12 = arith.constant 1 : i32
    %21 = arith.addi %1, %c1_i32_12 : i32
    %c0_i32_13 = arith.constant 0 : i32
    %22 = arith.addi %21, %c0_i32_13 : i32
    %c0_14 = arith.constant 0 : index
    %23 = arith.index_cast %22 : i32 to index
    %c1_15 = arith.constant 1 : index
    %c0_16 = arith.constant 0 : index
    %24 = vector.load %arg2[%c0_14, %23, %c1_15, %c0_16] : memref<1x18x18x4xf32, #tpu.memory_space<vmem>>, vector<1x16x16x4xf32>
    %25 = vector.shape_cast %24 : vector<1x16x16x4xf32> to vector<16x16x4xf32>
    %26 = vector.shape_cast %25 : vector<16x16x4xf32> to vector<256x4xf32>
    %27 = tpu.concatenate %8, %14, %20, %26 in 1 : vector<256x4xf32>, vector<256x4xf32>, vector<256x4xf32>, vector<256x4xf32> -> vector<256x16xf32>
    %c0_17 = arith.constant 0 : index
    %c0_18 = arith.constant 0 : index
    %c0_19 = arith.constant 0 : index
    %28 = vector.load %arg3[%c0_17, %c0_18, %c0_19] : memref<4x16x4xf32, #tpu.memory_space<vmem>>, vector<1x16x4xf32>
    %29 = vector.shape_cast %28 : vector<1x16x4xf32> to vector<16x4xf32>
    %cst = arith.constant dense<0.000000e+00> : vector<256x4xf32>
    %30 = tpu.matmul %27, %29, %cst {dimension_numbers = #tpu.dot_dimension_numbers<[1], [0], [0], [1], [0, 0, 1, 1], [], []>} : vector<256x16xf32>, vector<16x4xf32>, vector<256x4xf32> -> vector<256x4xf32>
    %31 = vector.broadcast %2 : vector<1x4xf32> to vector<256x4xf32>
    %32 = arith.addf %30, %31 : vector<256x4xf32>
    %33 = vector.shape_cast %32 : vector<256x4xf32> to vector<16x16x4xf32>
    %c1_i32_20 = arith.constant 1 : i32
    %34 = arith.addi %1, %c1_i32_20 : i32
    %c-1_i32_21 = arith.constant -1 : i32
    %35 = arith.addi %34, %c-1_i32_21 : i32
    %c0_22 = arith.constant 0 : index
    %36 = arith.index_cast %35 : i32 to index
    %c1_23 = arith.constant 1 : index
    %c0_24 = arith.constant 0 : index
    %37 = vector.load %arg2[%c0_22, %36, %c1_23, %c0_24] : memref<1x18x18x4xf32, #tpu.memory_space<vmem>>, vector<1x16x16x4xf32>
    %38 = vector.shape_cast %37 : vector<1x16x16x4xf32> to vector<16x16x4xf32>
    %39 = vector.shape_cast %38 : vector<16x16x4xf32> to vector<256x4xf32>
    %c1_i32_25 = arith.constant 1 : i32
    %40 = arith.addi %1, %c1_i32_25 : i32
    %c-1_i32_26 = arith.constant -1 : i32
    %41 = arith.addi %40, %c-1_i32_26 : i32
    %c0_27 = arith.constant 0 : index
    %42 = arith.index_cast %41 : i32 to index
    %c2 = arith.constant 2 : index
    %c0_28 = arith.constant 0 : index
    %43 = vector.load %arg2[%c0_27, %42, %c2, %c0_28] : memref<1x18x18x4xf32, #tpu.memory_space<vmem>>, vector<1x16x16x4xf32>
    %44 = vector.shape_cast %43 : vector<1x16x16x4xf32> to vector<16x16x4xf32>
    %45 = vector.shape_cast %44 : vector<16x16x4xf32> to vector<256x4xf32>
    %c1_i32_29 = arith.constant 1 : i32
    %46 = arith.addi %1, %c1_i32_29 : i32
    %c0_i32_30 = arith.constant 0 : i32
    %47 = arith.addi %46, %c0_i32_30 : i32
    %c0_31 = arith.constant 0 : index
    %48 = arith.index_cast %47 : i32 to index
    %c1_32 = arith.constant 1 : index
    %c0_33 = arith.constant 0 : index
    %49 = vector.load %arg2[%c0_31, %48, %c1_32, %c0_33] : memref<1x18x18x4xf32, #tpu.memory_space<vmem>>, vector<1x16x16x4xf32>
    %50 = vector.shape_cast %49 : vector<1x16x16x4xf32> to vector<16x16x4xf32>
    %51 = vector.shape_cast %50 : vector<16x16x4xf32> to vector<256x4xf32>
    %c1_i32_34 = arith.constant 1 : i32
    %52 = arith.addi %1, %c1_i32_34 : i32
    %c0_i32_35 = arith.constant 0 : i32
    %53 = arith.addi %52, %c0_i32_35 : i32
    %c0_36 = arith.constant 0 : index
    %54 = arith.index_cast %53 : i32 to index
    %c2_37 = arith.constant 2 : index
    %c0_38 = arith.constant 0 : index
    %55 = vector.load %arg2[%c0_36, %54, %c2_37, %c0_38] : memref<1x18x18x4xf32, #tpu.memory_space<vmem>>, vector<1x16x16x4xf32>
    %56 = vector.shape_cast %55 : vector<1x16x16x4xf32> to vector<16x16x4xf32>
    %57 = vector.shape_cast %56 : vector<16x16x4xf32> to vector<256x4xf32>
    %58 = tpu.concatenate %39, %45, %51, %57 in 1 : vector<256x4xf32>, vector<256x4xf32>, vector<256x4xf32>, vector<256x4xf32> -> vector<256x16xf32>
    %c1_39 = arith.constant 1 : index
    %c0_40 = arith.constant 0 : index
    %c0_41 = arith.constant 0 : index
    %59 = vector.load %arg3[%c1_39, %c0_40, %c0_41] : memref<4x16x4xf32, #tpu.memory_space<vmem>>, vector<1x16x4xf32>
    %60 = vector.shape_cast %59 : vector<1x16x4xf32> to vector<16x4xf32>
    %cst_42 = arith.constant dense<0.000000e+00> : vector<256x4xf32>
    %61 = tpu.matmul %58, %60, %cst_42 {dimension_numbers = #tpu.dot_dimension_numbers<[1], [0], [0], [1], [0, 0, 1, 1], [], []>} : vector<256x16xf32>, vector<16x4xf32>, vector<256x4xf32> -> vector<256x4xf32>
    %62 = vector.broadcast %2 : vector<1x4xf32> to vector<256x4xf32>
    %63 = arith.addf %61, %62 : vector<256x4xf32>
    %64 = vector.shape_cast %63 : vector<256x4xf32> to vector<16x16x4xf32>
    %65 = tpu.concatenate %33, %64 in 2 : vector<16x16x4xf32>, vector<16x16x4xf32> -> vector<16x16x8xf32>
    %c0_43 = arith.constant 0 : index
    %c0_44 = arith.constant 0 : index
    %c0_45 = arith.constant 0 : index
    %c0_46 = arith.constant 0 : index
    %c0_47 = arith.constant 0 : index
    %66 = vector.load %arg5[%c0_43, %c0_44, %c0_45, %c0_46, %c0_47] : memref<1x16x2x16x8xf32, #tpu.memory_space<vmem>>, vector<1x16x1x16x8xf32>
    %67 = vector.shape_cast %66 : vector<1x16x1x16x8xf32> to vector<16x16x8xf32>
    %68 = vector.shape_cast %65 : vector<16x16x8xf32> to vector<1x16x1x16x8xf32>
    tpu.vector_store %arg5[%c0_43, %c0_44, %c0_45, %c0_46, %c0_47], %68 {strides = array<i32>} : memref<1x16x2x16x8xf32, #tpu.memory_space<vmem>>, vector<1x16x1x16x8xf32>,
    %c1_i32_48 = arith.constant 1 : i32
    %69 = arith.addi %1, %c1_i32_48 : i32
    %c0_i32_49 = arith.constant 0 : i32
    %70 = arith.addi %69, %c0_i32_49 : i32
    %c0_50 = arith.constant 0 : index
    %71 = arith.index_cast %70 : i32 to index
    %c0_51 = arith.constant 0 : index
    %c0_52 = arith.constant 0 : index
    %72 = vector.load %arg2[%c0_50, %71, %c0_51, %c0_52] : memref<1x18x18x4xf32, #tpu.memory_space<vmem>>, vector<1x16x16x4xf32>
    %73 = vector.shape_cast %72 : vector<1x16x16x4xf32> to vector<16x16x4xf32>
    %74 = vector.shape_cast %73 : vector<16x16x4xf32> to vector<256x4xf32>
    %c1_i32_53 = arith.constant 1 : i32
    %75 = arith.addi %1, %c1_i32_53 : i32
    %c0_i32_54 = arith.constant 0 : i32
    %76 = arith.addi %75, %c0_i32_54 : i32
    %c0_55 = arith.constant 0 : index
    %77 = arith.index_cast %76 : i32 to index
    %c1_56 = arith.constant 1 : index
    %c0_57 = arith.constant 0 : index
    %78 = vector.load %arg2[%c0_55, %77, %c1_56, %c0_57] : memref<1x18x18x4xf32, #tpu.memory_space<vmem>>, vector<1x16x16x4xf32>
    %79 = vector.shape_cast %78 : vector<1x16x16x4xf32> to vector<16x16x4xf32>
    %80 = vector.shape_cast %79 : vector<16x16x4xf32> to vector<256x4xf32>
    %c1_i32_58 = arith.constant 1 : i32
    %81 = arith.addi %1, %c1_i32_58 : i32
    %c1_i32_59 = arith.constant 1 : i32
    %82 = arith.addi %81, %c1_i32_59 : i32
    %c0_60 = arith.constant 0 : index
    %83 = arith.index_cast %82 : i32 to index
    %c0_61 = arith.constant 0 : index
    %c0_62 = arith.constant 0 : index
    %84 = vector.load %arg2[%c0_60, %83, %c0_61, %c0_62] : memref<1x18x18x4xf32, #tpu.memory_space<vmem>>, vector<1x16x16x4xf32>
    %85 = vector.shape_cast %84 : vector<1x16x16x4xf32> to vector<16x16x4xf32>
    %86 = vector.shape_cast %85 : vector<16x16x4xf32> to vector<256x4xf32>
    %c1_i32_63 = arith.constant 1 : i32
    %87 = arith.addi %1, %c1_i32_63 : i32
    %c1_i32_64 = arith.constant 1 : i32
    %88 = arith.addi %87, %c1_i32_64 : i32
    %c0_65 = arith.constant 0 : index
    %89 = arith.index_cast %88 : i32 to index
    %c1_66 = arith.constant 1 : index
    %c0_67 = arith.constant 0 : index
    %90 = vector.load %arg2[%c0_65, %89, %c1_66, %c0_67] : memref<1x18x18x4xf32, #tpu.memory_space<vmem>>, vector<1x16x16x4xf32>
    %91 = vector.shape_cast %90 : vector<1x16x16x4xf32> to vector<16x16x4xf32>
    %92 = vector.shape_cast %91 : vector<16x16x4xf32> to vector<256x4xf32>
    %93 = tpu.concatenate %74, %80, %86, %92 in 1 : vector<256x4xf32>, vector<256x4xf32>, vector<256x4xf32>, vector<256x4xf32> -> vector<256x16xf32>
    %c2_68 = arith.constant 2 : index
    %c0_69 = arith.constant 0 : index
    %c0_70 = arith.constant 0 : index
    %94 = vector.load %arg3[%c2_68, %c0_69, %c0_70] : memref<4x16x4xf32, #tpu.memory_space<vmem>>, vector<1x16x4xf32>
    %95 = vector.shape_cast %94 : vector<1x16x4xf32> to vector<16x4xf32>
    %cst_71 = arith.constant dense<0.000000e+00> : vector<256x4xf32>
    %96 = tpu.matmul %93, %95, %cst_71 {dimension_numbers = #tpu.dot_dimension_numbers<[1], [0], [0], [1], [0, 0, 1, 1], [], []>} : vector<256x16xf32>, vector<16x4xf32>, vector<256x4xf32> -> vector<256x4xf32>
    %97 = vector.broadcast %2 : vector<1x4xf32> to vector<256x4xf32>
    %98 = arith.addf %96, %97 : vector<256x4xf32>
    %99 = vector.shape_cast %98 : vector<256x4xf32> to vector<16x16x4xf32>
    %c1_i32_72 = arith.constant 1 : i32
    %100 = arith.addi %1, %c1_i32_72 : i32
    %c0_i32_73 = arith.constant 0 : i32
    %101 = arith.addi %100, %c0_i32_73 : i32
    %c0_74 = arith.constant 0 : index
    %102 = arith.index_cast %101 : i32 to index
    %c1_75 = arith.constant 1 : index
    %c0_76 = arith.constant 0 : index
    %103 = vector.load %arg2[%c0_74, %102, %c1_75, %c0_76] : memref<1x18x18x4xf32, #tpu.memory_space<vmem>>, vector<1x16x16x4xf32>
    %104 = vector.shape_cast %103 : vector<1x16x16x4xf32> to vector<16x16x4xf32>
    %105 = vector.shape_cast %104 : vector<16x16x4xf32> to vector<256x4xf32>
    %c1_i32_77 = arith.constant 1 : i32
    %106 = arith.addi %1, %c1_i32_77 : i32
    %c0_i32_78 = arith.constant 0 : i32
    %107 = arith.addi %106, %c0_i32_78 : i32
    %c0_79 = arith.constant 0 : index
    %108 = arith.index_cast %107 : i32 to index
    %c2_80 = arith.constant 2 : index
    %c0_81 = arith.constant 0 : index
    %109 = vector.load %arg2[%c0_79, %108, %c2_80, %c0_81] : memref<1x18x18x4xf32, #tpu.memory_space<vmem>>, vector<1x16x16x4xf32>
    %110 = vector.shape_cast %109 : vector<1x16x16x4xf32> to vector<16x16x4xf32>
    %111 = vector.shape_cast %110 : vector<16x16x4xf32> to vector<256x4xf32>
    %c1_i32_82 = arith.constant 1 : i32
    %112 = arith.addi %1, %c1_i32_82 : i32
    %c1_i32_83 = arith.constant 1 : i32
    %113 = arith.addi %112, %c1_i32_83 : i32
    %c0_84 = arith.constant 0 : index
    %114 = arith.index_cast %113 : i32 to index
    %c1_85 = arith.constant 1 : index
    %c0_86 = arith.constant 0 : index
    %115 = vector.load %arg2[%c0_84, %114, %c1_85, %c0_86] : memref<1x18x18x4xf32, #tpu.memory_space<vmem>>, vector<1x16x16x4xf32>
    %116 = vector.shape_cast %115 : vector<1x16x16x4xf32> to vector<16x16x4xf32>
    %117 = vector.shape_cast %116 : vector<16x16x4xf32> to vector<256x4xf32>
    %c1_i32_87 = arith.constant 1 : i32
    %118 = arith.addi %1, %c1_i32_87 : i32
    %c1_i32_88 = arith.constant 1 : i32
    %119 = arith.addi %118, %c1_i32_88 : i32
    %c0_89 = arith.constant 0 : index
    %120 = arith.index_cast %119 : i32 to index
    %c2_90 = arith.constant 2 : index
    %c0_91 = arith.constant 0 : index
    %121 = vector.load %arg2[%c0_89, %120, %c2_90, %c0_91] : memref<1x18x18x4xf32, #tpu.memory_space<vmem>>, vector<1x16x16x4xf32>
    %122 = vector.shape_cast %121 : vector<1x16x16x4xf32> to vector<16x16x4xf32>
    %123 = vector.shape_cast %122 : vector<16x16x4xf32> to vector<256x4xf32>
    %124 = tpu.concatenate %105, %111, %117, %123 in 1 : vector<256x4xf32>, vector<256x4xf32>, vector<256x4xf32>, vector<256x4xf32> -> vector<256x16xf32>
    %c3 = arith.constant 3 : index
    %c0_92 = arith.constant 0 : index
    %c0_93 = arith.constant 0 : index
    %125 = vector.load %arg3[%c3, %c0_92, %c0_93] : memref<4x16x4xf32, #tpu.memory_space<vmem>>, vector<1x16x4xf32>
    %126 = vector.shape_cast %125 : vector<1x16x4xf32> to vector<16x4xf32>
    %cst_94 = arith.constant dense<0.000000e+00> : vector<256x4xf32>
    %127 = tpu.matmul %124, %126, %cst_94 {dimension_numbers = #tpu.dot_dimension_numbers<[1], [0], [0], [1], [0, 0, 1, 1], [], []>} : vector<256x16xf32>, vector<16x4xf32>, vector<256x4xf32> -> vector<256x4xf32>
    %128 = vector.broadcast %2 : vector<1x4xf32> to vector<256x4xf32>
    %129 = arith.addf %127, %128 : vector<256x4xf32>
    %130 = vector.shape_cast %129 : vector<256x4xf32> to vector<16x16x4xf32>
    %131 = tpu.concatenate %99, %130 in 2 : vector<16x16x4xf32>, vector<16x16x4xf32> -> vector<16x16x8xf32>
    %c0_95 = arith.constant 0 : index
    %c0_96 = arith.constant 0 : index
    %c1_97 = arith.constant 1 : index
    %c0_98 = arith.constant 0 : index
    %c0_99 = arith.constant 0 : index
    %132 = vector.load %arg5[%c0_95, %c0_96, %c1_97, %c0_98, %c0_99] : memref<1x16x2x16x8xf32, #tpu.memory_space<vmem>>, vector<1x16x1x16x8xf32>
    %133 = vector.shape_cast %132 : vector<1x16x1x16x8xf32> to vector<16x16x8xf32>
    %134 = vector.shape_cast %131 : vector<16x16x8xf32> to vector<1x16x1x16x8xf32>
    tpu.vector_store %arg5[%c0_95, %c0_96, %c1_97, %c0_98, %c0_99], %134 {strides = array<i32>} : memref<1x16x2x16x8xf32, #tpu.memory_space<vmem>>, vector<1x16x1x16x8xf32>,
    return
  }
  func.func @transform_0(%arg0: i32, %arg1: i32) -> (i32, i32, i32, i32) {
    %c0_i32 = arith.constant 0 : i32
    %c0_i32_0 = arith.constant 0 : i32
    %c0_i32_1 = arith.constant 0 : i32
    %c0_i32_2 = arith.constant 0 : i32
    return %arg0, %c0_i32, %c0_i32_0, %c0_i32_1 : i32, i32, i32, i32
  }
  func.func @transform_1(%arg0: i32, %arg1: i32) -> (i32, i32, i32) {
    %c0_i32 = arith.constant 0 : i32
    %c0_i32_0 = arith.constant 0 : i32
    %c0_i32_1 = arith.constant 0 : i32
    %c0_i32_2 = arith.constant 0 : i32
    return %c0_i32, %c0_i32_0, %c0_i32_1 : i32, i32, i32
  }
  func.func @transform_2(%arg0: i32, %arg1: i32) -> (i32, i32) {
    %c0_i32 = arith.constant 0 : i32
    %c0_i32_0 = arith.constant 0 : i32
    %c0_i32_1 = arith.constant 0 : i32
    return %c0_i32, %c0_i32_0 : i32, i32
  }
  func.func @transform_3(%arg0: i32, %arg1: i32) -> (i32, i32, i32, i32, i32) {
    %c0_i32 = arith.constant 0 : i32
    %c0_i32_0 = arith.constant 0 : i32
    %c0_i32_1 = arith.constant 0 : i32
    %c0_i32_2 = arith.constant 0 : i32
    return %arg0, %arg1, %c0_i32, %c0_i32_0, %c0_i32_1 : i32, i32, i32, i32, i32
  }
}

</mosaic_0001>

<bundles_post_ra>
// kernel: a_call__.1
= control target key start
LH: loop header
LB: loop body
LE: loop exit
PB: predicated region body
PF: predicated region fallthrough
CT: control target
= control target key end

     0   :  { %s5179_s12 = smov 0   ;;  %s5181_s13 = smov 0   ;;  %s8020_s0 = inlined_call_operand.vmem [shape: f32[2,18,18,4], index: 0, kind: input, shape index: {}]   ;;  %s8021_s1 = inlined_call_operand.vmem [shape: f32[4,16,4], index: 1, kind: input, shape index: {}]   ;;  %s8022_s2 = inlined_call_operand.vmem [shape: f32[1,4], index: 2, kind: input, shape index: {}]   ;;  %s8023_s3 = inlined_call_operand.vmem [shape: f32[2,16,2,16,8], index: 3, kind: output, shape index: {}]  }
   0x1   :  { %s5183_s14 = smov 0  }
   0x2 LB: > { %s25_s15 = sadd.s32 1, %s5150_s13  ;;  %p4237_p0 = scmp.ge.s32.totalorder %s5154_s14, 1  ;;  %s5154_s14 = sphi %s5183_s14, %s13_s14   ;;  %s5150_s13 = sphi %s5181_s13, %s8330_s13   ;;  %s5146_s12 = sphi %s5179_s12, %s8329_s12  }
   0x3   : > { %p27_p1 = scmp.ge.s32.totalorder %s25_s15, 2  ;;  %p151_p2 = scmp.lt.s32.totalorder %s5154_s14, 3 }
   0x5   : > { %s8332_s15 = smov (%p27_p1, %s25_s15), 0  ;;  %p152_p3 = pnand %p4237_p0, %p151_p2 }
   0x7   : > { %155 = sbr.rel (%p152_p3) target bundleno = 1452 (0x5ac), region = 32 }
   0xe   : > { %p180_p4 = scmp.lt.s32.totalorder %s5146_s12, 1  ;;  %s5156_s20 = smov 4   ;;  %v814_v58 = vld [vmem:[%s8021_s1] sm:$0xff]  ;;  %v815_v59 = vld [vmem:[%s8021_s1 + $0x8] sm:$0xff]  ;;  %vm715_vm0 = vcmask 31744   ;;  %vm748_vm1 = vcmask 64512  }
   0xf   : > { %s5157_s21 = smov 8   ;;  %v5043_v60 = vpack.c.bf16 %v815_v59, %v814_v58  ;;  %s5158_s26 = smov 12   ;;  %vm781_vm2 = vcmask 97280   ;;  %vm822_vm3 = vcmask 130048  }
  0x10   : > { %s8334_s12 = smov (!%p180_p4, %s5146_s12), 1 }
  0x11   : > { %s5059_s16 = smul.u32 432, %s8334_s12  ;;  %5044 = vmatprep.subr.bf16.mxu0 %v5043_v60  ;;  %s4698_s10 = sshll.u32 %s8334_s12, 9 }
  0x12   : > { %5046 = vmatpush3.bf16.msra.mxu0 %v5043_v60  ;;  %s6836_s17 = scalar_lea.vmem %s8023_s3, %s4698_s10 }
  0x13   : > { %s5203_s19 = scalar_lea.vmem %s8020_s0, %s5059_s16 }
  0x14   : > { %v5206_v0 = vld [vmem:[%s5203_s19 + $0x19] sm:$0xff]  ;;  %v232_v1 = vld [vmem:[%s5203_s19 + $0x1] sm:$0xff]  ;;  %v233_v3 = vld [vmem:[%s5203_s19 + $0x9] sm:$0xff] }
  0x15   : > { %367 = vrot.lane.b32.xlu1 %v5206_v0, %s5156_s20  ;;  %363 = vrot.lane.b32.xlu0 %v232_v1, %s5156_s20  ;;  %v5213_v2 = vld [vmem:[%s5203_s19 + $0x21] sm:$0xff]  ;;  %v5220_v4 = vld [vmem:[%s5203_s19 + $0x39] sm:$0xff] }
  0x16   : > { %v5223_v5 = vld [vmem:[%s5203_s19 + $0x31] sm:$0xff]  ;;  %v5233_v7 = vld [vmem:[%s5203_s19 + $0x49] sm:$0xff]  ;;  %v5243_v9 = vld [vmem:[%s5203_s19 + $0x61] sm:$0xff] }
  0x17   : > { %v5230_v6 = vld [vmem:[%s5203_s19 + $0x51] sm:$0xff]  ;;  %v5240_v8 = vld [vmem:[%s5203_s19 + $0x69] sm:$0xff]  ;;  %v5250_v10 = vld [vmem:[%s5203_s19 + $0x81] sm:$0xff] }
  0x18   : > { %8093 = vst [vmem:[#allocation2_spill] sm:$0xff] %v5250_v10  ;;  %v5253_v11 = vld [vmem:[%s5203_s19 + $0x79] sm:$0xff]  ;;  %v5263_v13 = vld [vmem:[%s5203_s19 + $0x91] sm:$0xff]  ;;  %v5273_v15 = vld [vmem:[%s5203_s19 + $0xa9] sm:$0xff] }
  0x19   : > { %369 = vrot.lane.b32.xlu1 %v5213_v2, %s5156_s20  ;;  %365 = vrot.lane.b32.xlu0 %v233_v3, %s5156_s20  ;;  %8094 = vst [vmem:[#allocation3_spill] sm:$0xff] %v5253_v11  ;;  %v5260_v12 = vld [vmem:[%s5203_s19 + $0x99] sm:$0xff]  ;;  %8096 = vst [vmem:[#allocation5_spill] sm:$0xff] %v5263_v13  ;;  %v5270_v14 = vld [vmem:[%s5203_s19 + $0xb1] sm:$0xff] }
  0x1a   : > { %8095 = vst [vmem:[#allocation4_spill] sm:$0xff] %v5260_v12  ;;  %8097 = vst [vmem:[#allocation6_spill] sm:$0xff] %v5270_v14  ;;  %v5280_v16 = vld [vmem:[%s5203_s19 + $0xc9] sm:$0xff]  ;;  %v5283_v17 = vld [vmem:[%s5203_s19 + $0xc1] sm:$0xff] }
  0x1b   : > { %8098 = vst [vmem:[#allocation7_spill] sm:$0xff] %v5273_v15  ;;  %8099 = vst [vmem:[#allocation8_spill] sm:$0xff] %v5280_v16  ;;  %v5290_v18 = vld [vmem:[%s5203_s19 + $0xe1] sm:$0xff]  ;;  %v5293_v19 = vld [vmem:[%s5203_s19 + $0xd9] sm:$0xff] }
  0x1c   : > { %8100 = vst [vmem:[#allocation9_spill] sm:$0xff] %v5283_v17  ;;  %8101 = vst [vmem:[#allocation10_spill] sm:$0xff] %v5290_v18  ;;  %v5300_v20 = vld [vmem:[%s5203_s19 + $0xf9] sm:$0xff]  ;;  %v5303_v21 = vld [vmem:[%s5203_s19 + $0xf1] sm:$0xff] }
  0x1d   : > { %373 = vrot.lane.b32.xlu1 %v5220_v4, %s5156_s20  ;;  %371 = vrot.lane.b32.xlu0 %v5223_v5, %s5156_s20  ;;  %8102 = vst [vmem:[#allocation11_spill] sm:$0xff] %v5293_v19  ;;  %8103 = vst [vmem:[#allocation12_spill] sm:$0xff] %v5300_v20  ;;  %v5310_v22 = vld [vmem:[%s5203_s19 + $0x111] sm:$0xff]  ;;  %v5313_v23 = vld [vmem:[%s5203_s19 + $0x109] sm:$0xff] }
  0x1e   : > { %8104 = vst [vmem:[#allocation13_spill] sm:$0xff] %v5303_v21  ;;  %8105 = vst [vmem:[#allocation14_spill] sm:$0xff] %v5310_v22  ;;  %v5320_v24 = vld [vmem:[%s5203_s19 + $0x129] sm:$0xff]  ;;  %v5323_v25 = vld [vmem:[%s5203_s19 + $0x121] sm:$0xff] }
  0x1f   : > { %8106 = vst [vmem:[#allocation15_spill] sm:$0xff] %v5313_v23  ;;  %8107 = vst [vmem:[#allocation16_spill] sm:$0xff] %v5320_v24  ;;  %v5330_v26 = vld [vmem:[%s5203_s19 + $0x141] sm:$0xff]  ;;  %v5333_v27 = vld [vmem:[%s5203_s19 + $0x139] sm:$0xff] }
  0x20   : > { %8108 = vst [vmem:[#allocation17_spill] sm:$0xff] %v5323_v25  ;;  %8109 = vst [vmem:[#allocation18_spill] sm:$0xff] %v5330_v26  ;;  %v5340_v28 = vld [vmem:[%s5203_s19 + $0x159] sm:$0xff]  ;;  %v5343_v29 = vld [vmem:[%s5203_s19 + $0x151] sm:$0xff] }
  0x21   : > { %377 = vrot.lane.b32.xlu1 %v5230_v6, %s5156_s20  ;;  %375 = vrot.lane.b32.xlu0 %v5233_v7, %s5156_s20  ;;  %8110 = vst [vmem:[#allocation19_spill] sm:$0xff] %v5333_v27  ;;  %8111 = vst [vmem:[#allocation20_spill] sm:$0xff] %v5340_v28  ;;  %v5350_v30 = vld [vmem:[%s5203_s19 + $0x171] sm:$0xff]  ;;  %v5353_v31 = vld [vmem:[%s5203_s19 + $0x169] sm:$0xff] }
  0x22   : > { %8112 = vst [vmem:[#allocation21_spill] sm:$0xff] %v5343_v29  ;;  %8113 = vst [vmem:[#allocation22_spill] sm:$0xff] %v5350_v30  ;;  %v5360_v32 = vld [vmem:[%s5203_s19 + $0x20] sm:$0xff]  ;;  %v5363_v33 = vld [vmem:[%s5203_s19 + $0x18] sm:$0xff] }
  0x23   : > { %8114 = vst [vmem:[#allocation23_spill] sm:$0xff] %v5353_v31  ;;  %v5370_v34 = vld [vmem:[%s5203_s19 + $0x38] sm:$0xff]  ;;  %v5373_v35 = vld [vmem:[%s5203_s19 + $0x30] sm:$0xff]  ;;  %v5383_v37 = vld [vmem:[%s5203_s19 + $0x48] sm:$0xff] }
  0x24   : > { %v5380_v36 = vld [vmem:[%s5203_s19 + $0x50] sm:$0xff]  ;;  %v5390_v38 = vld [vmem:[%s5203_s19 + $0x68] sm:$0xff]  ;;  %v5393_v39 = vld [vmem:[%s5203_s19 + $0x60] sm:$0xff] }
  0x25   : > { %381 = vrot.lane.b32.xlu1 %v5240_v8, %s5156_s20  ;;  %379 = vrot.lane.b32.xlu0 %v5243_v9, %s5156_s20  ;;  %v5400_v40 = vld [vmem:[%s5203_s19 + $0x80] sm:$0xff]  ;;  %v5403_v41 = vld [vmem:[%s5203_s19 + $0x78] sm:$0xff] }
  0x26   : > { %v5410_v42 = vld [vmem:[%s5203_s19 + $0x98] sm:$0xff]  ;;  %v5413_v43 = vld [vmem:[%s5203_s19 + $0x90] sm:$0xff]  ;;  %v5423_v45 = vld [vmem:[%s5203_s19 + $0xa8] sm:$0xff] }
  0x27   : > { %v5420_v44 = vld [vmem:[%s5203_s19 + $0xb0] sm:$0xff]  ;;  %v5430_v46 = vld [vmem:[%s5203_s19 + $0xc8] sm:$0xff]  ;;  %v5433_v47 = vld [vmem:[%s5203_s19 + $0xc0] sm:$0xff] }
  0x28   : > { %8115 = vst [vmem:[#allocation24_spill] sm:$0xff] %v5430_v46  ;;  %8116 = vst [vmem:[#allocation25_spill] sm:$0xff] %v5433_v47  ;;  %v5440_v48 = vld [vmem:[%s5203_s19 + $0xe0] sm:$0xff]  ;;  %v5443_v49 = vld [vmem:[%s5203_s19 + $0xd8] sm:$0xff] }
  0x29   : > { %385 = vrot.lane.b32.xlu1 %v5250_v10, %s5156_s20  ;;  %383 = vrot.lane.b32.xlu0 %v5253_v11, %s5156_s20  ;;  %8117 = vst [vmem:[#allocation26_spill] sm:$0xff] %v5440_v48  ;;  %8118 = vst [vmem:[#allocation27_spill] sm:$0xff] %v5443_v49  ;;  %v5450_v50 = vld [vmem:[%s5203_s19 + $0xf8] sm:$0xff]  ;;  %v5453_v51 = vld [vmem:[%s5203_s19 + $0xf0] sm:$0xff] }
  0x2a   : > { %8119 = vst [vmem:[#allocation28_spill] sm:$0xff] %v5450_v50  ;;  %8120 = vst [vmem:[#allocation29_spill] sm:$0xff] %v5453_v51  ;;  %v5460_v52 = vld [vmem:[%s5203_s19 + $0x110] sm:$0xff]  ;;  %v5463_v53 = vld [vmem:[%s5203_s19 + $0x108] sm:$0xff] }
  0x2b   : > { %8121 = vst [vmem:[#allocation30_spill] sm:$0xff] %v5460_v52  ;;  %8122 = vst [vmem:[#allocation31_spill] sm:$0xff] %v5463_v53  ;;  %v5470_v54 = vld [vmem:[%s5203_s19 + $0x128] sm:$0xff]  ;;  %v5473_v55 = vld [vmem:[%s5203_s19 + $0x120] sm:$0xff] }
  0x2c   : > { %8123 = vst [vmem:[#allocation32_spill] sm:$0xff] %v5470_v54  ;;  %8124 = vst [vmem:[#allocation33_spill] sm:$0xff] %v5473_v55  ;;  %v5480_v56 = vld [vmem:[%s5203_s19 + $0x140] sm:$0xff]  ;;  %v5483_v57 = vld [vmem:[%s5203_s19 + $0x138] sm:$0xff] }
  0x2d   : > { %389 = vrot.lane.b32.xlu1 %v5260_v12, %s5156_s20  ;;  %387 = vrot.lane.b32.xlu0 %v5263_v13, %s5156_s20  ;;  %8125 = vst [vmem:[#allocation34_spill] sm:$0xff] %v5480_v56  ;;  %8126 = vst [vmem:[#allocation35_spill] sm:$0xff] %v5483_v57  ;;  %v5496_v61 = vld [vmem:[%s5203_s19 + $0x158] sm:$0xff]  ;;  %v5499_v62 = vld [vmem:[%s5203_s19 + $0x150] sm:$0xff] }
  0x2e   : > { %8127 = vst [vmem:[#allocation36_spill] sm:$0xff] %v5496_v61  ;;  %8128 = vst [vmem:[#allocation37_spill] sm:$0xff] %v5499_v62  ;;  %v5510_v3 = vld [vmem:[%s5203_s19 + $0x170] sm:$0xff]  ;;  %v5513_v58 = vld [vmem:[%s5203_s19 + $0x168] sm:$0xff] }
  0x2f   : > { %8129 = vst [vmem:[#allocation38_spill] sm:$0xff] %v5510_v3  ;;  %8130 = vst [vmem:[#allocation39_spill] sm:$0xff] %v5513_v58  ;;  %v4272_v60 = vld [vmem:[%s5203_s19 + $0x188] sm:$0xff] }
  0x31   : > { %393 = vrot.lane.b32.xlu1 %v5270_v14, %s5156_s20  ;;  %391 = vrot.lane.b32.xlu0 %v5273_v15, %s5156_s20 }
  0x35   : > { %397 = vrot.lane.b32.xlu1 %v5280_v16, %s5156_s20  ;;  %395 = vrot.lane.b32.xlu0 %v5283_v17, %s5156_s20 }
  0x39   : > { %401 = vrot.lane.b32.xlu1 %v5290_v18, %s5156_s20  ;;  %399 = vrot.lane.b32.xlu0 %v5293_v19, %s5156_s20 }
  0x3d   : > { %405 = vrot.lane.b32.xlu1 %v5300_v20, %s5156_s20  ;;  %403 = vrot.lane.b32.xlu0 %v5303_v21, %s5156_s20 }
  0x41   : > { %409 = vrot.lane.b32.xlu1 %v5310_v22, %s5156_s20  ;;  %407 = vrot.lane.b32.xlu0 %v5313_v23, %s5156_s20 }
  0x45   : > { %413 = vrot.lane.b32.xlu1 %v5320_v24, %s5156_s20  ;;  %411 = vrot.lane.b32.xlu0 %v5323_v25, %s5156_s20 }
  0x49   : > { %417 = vrot.lane.b32.xlu1 %v5330_v26, %s5156_s20  ;;  %415 = vrot.lane.b32.xlu0 %v5333_v27, %s5156_s20 }
  0x4d   : > { %421 = vrot.lane.b32.xlu1 %v5340_v28, %s5156_s20  ;;  %419 = vrot.lane.b32.xlu0 %v5343_v29, %s5156_s20 }
  0x51   : > { %425 = vrot.lane.b32.xlu1 %v5350_v30, %s5156_s20  ;;  %423 = vrot.lane.b32.xlu0 %v5353_v31, %s5156_s20 }
  0x55   : > { %493 = vrot.lane.b32.xlu1 %v5360_v32, %s5157_s21  ;;  %491 = vrot.lane.b32.xlu0 %v5363_v33, %s5157_s21 }
  0x59   : > { %497 = vrot.lane.b32.xlu1 %v5370_v34, %s5157_s21  ;;  %495 = vrot.lane.b32.xlu0 %v5373_v35, %s5157_s21 }
  0x5d   : > { %501 = vrot.lane.b32.xlu1 %v5380_v36, %s5157_s21  ;;  %499 = vrot.lane.b32.xlu0 %v5383_v37, %s5157_s21 }
  0x61   : > { %505 = vrot.lane.b32.xlu1 %v5390_v38, %s5157_s21  ;;  %503 = vrot.lane.b32.xlu0 %v5393_v39, %s5157_s21 }
  0x65   : > { %509 = vrot.lane.b32.xlu1 %v5400_v40, %s5157_s21  ;;  %507 = vrot.lane.b32.xlu0 %v5403_v41, %s5157_s21 }
  0x69   : > { %513 = vrot.lane.b32.xlu1 %v5410_v42, %s5157_s21  ;;  %511 = vrot.lane.b32.xlu0 %v5413_v43, %s5157_s21 }
  0x6d   : > { %517 = vrot.lane.b32.xlu1 %v5420_v44, %s5157_s21  ;;  %515 = vrot.lane.b32.xlu0 %v5423_v45, %s5157_s21 }
  0x71   : > { %521 = vrot.lane.b32.xlu1 %v5430_v46, %s5157_s21  ;;  %519 = vrot.lane.b32.xlu0 %v5433_v47, %s5157_s21 }
  0x75   : > { %525 = vrot.lane.b32.xlu1 %v5440_v48, %s5157_s21  ;;  %523 = vrot.lane.b32.xlu0 %v5443_v49, %s5157_s21 }
  0x79   : > { %529 = vrot.lane.b32.xlu1 %v5450_v50, %s5157_s21  ;;  %527 = vrot.lane.b32.xlu0 %v5453_v51, %s5157_s21 }
  0x7d   : > { %533 = vrot.lane.b32.xlu1 %v5460_v52, %s5157_s21  ;;  %531 = vrot.lane.b32.xlu0 %v5463_v53, %s5157_s21 }
  0x81   : > { %537 = vrot.lane.b32.xlu1 %v5470_v54, %s5157_s21  ;;  %535 = vrot.lane.b32.xlu0 %v5473_v55, %s5157_s21 }
  0x85   : > { %541 = vrot.lane.b32.xlu1 %v5480_v56, %s5157_s21  ;;  %539 = vrot.lane.b32.xlu0 %v5483_v57, %s5157_s21  ;;  %v4271_v56 = vld [vmem:[%s5203_s19 + $0x180] sm:$0xff] }
  0x87   : > { %v5501_v63 = vpop.permute.xlu1 %367  ;;  %v5503_v1 = vpop.permute.xlu0 %363 }
  0x89   : > { %545 = vrot.lane.b32.xlu1 %v5496_v61, %s5157_s21  ;;  %543 = vrot.lane.b32.xlu0 %v5499_v62, %s5157_s21 }
  0x8b   : > { %v5515_v59 = vpop.permute.xlu1 %369  ;;  %v5517_v57 = vpop.permute.xlu0 %365 }
  0x8d   : > { %549 = vrot.lane.b32.xlu1 %v5510_v3, %s5157_s21  ;;  %547 = vrot.lane.b32.xlu0 %v5513_v58, %s5157_s21 }
  0x8f   : > { %v5525_v61 = vpop.permute.xlu1 %373  ;;  %v5527_v55 = vpop.permute.xlu0 %371 }
  0x91   : > { %553 = vrot.lane.b32.xlu1 %v4272_v60, %s5157_s21  ;;  %551 = vrot.lane.b32.xlu0 %v4271_v56, %s5157_s21 }
  0x93   : > { %v5531_v62 = vpop.permute.xlu1 %377  ;;  %v5533_v54 = vpop.permute.xlu0 %375 }
  0x95   : > { %621 = vrot.lane.b32.xlu1 %v5213_v2, %s5158_s26  ;;  %619 = vrot.lane.b32.xlu0 %v5206_v0, %s5158_s26 }
  0x97   : > { %v5539_v58 = vpop.permute.xlu1 %381  ;;  %v5541_v3 = vpop.permute.xlu0 %379 }
  0x99   : > { %625 = vrot.lane.b32.xlu1 %v5220_v4, %s5158_s26  ;;  %623 = vrot.lane.b32.xlu0 %v5223_v5, %s5158_s26 }
  0x9b   : > { %v5547_v56 = vpop.permute.xlu1 %385  ;;  %v5549_v60 = vpop.permute.xlu0 %383 }
  0x9d   : > { %629 = vrot.lane.b32.xlu1 %v5230_v6, %s5158_s26  ;;  %627 = vrot.lane.b32.xlu0 %v5233_v7, %s5158_s26 }
  0x9f   : > { %v5555_v53 = vpop.permute.xlu1 %389  ;;  %v5557_v52 = vpop.permute.xlu0 %387 }
  0xa1   : > { %633 = vrot.lane.b32.xlu1 %v5240_v8, %s5158_s26  ;;  %631 = vrot.lane.b32.xlu0 %v5243_v9, %s5158_s26 }
  0xa3   : > { %v5563_v51 = vpop.permute.xlu1 %393  ;;  %v5565_v50 = vpop.permute.xlu0 %391 }
  0xa5   : > { %637 = vrot.lane.b32.xlu1 %v5250_v10, %s5158_s26  ;;  %635 = vrot.lane.b32.xlu0 %v5253_v11, %s5158_s26 }
  0xa7   : > { %v5571_v49 = vpop.permute.xlu1 %397  ;;  %v5573_v48 = vpop.permute.xlu0 %395 }
  0xa8   : > { %8131 = vst [vmem:[#allocation40_spill] sm:$0xff] %v5571_v49  ;;  %8132 = vst [vmem:[#allocation41_spill] sm:$0xff] %v5573_v48 }
  0xa9   : > { %641 = vrot.lane.b32.xlu1 %v5260_v12, %s5158_s26  ;;  %639 = vrot.lane.b32.xlu0 %v5263_v13, %s5158_s26 }
  0xab   : > { %v5579_v47 = vpop.permute.xlu1 %401  ;;  %v5581_v46 = vpop.permute.xlu0 %399 }
  0xac   : > { %8133 = vst [vmem:[#allocation42_spill] sm:$0xff] %v5579_v47  ;;  %8134 = vst [vmem:[#allocation43_spill] sm:$0xff] %v5581_v46  ;;  %v5747_v46 = vld [vmem:[%s5203_s19 + $0x92] sm:$0xff] }
  0xad   : > { %645 = vrot.lane.b32.xlu1 %v5270_v14, %s5158_s26  ;;  %643 = vrot.lane.b32.xlu0 %v5273_v15, %s5158_s26  ;;  %8162 = vst [vmem:[#allocation71_spill] sm:$0xff] %v5747_v46 }
  0xaf   : > { %v5587_v11 = vpop.permute.xlu1 %405  ;;  %v5589_v49 = vpop.permute.xlu0 %403 }
  0xb0   : > { %8135 = vst [vmem:[#allocation44_spill] sm:$0xff] %v5587_v11  ;;  %8136 = vst [vmem:[#allocation45_spill] sm:$0xff] %v5589_v49  ;;  %v5733_v49 = vld [vmem:[%s5203_s19 + $0x7a] sm:$0xff] }
  0xb1   : > { %649 = vrot.lane.b32.xlu1 %v5280_v16, %s5158_s26  ;;  %647 = vrot.lane.b32.xlu0 %v5283_v17, %s5158_s26  ;;  %8158 = vst [vmem:[#allocation67_spill] sm:$0xff] %v5733_v49 }
  0xb3   : > { %v5595_v13 = vpop.permute.xlu1 %409  ;;  %v5597_v47 = vpop.permute.xlu0 %407 }
  0xb4   : > { %8137 = vst [vmem:[#allocation46_spill] sm:$0xff] %v5595_v13  ;;  %8138 = vst [vmem:[#allocation47_spill] sm:$0xff] %v5597_v47  ;;  %v5719_v47 = vld [vmem:[%s5203_s19 + $0x62] sm:$0xff] }
  0xb5   : > { %653 = vrot.lane.b32.xlu1 %v5290_v18, %s5158_s26  ;;  %651 = vrot.lane.b32.xlu0 %v5293_v19, %s5158_s26  ;;  %8156 = vst [vmem:[#allocation65_spill] sm:$0xff] %v5719_v47 }
  0xb7   : > { %v5603_v15 = vpop.permute.xlu1 %413  ;;  %v5605_v11 = vpop.permute.xlu0 %411 }
  0xb8   : > { %8139 = vst [vmem:[#allocation48_spill] sm:$0xff] %v5603_v15  ;;  %8140 = vst [vmem:[#allocation49_spill] sm:$0xff] %v5605_v11  ;;  %v5705_v15 = vld [vmem:[%s5203_s19 + $0x4a] sm:$0xff] }
  0xb9   : > { %657 = vrot.lane.b32.xlu1 %v5300_v20, %s5158_s26  ;;  %655 = vrot.lane.b32.xlu0 %v5303_v21, %s5158_s26  ;;  %v5688_v21 = vld [vmem:[%s5203_s19 + $0x3a] sm:$0xff]  ;;  %8154 = vst [vmem:[#allocation63_spill] sm:$0xff] %v5705_v15 }
  0xba   : > { %8151 = vst [vmem:[#allocation60_spill] sm:$0xff] %v5688_v21 }
  0xbb   : > { %v5611_v17 = vpop.permute.xlu1 %417  ;;  %v5613_v13 = vpop.permute.xlu0 %415 }
  0xbc   : > { %8141 = vst [vmem:[#allocation50_spill] sm:$0xff] %v5611_v17  ;;  %8142 = vst [vmem:[#allocation51_spill] sm:$0xff] %v5613_v13 }
  0xbd   : > { %661 = vrot.lane.b32.xlu1 %v5310_v22, %s5158_s26  ;;  %659 = vrot.lane.b32.xlu0 %v5313_v23, %s5158_s26  ;;  %v5674_v23 = vld [vmem:[%s5203_s19 + $0x22] sm:$0xff]  ;;  %v5677_v22 = vld [vmem:[%s5203_s19 + $0x1a] sm:$0xff] }
  0xbe   : > { %8149 = vst [vmem:[#allocation58_spill] sm:$0xff] %v5674_v23  ;;  %8150 = vst [vmem:[#allocation59_spill] sm:$0xff] %v5677_v22 }
  0xbf   : > { %v5619_v19 = vpop.permute.xlu1 %421  ;;  %v5621_v11 = vpop.permute.xlu0 %419 }
  0xc0   : > { %8143 = vst [vmem:[#allocation52_spill] sm:$0xff] %v5619_v19  ;;  %8144 = vst [vmem:[#allocation53_spill] sm:$0xff] %v5621_v11 }
  0xc1   : > { %665 = vrot.lane.b32.xlu1 %v5320_v24, %s5158_s26  ;;  %663 = vrot.lane.b32.xlu0 %v5323_v25, %s5158_s26  ;;  %v1144_v25 = vld [vmem:[%s5203_s19 + $0x2] sm:$0xff] }
  0xc3   : > { %v5627_v17 = vpop.permute.xlu1 %425  ;;  %v5629_v13 = vpop.permute.xlu0 %423 }
  0xc4   : > { %8145 = vst [vmem:[#allocation54_spill] sm:$0xff] %v5627_v17  ;;  %8146 = vst [vmem:[#allocation55_spill] sm:$0xff] %v5629_v13 }
  0xc5   : > { %669 = vrot.lane.b32.xlu1 %v5330_v26, %s5158_s26  ;;  %667 = vrot.lane.b32.xlu0 %v5333_v27, %s5158_s26  ;;  %v5652_v27 = vld [vmem:[%s5203_s19 + $0x189] sm:$0xff]  ;;  %v5655_v26 = vld [vmem:[%s5203_s19 + $0x181] sm:$0xff] }
  0xc6   : > { %8147 = vst [vmem:[#allocation56_spill] sm:$0xff] %v5652_v27  ;;  %8148 = vst [vmem:[#allocation57_spill] sm:$0xff] %v5655_v26 }
  0xc7   : > { %v5635_v11 = vpop.permute.xlu1 %493  ;;  %v5637_v19 = vpop.permute.xlu0 %491 }
  0xc9   : > { %673 = vrot.lane.b32.xlu1 %v5340_v28, %s5158_s26  ;;  %671 = vrot.lane.b32.xlu0 %v5343_v29, %s5158_s26 }
  0xcb   : > { %v5643_v17 = vpop.permute.xlu1 %497  ;;  %v5645_v13 = vpop.permute.xlu0 %495 }
  0xcd   : > { %677 = vrot.lane.b32.xlu1 %v5350_v30, %s5158_s26  ;;  %675 = vrot.lane.b32.xlu0 %v5353_v31, %s5158_s26  ;;  %v1145_v30 = vld [vmem:[%s5203_s19 + $0xa] sm:$0xff] }
  0xcf   : > { %v5657_v28 = vpop.permute.xlu1 %501  ;;  %v5659_v29 = vpop.permute.xlu0 %499 }
  0xd1   : > { %681 = vrot.lane.b32.xlu1 %v5652_v27, %s5158_s26  ;;  %679 = vrot.lane.b32.xlu0 %v5655_v26, %s5158_s26 }
  0xd3   : > { %v5667_v24 = vpop.permute.xlu1 %505  ;;  %v5669_v31 = vpop.permute.xlu0 %503 }
  0xd5   : > { %1242 = vrot.lane.b32.xlu1 %v1145_v30, %s5156_s20  ;;  %1240 = vrot.lane.b32.xlu0 %v1144_v25, %s5156_s20  ;;  %v5691_v30 = vld [vmem:[%s5203_s19 + $0x32] sm:$0xff] }
  0xd6   : > { %8152 = vst [vmem:[#allocation61_spill] sm:$0xff] %v5691_v30 }
  0xd7   : > { %v5679_v27 = vpop.permute.xlu1 %509  ;;  %v5681_v26 = vpop.permute.xlu0 %507 }
  0xd9   : > { %1246 = vrot.lane.b32.xlu1 %v5674_v23, %s5156_s20  ;;  %1244 = vrot.lane.b32.xlu0 %v5677_v22, %s5156_s20  ;;  %v5702_v23 = vld [vmem:[%s5203_s19 + $0x52] sm:$0xff] }
  0xda   : > { %8153 = vst [vmem:[#allocation62_spill] sm:$0xff] %v5702_v23 }
  0xdb   : > { %v5693_v25 = vpop.permute.xlu1 %513  ;;  %v5695_v20 = vpop.permute.xlu0 %511 }
  0xdd   : > { %1250 = vrot.lane.b32.xlu1 %v5688_v21, %s5156_s20  ;;  %1248 = vrot.lane.b32.xlu0 %v5691_v30, %s5156_s20  ;;  %v5716_v21 = vld [vmem:[%s5203_s19 + $0x6a] sm:$0xff] }
  0xde   : > { %8155 = vst [vmem:[#allocation64_spill] sm:$0xff] %v5716_v21 }
  0xdf   : > { %v5707_v22 = vpop.permute.xlu1 %517  ;;  %v5709_v18 = vpop.permute.xlu0 %515 }
  0xe1   : > { %1254 = vrot.lane.b32.xlu1 %v5702_v23, %s5156_s20  ;;  %1252 = vrot.lane.b32.xlu0 %v5705_v15, %s5156_s20  ;;  %v5730_v23 = vld [vmem:[%s5203_s19 + $0x82] sm:$0xff] }
  0xe2   : > { %8157 = vst [vmem:[#allocation66_spill] sm:$0xff] %v5730_v23 }
  0xe3   : > { %v5721_v30 = vpop.permute.xlu1 %521  ;;  %v5723_v16 = vpop.permute.xlu0 %519 }
  0xe5   : > { %1258 = vrot.lane.b32.xlu1 %v5716_v21, %s5156_s20  ;;  %1256 = vrot.lane.b32.xlu0 %v5719_v47, %s5156_s20  ;;  %v5744_v21 = vld [vmem:[%s5203_s19 + $0x9a] sm:$0xff] }
  0xe6   : > { %8161 = vst [vmem:[#allocation70_spill] sm:$0xff] %v5744_v21 }
  0xe7   : > { %v5735_v15 = vpop.permute.xlu1 %525  ;;  %v5737_v14 = vpop.permute.xlu0 %523 }
  0xe8   : > { %8159 = vst [vmem:[#allocation68_spill] sm:$0xff] %v5735_v15  ;;  %8160 = vst [vmem:[#allocation69_spill] sm:$0xff] %v5737_v14  ;;  %v5761_v14 = vld [vmem:[%s5203_s19 + $0xaa] sm:$0xff] }
  0xe9   : > { %1262 = vrot.lane.b32.xlu1 %v5730_v23, %s5156_s20  ;;  %1260 = vrot.lane.b32.xlu0 %v5733_v49, %s5156_s20  ;;  %v5758_v23 = vld [vmem:[%s5203_s19 + $0xb2] sm:$0xff]  ;;  %8166 = vst [vmem:[#allocation75_spill] sm:$0xff] %v5761_v14 }
  0xea   : > { %8165 = vst [vmem:[#allocation74_spill] sm:$0xff] %v5758_v23 }
  0xeb   : > { %v5749_v47 = vpop.permute.xlu1 %529  ;;  %v5751_v12 = vpop.permute.xlu0 %527 }
  0xec   : > { %8163 = vst [vmem:[#allocation72_spill] sm:$0xff] %v5749_v47  ;;  %8164 = vst [vmem:[#allocation73_spill] sm:$0xff] %v5751_v12  ;;  %v5775_v12 = vld [vmem:[%s5203_s19 + $0xc2] sm:$0xff] }
  0xed   : > { %1266 = vrot.lane.b32.xlu1 %v5744_v21, %s5156_s20  ;;  %1264 = vrot.lane.b32.xlu0 %v5747_v46, %s5156_s20  ;;  %v5772_v21 = vld [vmem:[%s5203_s19 + $0xca] sm:$0xff]  ;;  %8170 = vst [vmem:[#allocation79_spill] sm:$0xff] %v5775_v12 }
  0xee   : > { %8169 = vst [vmem:[#allocation78_spill] sm:$0xff] %v5772_v21 }
  0xef   : > { %v5763_v49 = vpop.permute.xlu1 %533  ;;  %v5765_v15 = vpop.permute.xlu0 %531 }
  0xf0   : > { %8167 = vst [vmem:[#allocation76_spill] sm:$0xff] %v5763_v49  ;;  %8168 = vst [vmem:[#allocation77_spill] sm:$0xff] %v5765_v15  ;;  %v5789_v15 = vld [vmem:[%s5203_s19 + $0xda] sm:$0xff] }
  0xf1   : > { %1270 = vrot.lane.b32.xlu1 %v5758_v23, %s5156_s20  ;;  %1268 = vrot.lane.b32.xlu0 %v5761_v14, %s5156_s20  ;;  %v5786_v23 = vld [vmem:[%s5203_s19 + $0xe2] sm:$0xff]  ;;  %8174 = vst [vmem:[#allocation83_spill] sm:$0xff] %v5789_v15 }
  0xf2   : > { %8173 = vst [vmem:[#allocation82_spill] sm:$0xff] %v5786_v23 }
  0xf3   : > { %v5777_v46 = vpop.permute.xlu1 %537  ;;  %v5779_v47 = vpop.permute.xlu0 %535 }
  0xf4   : > { %8171 = vst [vmem:[#allocation80_spill] sm:$0xff] %v5777_v46  ;;  %8172 = vst [vmem:[#allocation81_spill] sm:$0xff] %v5779_v47 }
  0xf5   : > { %1274 = vrot.lane.b32.xlu1 %v5772_v21, %s5156_s20  ;;  %1272 = vrot.lane.b32.xlu0 %v5775_v12, %s5156_s20  ;;  %v5800_v21 = vld [vmem:[%s5203_s19 + $0xfa] sm:$0xff]  ;;  %v5803_v12 = vld [vmem:[%s5203_s19 + $0xf2] sm:$0xff] }
  0xf6   : > { %8177 = vst [vmem:[#allocation86_spill] sm:$0xff] %v5800_v21  ;;  %8178 = vst [vmem:[#allocation87_spill] sm:$0xff] %v5803_v12 }
  0xf7   : > { %v5791_v14 = vpop.permute.xlu1 %541  ;;  %v5793_v49 = vpop.permute.xlu0 %539 }
  0xf8   : > { %8175 = vst [vmem:[#allocation84_spill] sm:$0xff] %v5791_v14  ;;  %8176 = vst [vmem:[#allocation85_spill] sm:$0xff] %v5793_v49  ;;  %v5817_v49 = vld [vmem:[%s5203_s19 + $0x10a] sm:$0xff] }
  0xf9   : > { %1278 = vrot.lane.b32.xlu1 %v5786_v23, %s5156_s20  ;;  %1276 = vrot.lane.b32.xlu0 %v5789_v15, %s5156_s20  ;;  %v5814_v23 = vld [vmem:[%s5203_s19 + $0x112] sm:$0xff]  ;;  %8182 = vst [vmem:[#allocation91_spill] sm:$0xff] %v5817_v49 }
  0xfa   : > { %8181 = vst [vmem:[#allocation90_spill] sm:$0xff] %v5814_v23 }
  0xfb   : > { %v5805_v47 = vpop.permute.xlu1 %545  ;;  %v5807_v46 = vpop.permute.xlu0 %543 }
  0xfc   : > { %8179 = vst [vmem:[#allocation88_spill] sm:$0xff] %v5805_v47  ;;  %8180 = vst [vmem:[#allocation89_spill] sm:$0xff] %v5807_v46  ;;  %v5831_v46 = vld [vmem:[%s5203_s19 + $0x122] sm:$0xff] }
  0xfd   : > { %1282 = vrot.lane.b32.xlu1 %v5800_v21, %s5156_s20  ;;  %1280 = vrot.lane.b32.xlu0 %v5803_v12, %s5156_s20  ;;  %v5828_v21 = vld [vmem:[%s5203_s19 + $0x12a] sm:$0xff]  ;;  %8186 = vst [vmem:[#allocation95_spill] sm:$0xff] %v5831_v46  ;;  %v200_v12 = vld [vmem:[%s5203_s19] sm:$0xff] }
  0xfe   : > { %8185 = vst [vmem:[#allocation94_spill] sm:$0xff] %v5828_v21  ;;  %v201_v47 = vld [vmem:[%s5203_s19 + $0x8] sm:$0xff] }
  0xff   : > { %v5819_v15 = vpop.permute.xlu1 %549  ;;  %v5821_v14 = vpop.permute.xlu0 %547 }
 0x100   : > { %8183 = vst [vmem:[#allocation92_spill] sm:$0xff] %v5819_v15  ;;  %8184 = vst [vmem:[#allocation93_spill] sm:$0xff] %v5821_v14  ;;  %v5848_v14 = vld [vmem:[%s5203_s19 + $0x142] sm:$0xff] }
 0x101   : > { %1286 = vrot.lane.b32.xlu1 %v5814_v23, %s5156_s20  ;;  %1284 = vrot.lane.b32.xlu0 %v5817_v49, %s5156_s20  ;;  %v716_v49 = vsel %vm715_vm0, %v200_v12, %v5503_v1  ;;  %v717_v23 = vsel %vm715_vm0, %v201_v47, %v5517_v57  ;;  %v5898_v57 = vld [vmem:[%s5203_s19 + $0x16a] sm:$0xff] }
 0x103   : > { %v5835_v48 = vpop.permute.xlu1 %553  ;;  %v5837_v15 = vpop.permute.xlu0 %551 }
 0x104   : > { %8187 = vst [vmem:[#allocation96_spill] sm:$0xff] %v5835_v48  ;;  %8188 = vst [vmem:[#allocation97_spill] sm:$0xff] %v5837_v15  ;;  %v5851_v48 = vld [vmem:[%s5203_s19 + $0x13a] sm:$0xff]  ;;  %v750_v15 = vsel %vm748_vm1, %v717_v23, %v5635_v11  ;;  %v718_v11 = vsel %vm715_vm0, %v5363_v33, %v5501_v63 }
 0x105   : > { %1290 = vrot.lane.b32.xlu1 %v5828_v21, %s5156_s20  ;;  %1288 = vrot.lane.b32.xlu0 %v5831_v46, %s5156_s20  ;;  %v749_v21 = vsel %vm748_vm1, %v716_v49, %v5637_v19  ;;  %v719_v19 = vsel %vm715_vm0, %v5360_v32, %v5515_v59  ;;  %v751_v23 = vsel %vm748_vm1, %v718_v11, %v5645_v13  ;;  %v5895_v49 = vld [vmem:[%s5203_s19 + $0x172] sm:$0xff] }
 0x106   : > { %v720_v13 = vsel %vm715_vm0, %v5373_v35, %v5527_v55 }
 0x107   : > { %v622_v46 = vpop.permute.xlu1 %621  ;;  %v620_v10 = vpop.permute.xlu0 %619  ;;  %v753_v59 = vsel %vm748_vm1, %v720_v13, %v5659_v29  ;;  %v722_v29 = vsel %vm715_vm0, %v5383_v37, %v5533_v54 }
 0x108   : > { %v783_v12 = vsel %vm781_vm2, %v750_v15, %v622_v46  ;;  %v782_v1 = vsel %vm781_vm2, %v749_v21, %v620_v10  ;;  %v5871_v15 = vld [vmem:[%s5203_s19 + $0x15a] sm:$0xff]  ;;  %v5874_v10 = vld [vmem:[%s5203_s19 + $0x152] sm:$0xff]  ;;  %v752_v21 = vsel %vm748_vm1, %v719_v19, %v5643_v17  ;;  %v721_v17 = vsel %vm715_vm0, %v5370_v34, %v5525_v61 }
 0x109   : > { %1294 = vrot.lane.b32.xlu1 %v5848_v14, %s5156_s20  ;;  %1292 = vrot.lane.b32.xlu0 %v5851_v48, %s5156_s20  ;;  %v754_v63 = vsel %vm748_vm1, %v721_v17, %v5657_v28  ;;  %v723_v28 = vsel %vm715_vm0, %v5380_v36, %v5531_v62  ;;  %v8196_v17 = vld [vmem:[#allocation69_spill] sm:$0xff] }
 0x10a   : > { %4839 = vmatprep.mubr.msk.f32.mxu0 %vm822_vm3, %v782_v1  ;;  %v756_v55 = vsel %vm748_vm1, %v723_v28, %v5667_v24  ;;  %v755_v1 = vsel %vm748_vm1, %v722_v29, %v5669_v31  ;;  %v725_v24 = vsel %vm715_vm0, %v5390_v38, %v5539_v58  ;;  %v724_v31 = vsel %vm715_vm0, %v5393_v39, %v5541_v3  ;;  %v8199_v28 = vld [vmem:[#allocation42_spill] sm:$0xff] }
 0x10b   : > { %4840 = vmatmul.mubr.msk.f32.vlgmr.msra.gmra.mrb[0].mxu0 %vm822_vm3, %v783_v12  ;;  %v626_v33 = vpop.permute.xlu1 %625  ;;  %v624_v46 = vpop.permute.xlu0 %623  ;;  %v758_v37 = vsel %vm748_vm1, %v725_v24, %v5679_v27  ;;  %v757_v54 = vsel %vm748_vm1, %v724_v31, %v5681_v26  ;;  %v727_v27 = vsel %vm715_vm0, %v5400_v40, %v5547_v56  ;;  %v726_v26 = vsel %vm715_vm0, %v5403_v41, %v5549_v60  ;;  %v8200_v29 = vld [vmem:[#allocation26_spill] sm:$0xff]  ;;  %v8204_v24 = vld [vmem:[#allocation73_spill] sm:$0xff] }
 0x10c   : > { %v785_v32 = vsel %vm781_vm2, %v752_v21, %v626_v33  ;;  %v784_v47 = vsel %vm781_vm2, %v751_v23, %v624_v46  ;;  %v760_v39 = vsel %vm748_vm1, %v727_v27, %v5693_v25  ;;  %v759_v3 = vsel %vm748_vm1, %v726_v26, %v5695_v20  ;;  %v8192_v23 = vld [vmem:[#allocation24_spill] sm:$0xff]  ;;  %v8193_v33 = vld [vmem:[#allocation41_spill] sm:$0xff] }
 0x10d   : > { %1298 = vrot.lane.b32.xlu1 %v5871_v15, %s5156_s20  ;;  %1296 = vrot.lane.b32.xlu0 %v5874_v10, %s5156_s20  ;;  %v729_v41 = vsel %vm715_vm0, %v5410_v42, %v5555_v53  ;;  %v728_v20 = vsel %vm715_vm0, %v5413_v43, %v5557_v52  ;;  %v8207_v27 = vld [vmem:[#allocation44_spill] sm:$0xff] }
 0x10e   : > { %4842 = vmatprep.mubr.msk.f32.mxu0 %vm822_vm3, %v784_v47  ;;  %v762_v56 = vsel %vm748_vm1, %v729_v41, %v5707_v22  ;;  %v761_v60 = vsel %vm748_vm1, %v728_v20, %v5709_v18  ;;  %v731_v22 = vsel %vm715_vm0, %v5420_v44, %v5563_v51  ;;  %v730_v18 = vsel %vm715_vm0, %v5423_v45, %v5565_v50  ;;  %v8189_v51 = vld [vmem:[#allocation2_spill] sm:$0xff]  ;;  %v8190_v45 = vld [vmem:[#allocation3_spill] sm:$0xff]  ;;  %v8191_v50 = vld [vmem:[#allocation40_spill] sm:$0xff] }
 0x10f   : > { %4843 = vmatmul.mubr.msk.f32.gmra.mrb[2].mxu0 %vm822_vm3, %v785_v32  ;;  %v630_v12 = vpop.permute.xlu1 %629  ;;  %v628_v34 = vpop.permute.xlu0 %627  ;;  %v764_v43 = vsel %vm748_vm1, %v731_v22, %v5721_v30  ;;  %v763_v52 = vsel %vm748_vm1, %v730_v18, %v5723_v16  ;;  %v733_v30 = vsel %vm715_vm0, %v8192_v23, %v8191_v50  ;;  %v8194_v16 = vld [vmem:[#allocation25_spill] sm:$0xff]  ;;  %v8195_v32 = vld [vmem:[#allocation68_spill] sm:$0xff]  ;;  %v8215_v22 = vld [vmem:[#allocation46_spill] sm:$0xff] }
 0x110   : > { %v787_v61 = vsel %vm781_vm2, %v754_v63, %v630_v12  ;;  %v786_v35 = vsel %vm781_vm2, %v753_v59, %v628_v34  ;;  %v732_v46 = vsel %vm715_vm0, %v8194_v16, %v8193_v33  ;;  %v766_v47 = vsel %vm748_vm1, %v733_v30, %v8195_v32  ;;  %v8208_v26 = vld [vmem:[#allocation28_spill] sm:$0xff]  ;;  %v8212_v41 = vld [vmem:[#allocation77_spill] sm:$0xff]  ;;  %v8216_v18 = vld [vmem:[#allocation30_spill] sm:$0xff] }
 0x111   : > { %1302 = vrot.lane.b32.xlu1 %v5895_v49, %s5156_s20  ;;  %1300 = vrot.lane.b32.xlu0 %v5898_v57, %s5156_s20  ;;  %v765_v13 = vsel %vm748_vm1, %v732_v46, %v8196_v17  ;;  %v8221_v16 = vld [vmem:[#allocation10_spill] sm:$0xff]  ;;  %v8222_v46 = vld [vmem:[#allocation11_spill] sm:$0xff]  ;;  %v8223_v32 = vld [vmem:[#allocation48_spill] sm:$0xff] }
 0x112   : > { %4845 = vmatprep.mubr.msk.f32.mxu0 %vm822_vm3, %v786_v35  ;;  %v8198_v35 = vld [vmem:[#allocation5_spill] sm:$0xff] }
 0x113   : > { %4846 = vmatmul.mubr.msk.f32.gmra.mrb[4].mxu0 %vm822_vm3, %v787_v61  ;;  %v634_v11 = vpop.permute.xlu1 %633  ;;  %v632_v19 = vpop.permute.xlu0 %631  ;;  %v8197_v61 = vld [vmem:[#allocation4_spill] sm:$0xff] }
 0x114   : > { %v789_v21 = vsel %vm781_vm2, %v756_v55, %v634_v11  ;;  %v788_v36 = vsel %vm781_vm2, %v755_v1, %v632_v19  ;;  %v735_v55 = vsel %vm715_vm0, %v8200_v29, %v8199_v28  ;;  %v8201_v1 = vld [vmem:[#allocation43_spill] sm:$0xff] }
 0x115   : > { %1338 = vrot.lane.b32.xlu1 %v5213_v2, %s5157_s21  ;;  %1336 = vrot.lane.b32.xlu0 %v5206_v0, %s5157_s21  ;;  %v8202_v11 = vld [vmem:[#allocation27_spill] sm:$0xff] }
 0x116   : > { %4848 = vmatprep.mubr.msk.f32.mxu0 %vm822_vm3, %v788_v36  ;;  %v734_v19 = vsel %vm715_vm0, %v8202_v11, %v8201_v1  ;;  %v8229_v11 = vld [vmem:[#allocation12_spill] sm:$0xff] }
 0x117   : > { %4849 = vmatmul.mubr.msk.f32.gmra.mrb[6].mxu0 %vm822_vm3, %v789_v21  ;;  %v638_v2 = vpop.permute.xlu1 %637  ;;  %v636_v0 = vpop.permute.xlu0 %635  ;;  %v8203_v21 = vld [vmem:[#allocation72_spill] sm:$0xff]  ;;  %v767_v31 = vsel %vm748_vm1, %v734_v19, %v8204_v24  ;;  %v8230_v19 = vld [vmem:[#allocation13_spill] sm:$0xff] }
 0x118   : > { %v791_v62 = vsel %vm781_vm2, %v758_v37, %v638_v2  ;;  %v790_v38 = vsel %vm781_vm2, %v757_v54, %v636_v0  ;;  %v768_v36 = vsel %vm748_vm1, %v735_v55, %v8203_v21  ;;  %v8231_v21 = vld [vmem:[#allocation50_spill] sm:$0xff] }
 0x119   : > { %1342 = vrot.lane.b32.xlu1 %v5220_v4, %s5157_s21  ;;  %1340 = vrot.lane.b32.xlu0 %v5223_v5, %s5157_s21 }
 0x11a   : > { %4851 = vmatprep.mubr.msk.f32.mxu0 %vm822_vm3, %v790_v38  ;;  %v8206_v38 = vld [vmem:[#allocation7_spill] sm:$0xff] }
 0x11b   : > { %4852 = vmatmul.mubr.msk.f32.gmra.mrb[8].mxu0 %vm822_vm3, %v791_v62  ;;  %v642_v4 = vpop.permute.xlu1 %641  ;;  %v640_v5 = vpop.permute.xlu0 %639  ;;  %v8205_v62 = vld [vmem:[#allocation6_spill] sm:$0xff] }
 0x11c   : > { %v793_v58 = vsel %vm781_vm2, %v760_v39, %v642_v4  ;;  %v792_v40 = vsel %vm781_vm2, %v759_v3, %v640_v5  ;;  %v737_v39 = vsel %vm715_vm0, %v8208_v26, %v8207_v27  ;;  %v8209_v3 = vld [vmem:[#allocation45_spill] sm:$0xff] }
 0x11d   : > { %1346 = vrot.lane.b32.xlu1 %v5230_v6, %s5157_s21  ;;  %1344 = vrot.lane.b32.xlu0 %v5233_v7, %s5157_s21  ;;  %v8210_v4 = vld [vmem:[#allocation29_spill] sm:$0xff] }
 0x11e   : > { %4854 = vmatprep.mubr.msk.f32.mxu0 %vm822_vm3, %v792_v40  ;;  %v736_v5 = vsel %vm715_vm0, %v8210_v4, %v8209_v3  ;;  %v8237_v4 = vld [vmem:[#allocation14_spill] sm:$0xff] }
 0x11f   : > { %4855 = vmatmul.mubr.msk.f32.gmra.mrb[10].mxu0 %vm822_vm3, %v793_v58  ;;  %v646_v6 = vpop.permute.xlu1 %645  ;;  %v644_v7 = vpop.permute.xlu0 %643  ;;  %v8211_v58 = vld [vmem:[#allocation76_spill] sm:$0xff]  ;;  %v769_v20 = vsel %vm748_vm1, %v736_v5, %v8212_v41  ;;  %v8238_v5 = vld [vmem:[#allocation15_spill] sm:$0xff] }
 0x120   : > { %v795_v25 = vsel %vm781_vm2, %v762_v56, %v646_v6  ;;  %v794_v42 = vsel %vm781_vm2, %v761_v60, %v644_v7  ;;  %v770_v40 = vsel %vm748_vm1, %v737_v39, %v8211_v58  ;;  %v8239_v58 = vld [vmem:[#allocation52_spill] sm:$0xff] }
 0x121   : > { %1350 = vrot.lane.b32.xlu1 %v5240_v8, %s5157_s21  ;;  %1348 = vrot.lane.b32.xlu0 %v5243_v9, %s5157_s21 }
 0x122   : > { %4857 = vmatprep.mubr.msk.f32.mxu0 %vm822_vm3, %v794_v42  ;;  %v8214_v42 = vld [vmem:[#allocation9_spill] sm:$0xff] }
 0x123   : > { %4858 = vmatmul.mubr.msk.f32.gmra.mrb[12].mxu0 %vm822_vm3, %v795_v25  ;;  %v650_v8 = vpop.permute.xlu1 %649  ;;  %v648_v9 = vpop.permute.xlu0 %647  ;;  %v8213_v25 = vld [vmem:[#allocation8_spill] sm:$0xff] }
 0x124   : > { %v797_v53 = vsel %vm781_vm2, %v764_v43, %v650_v8  ;;  %v796_v44 = vsel %vm781_vm2, %v763_v52, %v648_v9  ;;  %v739_v43 = vsel %vm715_vm0, %v8216_v18, %v8215_v22  ;;  %v8217_v52 = vld [vmem:[#allocation47_spill] sm:$0xff] }
 0x125   : > { %1354 = vrot.lane.b32.xlu1 %v8189_v51, %s5157_s21  ;;  %1352 = vrot.lane.b32.xlu0 %v8190_v45, %s5157_s21  ;;  %v8218_v8 = vld [vmem:[#allocation31_spill] sm:$0xff]  ;;  %v8220_v51 = vld [vmem:[#allocation81_spill] sm:$0xff] }
 0x126   : > { %4860 = vmatprep.mubr.msk.f32.mxu0 %vm822_vm3, %v796_v44  ;;  %v738_v9 = vsel %vm715_vm0, %v8218_v8, %v8217_v52  ;;  %v8245_v8 = vld [vmem:[#allocation16_spill] sm:$0xff] }
 0x127   : > { %4861 = vmatmul.mubr.msk.f32.gmra.mrb[14].mxu0 %vm822_vm3, %v797_v53  ;;  %v654_v63 = vpop.permute.xlu1 %653  ;;  %v652_v59 = vpop.permute.xlu0 %651  ;;  %v8219_v53 = vld [vmem:[#allocation80_spill] sm:$0xff]  ;;  %v771_v45 = vsel %vm748_vm1, %v738_v9, %v8220_v51  ;;  %v8246_v9 = vld [vmem:[#allocation17_spill] sm:$0xff] }
 0x128   : > { %v799_v12 = vsel %vm781_vm2, %v766_v47, %v654_v63  ;;  %v798_v34 = vsel %vm781_vm2, %v765_v13, %v652_v59  ;;  %v772_v44 = vsel %vm748_vm1, %v739_v43, %v8219_v53  ;;  %v8224_v47 = vld [vmem:[#allocation32_spill] sm:$0xff]  ;;  %v8225_v13 = vld [vmem:[#allocation49_spill] sm:$0xff]  ;;  %v8247_v53 = vld [vmem:[#allocation54_spill] sm:$0xff] }
 0x129   : > { %1358 = vrot.lane.b32.xlu1 %v8197_v61, %s5157_s21  ;;  %1356 = vrot.lane.b32.xlu0 %v8198_v35, %s5157_s21  ;;  %v741_v17 = vsel %vm715_vm0, %v8224_v47, %v8223_v32  ;;  %v8226_v63 = vld [vmem:[#allocation33_spill] sm:$0xff] }
 0x12a   : > { %4863 = vmatprep.mubr.msk.f32.mxu0 %vm822_vm3, %v798_v34  ;;  %v740_v59 = vsel %vm715_vm0, %v8226_v63, %v8225_v13  ;;  %v8228_v61 = vld [vmem:[#allocation85_spill] sm:$0xff]  ;;  %v4370_v63 = vld [vmem:[%s8021_s1 + $0x10] sm:$0xff] }
 0x12b   : > { %4864 = vmatmul.mubr.msk.f32.gmra.mrb[16].mxu0 %vm822_vm3, %v799_v12  ;;  %v658_v37 = vpop.permute.xlu1 %657  ;;  %v656_v54 = vpop.permute.xlu0 %655  ;;  %v8227_v12 = vld [vmem:[#allocation84_spill] sm:$0xff]  ;;  %v773_v35 = vsel %vm748_vm1, %v740_v59, %v8228_v61  ;;  %v4371_v59 = vld [vmem:[%s8021_s1 + $0x18] sm:$0xff] }
 0x12c   : > { %v801_v2 = vsel %vm781_vm2, %v768_v36, %v658_v37  ;;  %v800_v0 = vsel %vm781_vm2, %v767_v31, %v656_v54  ;;  %v774_v34 = vsel %vm748_vm1, %v741_v17, %v8227_v12  ;;  %v8232_v36 = vld [vmem:[#allocation34_spill] sm:$0xff]  ;;  %v8233_v31 = vld [vmem:[#allocation51_spill] sm:$0xff]  ;;  %v5047_v61 = vpack.c.bf16 %v4371_v59, %v4370_v63 }
 0x12d   : > { %1362 = vrot.lane.b32.xlu1 %v8205_v62, %s5157_s21  ;;  %1360 = vrot.lane.b32.xlu0 %v8206_v38, %s5157_s21  ;;  %v743_v24 = vsel %vm715_vm0, %v8232_v36, %v8231_v21  ;;  %v8234_v37 = vld [vmem:[#allocation35_spill] sm:$0xff]  ;;  %v8236_v62 = vld [vmem:[#allocation89_spill] sm:$0xff]  ;;  %v8253_v12 = vld [vmem:[#allocation18_spill] sm:$0xff] }
 0x12e   : > { %4866 = vmatprep.mubr.msk.f32.mxu0 %vm822_vm3, %v800_v0  ;;  %v742_v54 = vsel %vm715_vm0, %v8234_v37, %v8233_v31  ;;  %5048 = vmatprep.subr.bf16.mxu1 %v5047_v61  ;;  %v8258_v21 = vld [vmem:[#allocation23_spill] sm:$0xff]  ;;  %v8259_v31 = vld [vmem:[#allocation56_spill] sm:$0xff]  ;;  %v8260_v37 = vld [vmem:[#allocation57_spill] sm:$0xff] }
 0x12f   : > { %4867 = vmatmul.mubr.msk.f32.gmra.mrb[18].mxu0 %vm822_vm3, %v801_v2  ;;  %v662_v56 = vpop.permute.xlu1 %661  ;;  %v660_v60 = vpop.permute.xlu0 %659  ;;  %v8235_v2 = vld [vmem:[#allocation88_spill] sm:$0xff]  ;;  %v775_v38 = vsel %vm748_vm1, %v742_v54, %v8236_v62  ;;  %5050 = vmatpush3.bf16.msra.mxu1 %v5047_v61  ;;  %v8262_v62 = vld [vmem:[#allocation59_spill] sm:$0xff]  ;;  %v8282_v59 = vld [vmem:[#allocation90_spill] sm:$0xff] }
 0x130   : > { %v803_v6 = vsel %vm781_vm2, %v770_v40, %v662_v56  ;;  %v802_v7 = vsel %vm781_vm2, %v769_v20, %v660_v60  ;;  %v776_v0 = vsel %vm748_vm1, %v743_v24, %v8235_v2  ;;  %v8240_v40 = vld [vmem:[#allocation36_spill] sm:$0xff]  ;;  %v8241_v20 = vld [vmem:[#allocation53_spill] sm:$0xff] }
 0x131   : > { %1366 = vrot.lane.b32.xlu1 %v8213_v25, %s5157_s21  ;;  %1364 = vrot.lane.b32.xlu0 %v8214_v42, %s5157_s21  ;;  %v745_v41 = vsel %vm715_vm0, %v8240_v40, %v8239_v58  ;;  %v8242_v56 = vld [vmem:[#allocation37_spill] sm:$0xff]  ;;  %v8266_v58 = vld [vmem:[#allocation63_spill] sm:$0xff] }
 0x132   : > { %4869 = vmatprep.mubr.msk.f32.mxu0 %vm822_vm3, %v802_v7  ;;  %v744_v60 = vsel %vm715_vm0, %v8242_v56, %v8241_v20  ;;  %v8244_v25 = vld [vmem:[#allocation93_spill] sm:$0xff]  ;;  %v8267_v20 = vld [vmem:[#allocation64_spill] sm:$0xff] }
 0x133   : > { %4870 = vmatmul.mubr.msk.f32.gmra.mrb[20].mxu0 %vm822_vm3, %v803_v6  ;;  %v666_v50 = vpop.permute.xlu1 %665  ;;  %v664_v23 = vpop.permute.xlu0 %663  ;;  %v8243_v6 = vld [vmem:[#allocation92_spill] sm:$0xff]  ;;  %v777_v42 = vsel %vm748_vm1, %v744_v60, %v8244_v25  ;;  %v8268_v56 = vld [vmem:[#allocation65_spill] sm:$0xff]  ;;  %v8270_v25 = vld [vmem:[#allocation67_spill] sm:$0xff] }
 0x134   : > { %v805_v30 = vsel %vm781_vm2, %v772_v44, %v666_v50  ;;  %v804_v33 = vsel %vm781_vm2, %v771_v45, %v664_v23  ;;  %v778_v7 = vsel %vm748_vm1, %v745_v41, %v8243_v6  ;;  %v8248_v44 = vld [vmem:[#allocation38_spill] sm:$0xff]  ;;  %v8249_v45 = vld [vmem:[#allocation55_spill] sm:$0xff] }
 0x135   : > { %1370 = vrot.lane.b32.xlu1 %v8221_v16, %s5157_s21  ;;  %1368 = vrot.lane.b32.xlu0 %v8222_v46, %s5157_s21  ;;  %v747_v51 = vsel %vm715_vm0, %v8248_v44, %v8247_v53  ;;  %v8250_v50 = vld [vmem:[#allocation39_spill] sm:$0xff]  ;;  %v8252_v16 = vld [vmem:[#allocation97_spill] sm:$0xff] }
 0x136   : > { %4872 = vmatprep.mubr.msk.f32.mxu0 %vm822_vm3, %v804_v33  ;;  %v746_v23 = vsel %vm715_vm0, %v8250_v50, %v8249_v45  ;;  %v8274_v53 = vld [vmem:[#allocation75_spill] sm:$0xff]  ;;  %v8275_v45 = vld [vmem:[#allocation78_spill] sm:$0xff] }
 0x137   : > { %4873 = vmatmul.mubr.msk.f32.gmra.mrb[22].mxu0 %vm822_vm3, %v805_v30  ;;  %v670_v28 = vpop.permute.xlu1 %669  ;;  %v668_v29 = vpop.permute.xlu0 %667  ;;  %v8251_v30 = vld [vmem:[#allocation96_spill] sm:$0xff]  ;;  %v779_v46 = vsel %vm748_vm1, %v746_v23, %v8252_v16  ;;  %v8276_v50 = vld [vmem:[#allocation79_spill] sm:$0xff] }
 0x138   : > { %v807_v55 = vsel %vm781_vm2, %v774_v34, %v670_v28  ;;  %v806_v1 = vsel %vm781_vm2, %v773_v35, %v668_v29  ;;  %v780_v33 = vsel %vm748_vm1, %v747_v51, %v8251_v30  ;;  %v8254_v34 = vld [vmem:[#allocation19_spill] sm:$0xff]  ;;  %v8255_v29 = vld [vmem:[#allocation20_spill] sm:$0xff] }
 0x139   : > { %1374 = vrot.lane.b32.xlu1 %v8229_v11, %s5157_s21  ;;  %1372 = vrot.lane.b32.xlu0 %v8230_v19, %s5157_s21  ;;  %v8257_v19 = vld [vmem:[#allocation22_spill] sm:$0xff]  ;;  %v8278_v16 = vld [vmem:[#allocation83_spill] sm:$0xff] }
 0x13a   : > { %4875 = vmatprep.mubr.msk.f32.mxu0 %vm822_vm3, %v806_v1 }
 0x13b   : > { %4876 = vmatmul.mubr.msk.f32.gmra.mrb[24].mxu0 %vm822_vm3, %v807_v55  ;;  %v674_v27 = vpop.permute.xlu1 %673  ;;  %v672_v26 = vpop.permute.xlu0 %671  ;;  %v8256_v55 = vld [vmem:[#allocation21_spill] sm:$0xff] }
 0x13c   : > { %v809_v39 = vsel %vm781_vm2, %v776_v0, %v674_v27  ;;  %v808_v3 = vsel %vm781_vm2, %v775_v38, %v672_v26  ;;  %v8261_v0 = vld [vmem:[#allocation58_spill] sm:$0xff]  ;;  %v8263_v26 = vld [vmem:[#allocation60_spill] sm:$0xff] }
 0x13d   : > { %1378 = vrot.lane.b32.xlu1 %v8237_v4, %s5157_s21  ;;  %1376 = vrot.lane.b32.xlu0 %v8238_v5, %s5157_s21  ;;  %v8265_v5 = vld [vmem:[#allocation62_spill] sm:$0xff] }
 0x13e   : > { %4878 = vmatprep.mubr.msk.f32.mxu0 %vm822_vm3, %v808_v3 }
 0x13f   : > { %4879 = vmatmul.mubr.msk.f32.gmra.mrb[26].mxu0 %vm822_vm3, %v809_v39  ;;  %v678_v22 = vpop.permute.xlu1 %677  ;;  %v676_v18 = vpop.permute.xlu0 %675  ;;  %v8264_v39 = vld [vmem:[#allocation61_spill] sm:$0xff] }
 0x140   : > { %v811_v43 = vsel %vm781_vm2, %v778_v7, %v678_v22  ;;  %v810_v52 = vsel %vm781_vm2, %v777_v42, %v676_v18  ;;  %v8269_v7 = vld [vmem:[#allocation66_spill] sm:$0xff] }
 0x141   : > { %1382 = vrot.lane.b32.xlu1 %v8245_v8, %s5157_s21  ;;  %1380 = vrot.lane.b32.xlu0 %v8246_v9, %s5157_s21  ;;  %v8271_v18 = vld [vmem:[#allocation70_spill] sm:$0xff] }
 0x142   : > { %4881 = vmatprep.mubr.msk.f32.mxu0 %vm822_vm3, %v810_v52  ;;  %v8273_v9 = vld [vmem:[#allocation74_spill] sm:$0xff] }
 0x143   : > { %4882 = vmatmul.mubr.msk.f32.gmra.mrb[28].mxu0 %vm822_vm3, %v811_v43  ;;  %v682_v32 = vpop.permute.xlu1 %681  ;;  %v680_v47 = vpop.permute.xlu0 %679  ;;  %v8272_v43 = vld [vmem:[#allocation71_spill] sm:$0xff] }
 0x144   : > { %v813_v17 = vsel %vm781_vm2, %v780_v33, %v682_v32  ;;  %v812_v13 = vsel %vm781_vm2, %v779_v46, %v680_v47  ;;  %v8277_v33 = vld [vmem:[#allocation82_spill] sm:$0xff] }
 0x145   : > { %1386 = vrot.lane.b32.xlu1 %v8253_v12, %s5157_s21  ;;  %1384 = vrot.lane.b32.xlu0 %v8254_v34, %s5157_s21  ;;  %v8279_v47 = vld [vmem:[#allocation86_spill] sm:$0xff]  ;;  %v8283_v12 = vld [vmem:[#allocation91_spill] sm:$0xff] }
 0x146   : > { %4884 = vmatprep.mubr.msk.f32.mxu0 %vm822_vm3, %v812_v13 }
 0x147   : > { %4885 = vmatmul.mubr.msk.f32.gmra.mrb[30].mxu0 %vm822_vm3, %v813_v17  ;;  %v6153_v35 = vpop.permute.xlu1 %1242  ;;  %v6155_v28 = vpop.permute.xlu0 %1240  ;;  %v8280_v17 = vld [vmem:[#allocation87_spill] sm:$0xff] }
 0x149   : > { %1390 = vrot.lane.b32.xlu1 %v8255_v29, %s5157_s21  ;;  %1388 = vrot.lane.b32.xlu0 %v8256_v55, %s5157_s21  ;;  %v8286_v29 = vld [vmem:[#allocation94_spill] sm:$0xff]  ;;  %v8287_v55 = vld [vmem:[#allocation95_spill] sm:$0xff] }
 0x14b   : > { %v6161_v1 = vpop.permute.xlu1 %1246  ;;  %v6163_v11 = vpop.permute.xlu0 %1244 }
 0x14d   : > { %1394 = vrot.lane.b32.xlu1 %v8257_v19, %s5157_s21  ;;  %1392 = vrot.lane.b32.xlu0 %v8258_v21, %s5157_s21 }
 0x14f   : > { %v6169_v36 = vpop.permute.xlu1 %1250  ;;  %v6171_v24 = vpop.permute.xlu0 %1248 }
 0x151   : > { %1398 = vrot.lane.b32.xlu1 %v8259_v31, %s5157_s21  ;;  %1396 = vrot.lane.b32.xlu0 %v8260_v37, %s5157_s21 }
 0x153   : > { %v6177_v54 = vpop.permute.xlu1 %1254  ;;  %v6179_v2 = vpop.permute.xlu0 %1252 }
 0x155   : > { %1466 = vrot.lane.b32.xlu1 %v8261_v0, %s5158_s26  ;;  %1464 = vrot.lane.b32.xlu0 %v8262_v62, %s5158_s26 }
 0x157   : > { %v6185_v38 = vpop.permute.xlu1 %1258  ;;  %v6187_v27 = vpop.permute.xlu0 %1256 }
 0x159   : > { %1470 = vrot.lane.b32.xlu1 %v8263_v26, %s5158_s26  ;;  %1468 = vrot.lane.b32.xlu0 %v8264_v39, %s5158_s26  ;;  %v4368_v26 = vld [vmem:[%s5203_s19 + $0x182] sm:$0xff] }
 0x15b   : > { %v6193_v3 = vpop.permute.xlu1 %1262  ;;  %v6195_v4 = vpop.permute.xlu0 %1260 }
 0x15d   : > { %1474 = vrot.lane.b32.xlu1 %v8265_v5, %s5158_s26  ;;  %1472 = vrot.lane.b32.xlu0 %v8266_v58, %s5158_s26 }
 0x15f   : > { %v6201_v40 = vpop.permute.xlu1 %1266  ;;  %v6203_v41 = vpop.permute.xlu0 %1264 }
 0x161   : > { %1478 = vrot.lane.b32.xlu1 %v8267_v20, %s5158_s26  ;;  %1476 = vrot.lane.b32.xlu0 %v8268_v56, %s5158_s26 }
 0x163   : > { %v6209_v60 = vpop.permute.xlu1 %1270  ;;  %v6211_v6 = vpop.permute.xlu0 %1268 }
 0x165   : > { %1482 = vrot.lane.b32.xlu1 %v8269_v7, %s5158_s26  ;;  %1480 = vrot.lane.b32.xlu0 %v8270_v25, %s5158_s26 }
 0x167   : > { %v6217_v42 = vpop.permute.xlu1 %1274  ;;  %v6219_v22 = vpop.permute.xlu0 %1272 }
 0x169   : > { %1486 = vrot.lane.b32.xlu1 %v8271_v18, %s5158_s26  ;;  %1484 = vrot.lane.b32.xlu0 %v8272_v43, %s5158_s26 }
 0x16b   : > { %v6225_v52 = vpop.permute.xlu1 %1278  ;;  %v6227_v8 = vpop.permute.xlu0 %1276 }
 0x16d   : > { %1490 = vrot.lane.b32.xlu1 %v8273_v9, %s5158_s26  ;;  %1488 = vrot.lane.b32.xlu0 %v8274_v53, %s5158_s26 }
 0x16f   : > { %v6233_v44 = vpop.permute.xlu1 %1282  ;;  %v6235_v51 = vpop.permute.xlu0 %1280 }
 0x171   : > { %1494 = vrot.lane.b32.xlu1 %v8275_v45, %s5158_s26  ;;  %1492 = vrot.lane.b32.xlu0 %v8276_v50, %s5158_s26 }
 0x173   : > { %v6241_v23 = vpop.permute.xlu1 %1286  ;;  %v6243_v30 = vpop.permute.xlu0 %1284 }
 0x175   : > { %1498 = vrot.lane.b32.xlu1 %v8277_v33, %s5158_s26  ;;  %1496 = vrot.lane.b32.xlu0 %v8278_v16, %s5158_s26 }
 0x177   : > { %v6249_v46 = vpop.permute.xlu1 %1290  ;;  %v6251_v32 = vpop.permute.xlu0 %1288 }
 0x179   : > { %1502 = vrot.lane.b32.xlu1 %v8279_v47, %s5158_s26  ;;  %1500 = vrot.lane.b32.xlu0 %v8280_v17, %s5158_s26 }
 0x17b   : > { %v6257_v13 = vpop.permute.xlu1 %1294  ;;  %v6259_v63 = vpop.permute.xlu0 %1292 }
 0x17c   : > { %8281 = vst [vmem:[#allocation2_spill] sm:$0xff] %v6259_v63 }
 0x17d   : > { %1506 = vrot.lane.b32.xlu1 %v8282_v59, %s5158_s26  ;;  %1504 = vrot.lane.b32.xlu0 %v8283_v12, %s5158_s26 }
 0x17f   : > { %v6265_v34 = vpop.permute.xlu1 %1298  ;;  %v6267_v61 = vpop.permute.xlu0 %1296 }
 0x180   : > { %8284 = vst [vmem:[#allocation3_spill] sm:$0xff] %v6265_v34  ;;  %8285 = vst [vmem:[#allocation40_spill] sm:$0xff] %v6267_v61  ;;  %v5088_v61 = vld [vmem:[%s5203_s19 + $0x1] sm:$0xff] }
 0x181   : > { %1510 = vrot.lane.b32.xlu1 %v8286_v29, %s5158_s26  ;;  %1508 = vrot.lane.b32.xlu0 %v8287_v55, %s5158_s26  ;;  %v1560_v34 = vsel %vm715_vm0, %v5088_v61, %v6155_v28 }
 0x183   : > { %v6273_v19 = vpop.permute.xlu1 %1302  ;;  %v6275_v21 = vpop.permute.xlu0 %1300 }
 0x184   : > { %8288 = vst [vmem:[#allocation24_spill] sm:$0xff] %v6273_v19  ;;  %8289 = vst [vmem:[#allocation41_spill] sm:$0xff] %v6275_v21  ;;  %v5087_v21 = vld [vmem:[%s5203_s19 + $0x9] sm:$0xff] }
 0x185   : > { %1514 = vrot.lane.b32.xlu1 %v5848_v14, %s5158_s26  ;;  %1512 = vrot.lane.b32.xlu0 %v5851_v48, %s5158_s26  ;;  %v4369_v14 = vld [vmem:[%s5203_s19 + $0x18a] sm:$0xff]  ;;  %v1561_v19 = vsel %vm715_vm0, %v5087_v21, %v6153_v35  ;;  %v5090_v21 = vld [vmem:[%s5203_s19 + $0x19] sm:$0xff] }
 0x186   : > { %v1562_v28 = vsel %vm715_vm0, %v5090_v21, %v6163_v11 }
 0x187   : > { %v1339_v31 = vpop.permute.xlu1 %1338  ;;  %v1337_v37 = vpop.permute.xlu0 %1336 }
 0x189   : > { %1518 = vrot.lane.b32.xlu1 %v5871_v15, %s5158_s26  ;;  %1516 = vrot.lane.b32.xlu0 %v5874_v10, %s5158_s26 }
 0x18b   : > { %v1343_v0 = vpop.permute.xlu1 %1342  ;;  %v1341_v62 = vpop.permute.xlu0 %1340 }
 0x18c   : > { %v1594_v61 = vsel %vm748_vm1, %v1562_v28, %v1341_v62 }
 0x18d   : > { %1522 = vrot.lane.b32.xlu1 %v5895_v49, %s5158_s26  ;;  %1520 = vrot.lane.b32.xlu0 %v5898_v57, %s5158_s26 }
 0x18f   : > { %v1347_v39 = vpop.permute.xlu1 %1346  ;;  %v1345_v48 = vpop.permute.xlu0 %1344 }
 0x191   : > { %1526 = vrot.lane.b32.xlu1 %v4369_v14, %s5158_s26  ;;  %1524 = vrot.lane.b32.xlu0 %v4368_v26, %s5158_s26 }
 0x193   : > { %v6293_v15 = vpop.permute.xlu1 %1350  ;;  %v6295_v5 = vpop.permute.xlu0 %1348 }
 0x197   : > { %v6297_v10 = vpop.permute.xlu1 %1354  ;;  %v6299_v58 = vpop.permute.xlu0 %1352 }
 0x19b   : > { %v6301_v49 = vpop.permute.xlu1 %1358  ;;  %v6303_v20 = vpop.permute.xlu0 %1356 }
 0x19f   : > { %v6305_v57 = vpop.permute.xlu1 %1362  ;;  %v6307_v56 = vpop.permute.xlu0 %1360 }
 0x1a3   : > { %v6309_v7 = vpop.permute.xlu1 %1366  ;;  %v6311_v25 = vpop.permute.xlu0 %1364 }
 0x1a7   : > { %v6313_v18 = vpop.permute.xlu1 %1370  ;;  %v6315_v43 = vpop.permute.xlu0 %1368 }
 0x1ab   : > { %v6317_v9 = vpop.permute.xlu1 %1374  ;;  %v6319_v53 = vpop.permute.xlu0 %1372 }
 0x1af   : > { %v6321_v45 = vpop.permute.xlu1 %1378  ;;  %v6323_v50 = vpop.permute.xlu0 %1376 }
 0x1b3   : > { %v6325_v33 = vpop.permute.xlu1 %1382  ;;  %v6327_v16 = vpop.permute.xlu0 %1380 }
 0x1b7   : > { %v6329_v47 = vpop.permute.xlu1 %1386  ;;  %v6331_v17 = vpop.permute.xlu0 %1384 }
 0x1bb   : > { %v6333_v59 = vpop.permute.xlu1 %1390  ;;  %v6335_v12 = vpop.permute.xlu0 %1388 }
 0x1bc   : > { %8290 = vst [vmem:[#allocation25_spill] sm:$0xff] %v6333_v59  ;;  %8291 = vst [vmem:[#allocation68_spill] sm:$0xff] %v6335_v12  ;;  %v1593_v12 = vsel %vm748_vm1, %v1561_v19, %v1339_v31  ;;  %v1592_v59 = vsel %vm748_vm1, %v1560_v34, %v1337_v37 }
 0x1bf   : > { %v6337_v29 = vpop.permute.xlu1 %1394  ;;  %v6339_v55 = vpop.permute.xlu0 %1392 }
 0x1c0   : > { %8292 = vst [vmem:[#allocation69_spill] sm:$0xff] %v6337_v29  ;;  %8293 = vst [vmem:[#allocation4_spill] sm:$0xff] %v6339_v55 }
 0x1c3   : > { %v6341_v14 = vpop.permute.xlu1 %1398  ;;  %v6343_v26 = vpop.permute.xlu0 %1396 }
 0x1c4   : > { %8294 = vst [vmem:[#allocation5_spill] sm:$0xff] %v6341_v14  ;;  %8295 = vst [vmem:[#allocation42_spill] sm:$0xff] %v6343_v26  ;;  %v5089_v26 = vld [vmem:[%s5203_s19 + $0x21] sm:$0xff] }
 0x1c5   : > { %v1563_v35 = vsel %vm715_vm0, %v5089_v26, %v6161_v1  ;;  %v5091_v1 = vld [vmem:[%s5203_s19 + $0x39] sm:$0xff] }
 0x1c6   : > { %v1595_v34 = vsel %vm748_vm1, %v1563_v35, %v1343_v0  ;;  %v1565_v11 = vsel %vm715_vm0, %v5091_v1, %v6169_v36  ;;  %v5093_v36 = vld [vmem:[%s5203_s19 + $0x51] sm:$0xff]  ;;  %v5094_v35 = vld [vmem:[%s5203_s19 + $0x49] sm:$0xff] }
 0x1c7   : > { %v1467_v29 = vpop.permute.xlu1 %1466  ;;  %v1465_v63 = vpop.permute.xlu0 %1464  ;;  %v1597_v62 = vsel %vm748_vm1, %v1565_v11, %v1347_v39  ;;  %v1566_v39 = vsel %vm715_vm0, %v5094_v35, %v6179_v2 }
 0x1c8   : > { %v1625_v55 = vsel %vm781_vm2, %v1593_v12, %v1467_v29  ;;  %v1624_v14 = vsel %vm781_vm2, %v1592_v59, %v1465_v63  ;;  %v5092_v59 = vld [vmem:[%s5203_s19 + $0x31] sm:$0xff]  ;;  %v1598_v21 = vsel %vm748_vm1, %v1566_v39, %v6295_v5 }
 0x1c9   : > { %4891 = vmatprep.mubr.msk.f32.mxu1 %vm822_vm3, %v1624_v14  ;;  %v1564_v0 = vsel %vm715_vm0, %v5092_v59, %v6171_v24  ;;  %v1567_v24 = vsel %vm715_vm0, %v5093_v36, %v6177_v54  ;;  %v5095_v54 = vld [vmem:[%s5203_s19 + $0x69] sm:$0xff] }
 0x1ca   : > { %4892 = vmatmul.mubr.msk.f32.vlgmr.msra.gmra.mrb[0].mxu1 %vm822_vm3, %v1625_v55  ;;  %v1596_v12 = vsel %vm748_vm1, %v1564_v0, %v1345_v48  ;;  %v1599_v48 = vsel %vm748_vm1, %v1567_v24, %v6293_v15  ;;  %v1569_v2 = vsel %vm715_vm0, %v5095_v54, %v6185_v38  ;;  %v5097_v38 = vld [vmem:[%s5203_s19 + $0x81] sm:$0xff]  ;;  %v5098_v0 = vld [vmem:[%s5203_s19 + $0x79] sm:$0xff] }
 0x1cb   : > { %v1471_v19 = vpop.permute.xlu1 %1470  ;;  %v1469_v31 = vpop.permute.xlu0 %1468  ;;  %v1601_v5 = vsel %vm748_vm1, %v1569_v2, %v6297_v10  ;;  %v1570_v10 = vsel %vm715_vm0, %v5098_v0, %v6195_v4  ;;  %v5105_v0 = vld [vmem:[%s5203_s19 + $0xe1] sm:$0xff] }
 0x1cc   : > { %v1627_v63 = vsel %vm781_vm2, %v1595_v34, %v1471_v19  ;;  %v1626_v37 = vsel %vm781_vm2, %v1594_v61, %v1469_v31  ;;  %v5096_v31 = vld [vmem:[%s5203_s19 + $0x61] sm:$0xff] }
 0x1cd   : > { %4894 = vmatprep.mubr.msk.f32.mxu1 %vm822_vm3, %v1626_v37  ;;  %v1568_v15 = vsel %vm715_vm0, %v5096_v31, %v6187_v27  ;;  %v1571_v27 = vsel %vm715_vm0, %v5097_v38, %v6193_v3  ;;  %v5099_v3 = vld [vmem:[%s5203_s19 + $0x99] sm:$0xff] }
 0x1ce   : > { %4895 = vmatmul.mubr.msk.f32.gmra.mrb[2].mxu1 %vm822_vm3, %v1627_v63  ;;  %v1600_v63 = vsel %vm748_vm1, %v1568_v15, %v6299_v58  ;;  %v1603_v58 = vsel %vm748_vm1, %v1571_v27, %v6301_v49  ;;  %v1573_v4 = vsel %vm715_vm0, %v5099_v3, %v6201_v40  ;;  %v5100_v49 = vld [vmem:[%s5203_s19 + $0x91] sm:$0xff]  ;;  %v5107_v3 = vld [vmem:[%s5203_s19 + $0xf9] sm:$0xff] }
 0x1cf   : > { %v1475_v29 = vpop.permute.xlu1 %1474  ;;  %v1473_v55 = vpop.permute.xlu0 %1472  ;;  %v1605_v36 = vsel %vm748_vm1, %v1573_v4, %v6305_v57  ;;  %v5102_v57 = vld [vmem:[%s5203_s19 + $0xa9] sm:$0xff] }
 0x1d0   : > { %v1629_v14 = vsel %vm781_vm2, %v1597_v62, %v1475_v29  ;;  %v1628_v26 = vsel %vm781_vm2, %v1596_v12, %v1473_v55  ;;  %v1602_v62 = vsel %vm748_vm1, %v1570_v10, %v6303_v20  ;;  %v1572_v20 = vsel %vm715_vm0, %v5100_v49, %v6203_v41 }
 0x1d1   : > { %4897 = vmatprep.mubr.msk.f32.mxu1 %vm822_vm3, %v1628_v26  ;;  %v1604_v39 = vsel %vm748_vm1, %v1572_v20, %v6307_v56 }
 0x1d2   : > { %4898 = vmatmul.mubr.msk.f32.gmra.mrb[4].mxu1 %vm822_vm3, %v1629_v14 }
 0x1d3   : > { %v1479_v28 = vpop.permute.xlu1 %1478  ;;  %v1477_v34 = vpop.permute.xlu0 %1476 }
 0x1d4   : > { %v1631_v61 = vsel %vm781_vm2, %v1599_v48, %v1479_v28  ;;  %v1630_v19 = vsel %vm781_vm2, %v1598_v21, %v1477_v34  ;;  %v5101_v28 = vld [vmem:[%s5203_s19 + $0xb1] sm:$0xff] }
 0x1d5   : > { %4900 = vmatprep.mubr.msk.f32.mxu1 %vm822_vm3, %v1630_v19  ;;  %v1575_v34 = vsel %vm715_vm0, %v5101_v28, %v6209_v60 }
 0x1d6   : > { %4901 = vmatmul.mubr.msk.f32.gmra.mrb[6].mxu1 %vm822_vm3, %v1631_v61  ;;  %v1574_v61 = vsel %vm715_vm0, %v5102_v57, %v6211_v6  ;;  %v1607_v56 = vsel %vm748_vm1, %v1575_v34, %v6309_v7  ;;  %v5104_v7 = vld [vmem:[%s5203_s19 + $0xc1] sm:$0xff] }
 0x1d7   : > { %v1483_v37 = vpop.permute.xlu1 %1482  ;;  %v1481_v1 = vpop.permute.xlu0 %1480  ;;  %v1606_v60 = vsel %vm748_vm1, %v1574_v61, %v6311_v25 }
 0x1d8   : > { %v1633_v11 = vsel %vm781_vm2, %v1601_v5, %v1483_v37  ;;  %v1632_v59 = vsel %vm781_vm2, %v1600_v63, %v1481_v1  ;;  %v5103_v5 = vld [vmem:[%s5203_s19 + $0xc9] sm:$0xff]  ;;  %v1576_v37 = vsel %vm715_vm0, %v5104_v7, %v6219_v22  ;;  %v1579_v22 = vsel %vm715_vm0, %v5105_v0, %v6225_v52 }
 0x1d9   : > { %4903 = vmatprep.mubr.msk.f32.mxu1 %vm822_vm3, %v1632_v59  ;;  %v1577_v6 = vsel %vm715_vm0, %v5103_v5, %v6217_v42  ;;  %v1608_v42 = vsel %vm748_vm1, %v1576_v37, %v6315_v43  ;;  %v1611_v43 = vsel %vm748_vm1, %v1579_v22, %v6317_v9  ;;  %v5108_v9 = vld [vmem:[%s5203_s19 + $0xf1] sm:$0xff] }
 0x1da   : > { %4904 = vmatmul.mubr.msk.f32.gmra.mrb[8].mxu1 %vm822_vm3, %v1633_v11  ;;  %v1609_v25 = vsel %vm748_vm1, %v1577_v6, %v6313_v18  ;;  %v5106_v18 = vld [vmem:[%s5203_s19 + $0xd9] sm:$0xff]  ;;  %v1580_v49 = vsel %vm715_vm0, %v5108_v9, %v6235_v51  ;;  %v8298_v22 = vld [vmem:[#allocation68_spill] sm:$0xff] }
 0x1db   : > { %v1487_v12 = vpop.permute.xlu1 %1486  ;;  %v1485_v29 = vpop.permute.xlu0 %1484  ;;  %v8301_v9 = vld [vmem:[#allocation69_spill] sm:$0xff] }
 0x1dc   : > { %v1635_v55 = vsel %vm781_vm2, %v1603_v58, %v1487_v12  ;;  %v1634_v14 = vsel %vm781_vm2, %v1602_v62, %v1485_v29  ;;  %v1578_v58 = vsel %vm715_vm0, %v5106_v18, %v6227_v8  ;;  %v1581_v8 = vsel %vm715_vm0, %v5107_v3, %v6233_v44  ;;  %v8300_v3 = vld [vmem:[#allocation40_spill] sm:$0xff] }
 0x1dd   : > { %4906 = vmatprep.mubr.msk.f32.mxu1 %vm822_vm3, %v1634_v14  ;;  %v1610_v52 = vsel %vm748_vm1, %v1578_v58, %v6319_v53  ;;  %v1613_v53 = vsel %vm748_vm1, %v1581_v8, %v6321_v45  ;;  %v1612_v44 = vsel %vm748_vm1, %v1580_v49, %v6323_v50  ;;  %v5110_v45 = vld [vmem:[%s5203_s19 + $0x109] sm:$0xff] }
 0x1de   : > { %v6425_v26 = vpop.f32.mrb[0].mxu0  ;;  %4907 = vmatmul.mubr.msk.f32.gmra.mrb[10].mxu1 %vm822_vm3, %v1635_v55  ;;  %v1582_v28 = vsel %vm715_vm0, %v5110_v45, %v6243_v30  ;;  %v8303_v45 = vld [vmem:[#allocation24_spill] sm:$0xff] }
 0x1df   : > { %v6433_v24 = vpop.f32.mrb[1].mxu0  ;;  %v1491_v35 = vpop.permute.xlu1 %1490 }
 0x1e0   : > { %v1637_v40 = vsel %vm781_vm2, %v1605_v36, %v1491_v35  ;;  %v1489_v48 = vpop.permute.xlu0 %1488 }
 0x1e1   : > { %v1636_v21 = vsel %vm781_vm2, %v1604_v39, %v1489_v48  ;;  %v5109_v48 = vld [vmem:[%s5203_s19 + $0x111] sm:$0xff] }
 0x1e2   : > { %v6442_v41 = vpop.f32.mrb[2].mxu0  ;;  %4909 = vmatprep.mubr.msk.f32.mxu1 %vm822_vm3, %v1636_v21  ;;  %v1583_v51 = vsel %vm715_vm0, %v5109_v48, %v6241_v23  ;;  %v1614_v23 = vsel %vm748_vm1, %v1582_v28, %v6327_v16 }
 0x1e3   : > { %v6450_v19 = vpop.f32.mrb[3].mxu0  ;;  %4910 = vmatmul.mubr.msk.f32.gmra.mrb[12].mxu1 %vm822_vm3, %v1637_v40  ;;  %v1495_v54 = vpop.permute.xlu1 %1494  ;;  %v1615_v50 = vsel %vm748_vm1, %v1583_v51, %v6325_v33  ;;  %v5112_v33 = vld [vmem:[%s5203_s19 + $0x121] sm:$0xff]  ;;  %v5117_v51 = vld [vmem:[%s5203_s19 + $0x171] sm:$0xff] }
 0x1e4   : > { %v1639_v2 = vsel %vm781_vm2, %v1607_v56, %v1495_v54  ;;  %v1493_v31 = vpop.permute.xlu0 %1492  ;;  %v1591_v28 = vsel %vm715_vm0, %v5117_v51, %v8303_v45 }
 0x1e5   : > { %v1638_v15 = vsel %vm781_vm2, %v1606_v60, %v1493_v31  ;;  %v5111_v60 = vld [vmem:[%s5203_s19 + $0x129] sm:$0xff]  ;;  %v1584_v31 = vsel %vm715_vm0, %v5112_v33, %v6251_v32  ;;  %v8306_v33 = vld [vmem:[#allocation42_spill] sm:$0xff] }
 0x1e6   : > { %v6460_v63 = vpop.f32.mrb[4].mxu0  ;;  %4912 = vmatprep.mubr.msk.f32.mxu1 %vm822_vm3, %v1638_v15  ;;  %v1585_v30 = vsel %vm715_vm0, %v5111_v60, %v6249_v46  ;;  %v1616_v46 = vsel %vm748_vm1, %v1584_v31, %v6331_v17  ;;  %v8297_v17 = vld [vmem:[#allocation25_spill] sm:$0xff] }
 0x1e7   : > { %v6468_v1 = vpop.f32.mrb[5].mxu0  ;;  %4913 = vmatmul.mubr.msk.f32.gmra.mrb[14].mxu1 %vm822_vm3, %v1639_v2  ;;  %v1499_v11 = vpop.permute.xlu1 %1498  ;;  %v1617_v16 = vsel %vm748_vm1, %v1585_v30, %v6329_v47  ;;  %v5114_v47 = vld [vmem:[%s5203_s19 + $0x139] sm:$0xff] }
 0x1e8   : > { %v1641_v59 = vsel %vm781_vm2, %v1609_v25, %v1499_v11  ;;  %v1497_v38 = vpop.permute.xlu0 %1496  ;;  %v5113_v25 = vld [vmem:[%s5203_s19 + $0x141] sm:$0xff] }
 0x1e9   : > { %v1640_v27 = vsel %vm781_vm2, %v1608_v42, %v1497_v38  ;;  %v1587_v32 = vsel %vm715_vm0, %v5113_v25, %v6257_v13  ;;  %v8296_v42 = vld [vmem:[#allocation2_spill] sm:$0xff] }
 0x1ea   : > { %v6478_v10 = vpop.f32.mrb[6].mxu0  ;;  %4915 = vmatprep.mubr.msk.f32.mxu1 %vm822_vm3, %v1640_v27  ;;  %v1619_v38 = vsel %vm748_vm1, %v1587_v32, %v8297_v17 }
 0x1eb   : > { %v6486_v62 = vpop.f32.mrb[7].mxu0  ;;  %4916 = vmatmul.mubr.msk.f32.gmra.mrb[16].mxu1 %vm822_vm3, %v1641_v59  ;;  %v1503_v12 = vpop.permute.xlu1 %1502  ;;  %v1586_v59 = vsel %vm715_vm0, %v5114_v47, %v8296_v42 }
 0x1ec   : > { %v1643_v29 = vsel %vm781_vm2, %v1611_v43, %v1503_v12  ;;  %v1501_v55 = vpop.permute.xlu0 %1500  ;;  %v1618_v13 = vsel %vm748_vm1, %v1586_v59, %v8298_v22  ;;  %v5115_v12 = vld [vmem:[%s5203_s19 + $0x159] sm:$0xff] }
 0x1ed   : > { %v1642_v14 = vsel %vm781_vm2, %v1610_v52, %v1501_v55  ;;  %v8299_v52 = vld [vmem:[#allocation3_spill] sm:$0xff] }
 0x1ee   : > { %v6496_v4 = vpop.f32.mrb[8].mxu0  ;;  %4918 = vmatprep.mubr.msk.f32.mxu1 %vm822_vm3, %v1642_v14  ;;  %v5116_v14 = vld [vmem:[%s5203_s19 + $0x151] sm:$0xff] }
 0x1ef   : > { %v6504_v20 = vpop.f32.mrb[9].mxu0  ;;  %4919 = vmatmul.mubr.msk.f32.gmra.mrb[18].mxu1 %vm822_vm3, %v1643_v29  ;;  %v1507_v36 = vpop.permute.xlu1 %1506  ;;  %v1589_v29 = vsel %vm715_vm0, %v5115_v12, %v8299_v52  ;;  %v1588_v8 = vsel %vm715_vm0, %v5116_v14, %v8300_v3 }
 0x1f0   : > { %v1645_v35 = vsel %vm781_vm2, %v1613_v53, %v1507_v36  ;;  %v1505_v39 = vpop.permute.xlu0 %1504  ;;  %v1621_v49 = vsel %vm748_vm1, %v1589_v29, %v8301_v9 }
 0x1f1   : > { %v1644_v40 = vsel %vm781_vm2, %v1612_v44, %v1505_v39  ;;  %v8302_v44 = vld [vmem:[#allocation4_spill] sm:$0xff] }
 0x1f2   : > { %v6514_v21 = vpop.f32.mrb[10].mxu0  ;;  %4921 = vmatprep.mubr.msk.f32.mxu1 %vm822_vm3, %v1644_v40 }
 0x1f3   : > { %v6522_v34 = vpop.f32.mrb[11].mxu0  ;;  %4922 = vmatmul.mubr.msk.f32.gmra.mrb[20].mxu1 %vm822_vm3, %v1645_v35  ;;  %v1511_v57 = vpop.permute.xlu1 %1510  ;;  %v1620_v35 = vsel %vm748_vm1, %v1588_v8, %v8302_v44 }
 0x1f4   : > { %v1647_v61 = vsel %vm781_vm2, %v1615_v50, %v1511_v57  ;;  %v1509_v56 = vpop.permute.xlu0 %1508  ;;  %v5118_v57 = vld [vmem:[%s5203_s19 + $0x169] sm:$0xff] }
 0x1f5   : > { %v1646_v54 = vsel %vm781_vm2, %v1614_v23, %v1509_v56  ;;  %v8304_v23 = vld [vmem:[#allocation41_spill] sm:$0xff] }
 0x1f6   : > { %v6532_v2 = vpop.f32.mrb[12].mxu0  ;;  %4924 = vmatprep.mubr.msk.f32.mxu1 %vm822_vm3, %v1646_v54  ;;  %v8305_v56 = vld [vmem:[#allocation5_spill] sm:$0xff] }
 0x1f7   : > { %v6540_v15 = vpop.f32.mrb[13].mxu0  ;;  %4925 = vmatmul.mubr.msk.f32.gmra.mrb[22].mxu1 %vm822_vm3, %v1647_v61  ;;  %v1515_v5 = vpop.permute.xlu1 %1514  ;;  %v1590_v61 = vsel %vm715_vm0, %v5118_v57, %v8304_v23  ;;  %v1623_v54 = vsel %vm748_vm1, %v1591_v28, %v8305_v56 }
 0x1f8   : > { %v1649_v6 = vsel %vm781_vm2, %v1617_v16, %v1515_v5  ;;  %v1513_v7 = vpop.permute.xlu0 %1512  ;;  %v1622_v31 = vsel %vm748_vm1, %v1590_v61, %v8306_v33 }
 0x1f9   : > { %v1648_v37 = vsel %vm781_vm2, %v1616_v46, %v1513_v7 }
 0x1fa   : > { %v6550_v11 = vpop.f32.mrb[14].mxu0  ;;  %4927 = vmatprep.mubr.msk.f32.mxu1 %vm822_vm3, %v1648_v37 }
 0x1fb   : > { %v6558_v27 = vpop.f32.mrb[15].mxu0  ;;  %4928 = vmatmul.mubr.msk.f32.gmra.mrb[24].mxu1 %vm822_vm3, %v1649_v6  ;;  %v1519_v0 = vpop.permute.xlu1 %1518 }
 0x1fc   : > { %v1651_v18 = vsel %vm781_vm2, %v1619_v38, %v1519_v0  ;;  %v1517_v58 = vpop.permute.xlu0 %1516 }
 0x1fd   : > { %v1650_v43 = vsel %vm781_vm2, %v1618_v13, %v1517_v58  ;;  %v6630_v13 = vld [vmem:[%s8022_s2] ss:$0 sm:$0xff] }
 0x1fe   : > { %v6568_v55 = vpop.f32.mrb[16].mxu0  ;;  %4930 = vmatprep.mubr.msk.f32.mxu1 %vm822_vm3, %v1650_v43 }
 0x1ff   : > { %v6576_v53 = vpop.f32.mrb[17].mxu0  ;;  %4931 = vmatmul.mubr.msk.f32.gmra.mrb[26].mxu1 %vm822_vm3, %v1651_v18  ;;  %v1523_v36 = vpop.permute.xlu1 %1522 }
 0x200   : > { %v1653_v39 = vsel %vm781_vm2, %v1621_v49, %v1523_v36  ;;  %v1521_v40 = vpop.permute.xlu0 %1520 }
 0x201   : > { %v1652_v48 = vsel %vm781_vm2, %v1620_v35, %v1521_v40 }
 0x202   : > { %v6586_v50 = vpop.f32.mrb[18].mxu0  ;;  %4933 = vmatprep.mubr.msk.f32.mxu1 %vm822_vm3, %v1652_v48 }
 0x203   : > { %v6594_v60 = vpop.f32.mrb[19].mxu0  ;;  %4934 = vmatmul.mubr.msk.f32.gmra.mrb[28].mxu1 %vm822_vm3, %v1653_v39  ;;  %v1527_v30 = vpop.permute.xlu1 %1526 }
 0x204   : > { %v1655_v16 = vsel %vm781_vm2, %v1623_v54, %v1527_v30  ;;  %v1525_v5 = vpop.permute.xlu0 %1524 }
 0x205   : > { %v1654_v46 = vsel %vm781_vm2, %v1622_v31, %v1525_v5 }
 0x206   : > { %v6601_v6 = vpop.f32.mrb[20].mxu0  ;;  %4936 = vmatprep.mubr.msk.f32.mxu1 %vm822_vm3, %v1654_v46 }
 0x207   : > { %v6604_v7 = vpop.f32.mrb[21].mxu0  ;;  %4937 = vmatmul.mubr.msk.f32.gmra.mrb[30].mxu1 %vm822_vm3, %v1655_v16 }
 0x20a   : > { %v6607_v37 = vpop.f32.mrb[22].mxu0 }
 0x20b   : > { %v6609_v25 = vpop.f32.mrb[23].mxu0 }
 0x20e   : > { %v6611_v32 = vpop.f32.mrb[24].mxu0 }
 0x20f   : > { %v6613_v47 = vpop.f32.mrb[25].mxu0 }
 0x212   : > { %v6615_v42 = vpop.f32.mrb[26].mxu0 }
 0x213   : > { %v6617_v59 = vpop.f32.mrb[27].mxu0 }
 0x216   : > { %v6619_v17 = vpop.f32.mrb[28].mxu0 }
 0x217   : > { %v6621_v38 = vpop.f32.mrb[29].mxu0 }
 0x21a   : > { %v6623_v0 = vpop.f32.mrb[30].mxu0 }
 0x21b   : > { %v6625_v22 = vpop.f32.mrb[31].mxu0 }
 0x29d   : > { %v4893_v18 = vpop.f32.mrb[0].mxu1 }
 0x29e   : > { %v1827_v58 = vadd.f32 %v4893_v18, %v6630_v13  ;;  %v1821_v43 = vpop.f32.mrb[1].mxu1 }
 0x29f   : > { %v1822_v12 = vadd.f32 %v6630_v13, %v1821_v43 }
 0x2a0   : > { %2014 = vrot.lane.b32.xlu1 %v1827_v58, %s5156_s20 }
 0x2a1   : > { %2012 = vrot.lane.b32.xlu0 %v1822_v12, %s5156_s20  ;;  %v4896_v52 = vpop.f32.mrb[2].mxu1 }
 0x2a2   : > { %v1837_v29 = vadd.f32 %v4896_v52, %v6630_v13  ;;  %v1831_v14 = vpop.f32.mrb[3].mxu1 }
 0x2a3   : > { %v1832_v3 = vadd.f32 %v6630_v13, %v1831_v14 }
 0x2a4   : > { %2018 = vrot.lane.b32.xlu1 %v1837_v29, %s5156_s20 }
 0x2a5   : > { %2016 = vrot.lane.b32.xlu0 %v1832_v3, %s5156_s20  ;;  %v4899_v8 = vpop.f32.mrb[4].mxu1 }
 0x2a6   : > { %v1847_v9 = vadd.f32 %v4899_v8, %v6630_v13  ;;  %v1841_v49 = vpop.f32.mrb[5].mxu1 }
 0x2a7   : > { %v1842_v36 = vadd.f32 %v6630_v13, %v1841_v49 }
 0x2a8   : > { %2022 = vrot.lane.b32.xlu1 %v1847_v9, %s5156_s20 }
 0x2a9   : > { %2020 = vrot.lane.b32.xlu0 %v1842_v36, %s5156_s20  ;;  %v4902_v44 = vpop.f32.mrb[6].mxu1 }
 0x2aa   : > { %v1857_v35 = vadd.f32 %v4902_v44, %v6630_v13  ;;  %v1851_v39 = vpop.f32.mrb[7].mxu1 }
 0x2ab   : > { %v1852_v40 = vadd.f32 %v6630_v13, %v1851_v39 }
 0x2ac   : > { %2026 = vrot.lane.b32.xlu1 %v1857_v35, %s5156_s20 }
 0x2ad   : > { %2024 = vrot.lane.b32.xlu0 %v1852_v40, %s5156_s20  ;;  %v4905_v48 = vpop.f32.mrb[8].mxu1 }
 0x2ae   : > { %v1867_v51 = vadd.f32 %v4905_v48, %v6630_v13  ;;  %v1861_v45 = vpop.f32.mrb[9].mxu1 }
 0x2af   : > { %v1862_v28 = vadd.f32 %v6630_v13, %v1861_v45 }
 0x2b0   : > { %2030 = vrot.lane.b32.xlu1 %v1867_v51, %s5156_s20 }
 0x2b1   : > { %2028 = vrot.lane.b32.xlu0 %v1862_v28, %s5156_s20  ;;  %v4908_v57 = vpop.f32.mrb[10].mxu1 }
 0x2b2   : > { %v1877_v23 = vadd.f32 %v4908_v57, %v6630_v13  ;;  %v1871_v61 = vpop.f32.mrb[11].mxu1 }
 0x2b3   : > { %v1872_v56 = vadd.f32 %v6630_v13, %v1871_v61 }
 0x2b4   : > { %2034 = vrot.lane.b32.xlu1 %v1877_v23, %s5156_s20 }
 0x2b5   : > { %2032 = vrot.lane.b32.xlu0 %v1872_v56, %s5156_s20 }
 0x2b6   : > { %v4911_v54 = vpop.f32.mrb[12].mxu1 }
 0x2b7   : > { %v1887_v30 = vadd.f32 %v4911_v54, %v6630_v13  ;;  %v1881_v33 = vpop.f32.mrb[13].mxu1 }
 0x2b8   : > { %v1882_v31 = vadd.f32 %v6630_v13, %v1881_v33 }
 0x2b9   : > { %2038 = vrot.lane.b32.xlu1 %v1887_v30, %s5156_s20 }
 0x2ba   : > { %2036 = vrot.lane.b32.xlu0 %v1882_v31, %s5156_s20  ;;  %v4914_v16 = vpop.f32.mrb[14].mxu1 }
 0x2bb   : > { %v1897_v5 = vadd.f32 %v4914_v16, %v6630_v13  ;;  %v1891_v46 = vpop.f32.mrb[15].mxu1 }
 0x2bc   : > { %v1892_v18 = vadd.f32 %v6630_v13, %v1891_v46 }
 0x2bd   : > { %2042 = vrot.lane.b32.xlu1 %v1897_v5, %s5156_s20 }
 0x2be   : > { %2040 = vrot.lane.b32.xlu0 %v1892_v18, %s5156_s20  ;;  %v4917_v58 = vpop.f32.mrb[16].mxu1 }
 0x2bf   : > { %v1907_v43 = vadd.f32 %v4917_v58, %v6630_v13  ;;  %v1901_v12 = vpop.f32.mrb[17].mxu1 }
 0x2c0   : > { %v1902_v52 = vadd.f32 %v6630_v13, %v1901_v12  ;;  %v6700_v12 = vld [vmem:[%s5203_s19 + $0x19] sm:$0xff] }
 0x2c1   : > { %2046 = vrot.lane.b32.xlu1 %v1907_v43, %s5156_s20  ;;  %v6697_v43 = vld [vmem:[%s5203_s19 + $0x21] sm:$0xff] }
 0x2c2   : > { %2044 = vrot.lane.b32.xlu0 %v1902_v52, %s5156_s20  ;;  %v4920_v29 = vpop.f32.mrb[18].mxu1  ;;  %v6707_v52 = vld [vmem:[%s5203_s19 + $0x39] sm:$0xff] }
 0x2c3   : > { %v1917_v14 = vadd.f32 %v4920_v29, %v6630_v13  ;;  %v1911_v3 = vpop.f32.mrb[19].mxu1  ;;  %v6710_v29 = vld [vmem:[%s5203_s19 + $0x31] sm:$0xff] }
 0x2c4   : > { %v1912_v8 = vadd.f32 %v6630_v13, %v1911_v3  ;;  %v6720_v3 = vld [vmem:[%s5203_s19 + $0x49] sm:$0xff] }
 0x2c5   : > { %2050 = vrot.lane.b32.xlu1 %v1917_v14, %s5156_s20  ;;  %v6717_v14 = vld [vmem:[%s5203_s19 + $0x51] sm:$0xff] }
 0x2c6   : > { %2048 = vrot.lane.b32.xlu0 %v1912_v8, %s5156_s20  ;;  %v4923_v9 = vpop.f32.mrb[20].mxu1  ;;  %v6727_v8 = vld [vmem:[%s5203_s19 + $0x69] sm:$0xff] }
 0x2c7   : > { %v1927_v49 = vadd.f32 %v4923_v9, %v6630_v13  ;;  %v1921_v36 = vpop.f32.mrb[21].mxu1  ;;  %v6730_v9 = vld [vmem:[%s5203_s19 + $0x61] sm:$0xff] }
 0x2c8   : > { %v1922_v44 = vadd.f32 %v6630_v13, %v1921_v36  ;;  %v6740_v36 = vld [vmem:[%s5203_s19 + $0x79] sm:$0xff] }
 0x2c9   : > { %2054 = vrot.lane.b32.xlu1 %v1927_v49, %s5156_s20  ;;  %v6737_v49 = vld [vmem:[%s5203_s19 + $0x81] sm:$0xff] }
 0x2ca   : > { %2052 = vrot.lane.b32.xlu0 %v1922_v44, %s5156_s20  ;;  %v4926_v35 = vpop.f32.mrb[22].mxu1  ;;  %v6747_v44 = vld [vmem:[%s5203_s19 + $0x99] sm:$0xff] }
 0x2cb   : > { %v1937_v39 = vadd.f32 %v4926_v35, %v6630_v13  ;;  %v1931_v40 = vpop.f32.mrb[23].mxu1  ;;  %v6750_v35 = vld [vmem:[%s5203_s19 + $0x91] sm:$0xff] }
 0x2cc   : > { %v1932_v48 = vadd.f32 %v6630_v13, %v1931_v40  ;;  %v6760_v40 = vld [vmem:[%s5203_s19 + $0xa9] sm:$0xff] }
 0x2cd   : > { %2058 = vrot.lane.b32.xlu1 %v1937_v39, %s5156_s20  ;;  %v6757_v39 = vld [vmem:[%s5203_s19 + $0xb1] sm:$0xff] }
 0x2ce   : > { %2056 = vrot.lane.b32.xlu0 %v1932_v48, %s5156_s20  ;;  %v4929_v51 = vpop.f32.mrb[24].mxu1  ;;  %v6767_v48 = vld [vmem:[%s5203_s19 + $0xc9] sm:$0xff] }
 0x2cf   : > { %v1947_v45 = vadd.f32 %v4929_v51, %v6630_v13  ;;  %v1941_v28 = vpop.f32.mrb[25].mxu1  ;;  %v6770_v51 = vld [vmem:[%s5203_s19 + $0xc1] sm:$0xff] }
 0x2d0   : > { %v1942_v57 = vadd.f32 %v6630_v13, %v1941_v28  ;;  %v6780_v28 = vld [vmem:[%s5203_s19 + $0xd9] sm:$0xff] }
 0x2d1   : > { %2062 = vrot.lane.b32.xlu1 %v1947_v45, %s5156_s20  ;;  %v6777_v45 = vld [vmem:[%s5203_s19 + $0xe1] sm:$0xff] }
 0x2d2   : > { %2060 = vrot.lane.b32.xlu0 %v1942_v57, %s5156_s20  ;;  %v4932_v23 = vpop.f32.mrb[26].mxu1  ;;  %v6787_v57 = vld [vmem:[%s5203_s19 + $0xf9] sm:$0xff] }
 0x2d3   : > { %v1957_v61 = vadd.f32 %v4932_v23, %v6630_v13  ;;  %v1951_v56 = vpop.f32.mrb[27].mxu1  ;;  %v6790_v23 = vld [vmem:[%s5203_s19 + $0xf1] sm:$0xff] }
 0x2d4   : > { %v1952_v54 = vadd.f32 %v6630_v13, %v1951_v56  ;;  %v6800_v56 = vld [vmem:[%s5203_s19 + $0x109] sm:$0xff] }
 0x2d5   : > { %2066 = vrot.lane.b32.xlu1 %v1957_v61, %s5156_s20  ;;  %v6797_v61 = vld [vmem:[%s5203_s19 + $0x111] sm:$0xff] }
 0x2d6   : > { %2064 = vrot.lane.b32.xlu0 %v1952_v54, %s5156_s20  ;;  %v4935_v30 = vpop.f32.mrb[28].mxu1  ;;  %v6807_v54 = vld [vmem:[%s5203_s19 + $0x129] sm:$0xff] }
 0x2d7   : > { %v1967_v33 = vadd.f32 %v4935_v30, %v6630_v13  ;;  %v1961_v31 = vpop.f32.mrb[29].mxu1  ;;  %8307 = vst [vmem:[#allocation26_spill] sm:$0xff] %v6807_v54  ;;  %v6810_v30 = vld [vmem:[%s5203_s19 + $0x121] sm:$0xff] }
 0x2d8   : > { %v1962_v16 = vadd.f32 %v6630_v13, %v1961_v31  ;;  %8308 = vst [vmem:[#allocation43_spill] sm:$0xff] %v6810_v30  ;;  %v4631_v31 = vld [vmem:[%s8021_s1 + $0x38] sm:$0xff] }
 0x2d9   : > { %2070 = vrot.lane.b32.xlu1 %v1967_v33, %s5156_s20  ;;  %v4630_v33 = vld [vmem:[%s8021_s1 + $0x30] sm:$0xff] }
 0x2da   : > { %2068 = vrot.lane.b32.xlu0 %v1962_v16, %s5156_s20  ;;  %v4938_v5 = vpop.f32.mrb[30].mxu1  ;;  %v5055_v16 = vpack.c.bf16 %v4631_v31, %v4630_v33  ;;  %v4567_v31 = vld [vmem:[%s5203_s19 + $0x22] sm:$0xff] }
 0x2db   : > { %v1977_v46 = vadd.f32 %v4938_v5, %v6630_v13  ;;  %v1971_v18 = vpop.f32.mrb[31].mxu1  ;;  %v6823_v5 = vld [vmem:[%s5203_s19 + $0x141] sm:$0xff] }
 0x2dc   : > { %v1972_v58 = vadd.f32 %v6630_v13, %v1971_v18  ;;  %8309 = vst [vmem:[#allocation27_spill] sm:$0xff] %v6823_v5  ;;  %5056 = vmatprep.subr.bf16.mxu1 %v5055_v16  ;;  %v991_v18 = vadd.f32 %v6425_v26, %v6630_v13 }
 0x2dd   : > { %2074 = vrot.lane.b32.xlu1 %v1977_v46, %s5156_s20  ;;  %v6827_v46 = vld [vmem:[%s5203_s19 + $0x139] sm:$0xff]  ;;  %5058 = vmatpush3.bf16.msra.mxu1 %v5055_v16 }
 0x2de   : > { %2072 = vrot.lane.b32.xlu0 %v1972_v58, %s5156_s20  ;;  %v986_v58 = vadd.f32 %v6630_v13, %v6433_v24  ;;  %v996_v24 = vadd.f32 %v6630_v13, %v6450_v19  ;;  %v1006_v19 = vadd.f32 %v6630_v13, %v6468_v1  ;;  %v1016_v1 = vadd.f32 %v6630_v13, %v6486_v62 }
 0x2df   : > { %v1026_v62 = vadd.f32 %v6630_v13, %v6504_v20  ;;  %v1036_v20 = vadd.f32 %v6630_v13, %v6522_v34  ;;  %v1051_v34 = vadd.f32 %v6532_v2, %v6630_v13  ;;  %v1061_v2 = vadd.f32 %v6550_v11, %v6630_v13 }
 0x2e0   : > { %v1071_v11 = vadd.f32 %v6568_v55, %v6630_v13 }
 0x2e1   : > { %2337 = vrot.lane.b32.xlu1 %v6697_v43, %s5156_s20 }
 0x2e2   : > { %2335 = vrot.lane.b32.xlu0 %v6700_v12, %s5156_s20 }
 0x2e5   : > { %2341 = vrot.lane.b32.xlu1 %v6707_v52, %s5156_s20 }
 0x2e6   : > { %2339 = vrot.lane.b32.xlu0 %v6710_v29, %s5156_s20 }
 0x2e9   : > { %2345 = vrot.lane.b32.xlu1 %v6717_v14, %s5156_s20 }
 0x2ea   : > { %2343 = vrot.lane.b32.xlu0 %v6720_v3, %s5156_s20 }
 0x2ed   : > { %2349 = vrot.lane.b32.xlu1 %v6727_v8, %s5156_s20 }
 0x2ee   : > { %2347 = vrot.lane.b32.xlu0 %v6730_v9, %s5156_s20 }
 0x2f1   : > { %2353 = vrot.lane.b32.xlu1 %v6737_v49, %s5156_s20 }
 0x2f2   : > { %2351 = vrot.lane.b32.xlu0 %v6740_v36, %s5156_s20 }
 0x2f5   : > { %2357 = vrot.lane.b32.xlu1 %v6747_v44, %s5156_s20 }
 0x2f6   : > { %2355 = vrot.lane.b32.xlu0 %v6750_v35, %s5156_s20 }
 0x2f9   : > { %2361 = vrot.lane.b32.xlu1 %v6757_v39, %s5156_s20 }
 0x2fa   : > { %2359 = vrot.lane.b32.xlu0 %v6760_v40, %s5156_s20 }
 0x2fd   : > { %2365 = vrot.lane.b32.xlu1 %v6767_v48, %s5156_s20 }
 0x2fe   : > { %2363 = vrot.lane.b32.xlu0 %v6770_v51, %s5156_s20 }
 0x301   : > { %2369 = vrot.lane.b32.xlu1 %v6777_v45, %s5156_s20 }
 0x302   : > { %2367 = vrot.lane.b32.xlu0 %v6780_v28, %s5156_s20 }
 0x305   : > { %2373 = vrot.lane.b32.xlu1 %v6787_v57, %s5156_s20 }
 0x306   : > { %2371 = vrot.lane.b32.xlu0 %v6790_v23, %s5156_s20 }
 0x309   : > { %2377 = vrot.lane.b32.xlu1 %v6797_v61, %s5156_s20 }
 0x30a   : > { %2375 = vrot.lane.b32.xlu0 %v6800_v56, %s5156_s20 }
 0x30d   : > { %2381 = vrot.lane.b32.xlu1 %v6807_v54, %s5156_s20  ;;  %v1001_v54 = vadd.f32 %v6442_v41, %v6630_v13 }
 0x30e   : > { %2379 = vrot.lane.b32.xlu0 %v6810_v30, %s5156_s20 }
 0x311   : > { %2385 = vrot.lane.b32.xlu1 %v6823_v5, %s5156_s20  ;;  %v4566_v5 = vld [vmem:[%s5203_s19 + $0x1a] sm:$0xff] }
 0x312   : > { %2383 = vrot.lane.b32.xlu0 %v6827_v46, %s5156_s20  ;;  %v2015_v33 = vpop.permute.xlu1 %2014 }
 0x313   : > { %v2109_v26 = vsel %vm715_vm0, %v991_v18, %v2015_v33  ;;  %v2013_v16 = vpop.permute.xlu0 %2012 }
 0x314   : > { %2141 = vst.msk [vmem:[%s6836_s17 + $0x8] sm:$0xff] %vm748_vm1, %v2109_v26  ;;  %v2108_v30 = vsel %vm715_vm0, %v986_v58, %v2013_v16  ;;  %v4598_v16 = vld [vmem:[%s5203_s19 + $0x32] sm:$0xff] }
 0x315   : > { %2140 = vst.msk [vmem:[%s6836_s17] sm:$0xff] %vm748_vm1, %v2108_v30  ;;  %3205 = vrot.lane.b32.xlu1 %v4567_v31, %s5156_s20  ;;  %v1011_v30 = vadd.f32 %v6460_v63, %v6630_v13 }
 0x316   : > { %3203 = vrot.lane.b32.xlu0 %v4566_v5, %s5156_s20  ;;  %v2019_v18 = vpop.permute.xlu1 %2018  ;;  %v4599_v5 = vld [vmem:[%s5203_s19 + $0x3a] sm:$0xff] }
 0x317   : > { %v2111_v33 = vsel %vm715_vm0, %v1001_v54, %v2019_v18  ;;  %v2017_v26 = vpop.permute.xlu0 %2016 }
 0x318   : > { %2143 = vst.msk [vmem:[%s6836_s17 + $0x28] sm:$0xff] %vm748_vm1, %v2111_v33  ;;  %v2110_v41 = vsel %vm715_vm0, %v996_v24, %v2017_v26  ;;  %v1021_v24 = vadd.f32 %v6478_v10, %v6630_v13  ;;  %v1031_v10 = vadd.f32 %v6496_v4, %v6630_v13 }
 0x319   : > { %2142 = vst.msk [vmem:[%s6836_s17 + $0x20] sm:$0xff] %vm748_vm1, %v2110_v41  ;;  %3301 = vrot.lane.b32.xlu1 %v6707_v52, %s5157_s21 }
 0x31a   : > { %3299 = vrot.lane.b32.xlu0 %v6710_v29, %s5157_s21  ;;  %v2023_v54 = vpop.permute.xlu1 %2022 }
 0x31b   : > { %v2113_v58 = vsel %vm715_vm0, %v1011_v30, %v2023_v54  ;;  %v2021_v31 = vpop.permute.xlu0 %2020 }
 0x31c   : > { %2145 = vst.msk [vmem:[%s6836_s17 + $0x48] sm:$0xff] %vm748_vm1, %v2113_v58  ;;  %v2112_v63 = vsel %vm715_vm0, %v1006_v19, %v2021_v31  ;;  %v1041_v58 = vadd.f32 %v6514_v21, %v6630_v13  ;;  %v4601_v31 = vld [vmem:[%s5203_s19 + $0x52] sm:$0xff] }
 0x31d   : > { %2144 = vst.msk [vmem:[%s6836_s17 + $0x40] sm:$0xff] %vm748_vm1, %v2112_v63  ;;  %3429 = vrot.lane.b32.xlu1 %v4599_v5, %s5158_s26 }
 0x31e   : > { %3427 = vrot.lane.b32.xlu0 %v4598_v16, %s5158_s26  ;;  %v2027_v18 = vpop.permute.xlu1 %2026 }
 0x31f   : > { %v2115_v33 = vsel %vm715_vm0, %v1021_v24, %v2027_v18  ;;  %v2025_v26 = vpop.permute.xlu0 %2024  ;;  %v4600_v24 = vld [vmem:[%s5203_s19 + $0x4a] sm:$0xff] }
 0x320   : > { %2147 = vst.msk [vmem:[%s6836_s17 + $0x68] sm:$0xff] %vm748_vm1, %v2115_v33  ;;  %v2114_v41 = vsel %vm715_vm0, %v1016_v1, %v2025_v26  ;;  %v1046_v1 = vadd.f32 %v6630_v13, %v6540_v15  ;;  %v1056_v15 = vadd.f32 %v6630_v13, %v6558_v27  ;;  %v4603_v27 = vld [vmem:[%s5203_s19 + $0x6a] sm:$0xff] }
 0x321   : > { %2146 = vst.msk [vmem:[%s6836_s17 + $0x60] sm:$0xff] %vm748_vm1, %v2114_v41  ;;  %3209 = vrot.lane.b32.xlu1 %v4599_v5, %s5156_s20 }
 0x322   : > { %3207 = vrot.lane.b32.xlu0 %v4598_v16, %s5156_s20  ;;  %v2031_v30 = vpop.permute.xlu1 %2030 }
 0x323   : > { %v2117_v19 = vsel %vm715_vm0, %v1031_v10, %v2031_v30  ;;  %v2029_v54 = vpop.permute.xlu0 %2028 }
 0x324   : > { %2149 = vst.msk [vmem:[%s6836_s17 + $0x88] sm:$0xff] %vm748_vm1, %v2117_v19  ;;  %v2116_v4 = vsel %vm715_vm0, %v1026_v62, %v2029_v54  ;;  %v1066_v54 = vadd.f32 %v6630_v13, %v6576_v53  ;;  %v1076_v53 = vadd.f32 %v6630_v13, %v6594_v60  ;;  %v1086_v60 = vadd.f32 %v6630_v13, %v6604_v7  ;;  %v4605_v7 = vld [vmem:[%s5203_s19 + $0x82] sm:$0xff] }
 0x325   : > { %2148 = vst.msk [vmem:[%s6836_s17 + $0x80] sm:$0xff] %vm748_vm1, %v2116_v4  ;;  %3305 = vrot.lane.b32.xlu1 %v6717_v14, %s5157_s21 }
 0x326   : > { %3303 = vrot.lane.b32.xlu0 %v6720_v3, %s5157_s21  ;;  %v2035_v5 = vpop.permute.xlu1 %2034 }
 0x327   : > { %v2119_v16 = vsel %vm715_vm0, %v1041_v58, %v2035_v5  ;;  %v2033_v63 = vpop.permute.xlu0 %2032  ;;  %v4602_v58 = vld [vmem:[%s5203_s19 + $0x62] sm:$0xff] }
 0x328   : > { %2151 = vst.msk [vmem:[%s6836_s17 + $0xa8] sm:$0xff] %vm748_vm1, %v2119_v16  ;;  %v2118_v21 = vsel %vm715_vm0, %v1036_v20, %v2033_v63 }
 0x329   : > { %2150 = vst.msk [vmem:[%s6836_s17 + $0xa0] sm:$0xff] %vm748_vm1, %v2118_v21  ;;  %3433 = vrot.lane.b32.xlu1 %v4601_v31, %s5158_s26 }
 0x32a   : > { %3431 = vrot.lane.b32.xlu0 %v4600_v24, %s5158_s26 }
 0x32b   : > { %v2039_v18 = vpop.permute.xlu1 %2038 }
 0x32c   : > { %v2121_v33 = vsel %vm715_vm0, %v1051_v34, %v2039_v18  ;;  %v2037_v26 = vpop.permute.xlu0 %2036 }
 0x32d   : > { %2153 = vst.msk [vmem:[%s6836_s17 + $0xc8] sm:$0xff] %vm748_vm1, %v2121_v33  ;;  %v2120_v41 = vsel %vm715_vm0, %v1046_v1, %v2037_v26  ;;  %3213 = vrot.lane.b32.xlu1 %v4601_v31, %s5156_s20  ;;  %v1081_v31 = vadd.f32 %v6586_v50, %v6630_v13  ;;  %v1091_v50 = vadd.f32 %v6601_v6, %v6630_v13 }
 0x32e   : > { %2152 = vst.msk [vmem:[%s6836_s17 + $0xc0] sm:$0xff] %vm748_vm1, %v2120_v41  ;;  %3211 = vrot.lane.b32.xlu0 %v4600_v24, %s5156_s20  ;;  %v1101_v6 = vadd.f32 %v6607_v37, %v6630_v13  ;;  %v1096_v26 = vadd.f32 %v6630_v13, %v6609_v25  ;;  %v1106_v25 = vadd.f32 %v6630_v13, %v6613_v47 }
 0x32f   : > { %v2043_v10 = vpop.permute.xlu1 %2042  ;;  %v1116_v47 = vadd.f32 %v6630_v13, %v6617_v59  ;;  %v4607_v59 = vld [vmem:[%s5203_s19 + $0x9a] sm:$0xff] }
 0x330   : > { %v2123_v62 = vsel %vm715_vm0, %v1061_v2, %v2043_v10  ;;  %v2041_v30 = vpop.permute.xlu0 %2040  ;;  %v4604_v2 = vld [vmem:[%s5203_s19 + $0x7a] sm:$0xff] }
 0x331   : > { %2155 = vst.msk [vmem:[%s6836_s17 + $0xe8] sm:$0xff] %vm748_vm1, %v2123_v62  ;;  %v2122_v19 = vsel %vm715_vm0, %v1056_v15, %v2041_v30  ;;  %3309 = vrot.lane.b32.xlu1 %v6727_v8, %s5157_s21  ;;  %v1111_v62 = vadd.f32 %v6611_v32, %v6630_v13  ;;  %v1121_v32 = vadd.f32 %v6615_v42, %v6630_v13 }
 0x332   : > { %2154 = vst.msk [vmem:[%s6836_s17 + $0xe0] sm:$0xff] %vm748_vm1, %v2122_v19  ;;  %3307 = vrot.lane.b32.xlu0 %v6730_v9, %s5157_s21  ;;  %v1131_v42 = vadd.f32 %v6619_v17, %v6630_v13 }
 0x333   : > { %v2047_v4 = vpop.permute.xlu1 %2046 }
 0x334   : > { %v2125_v20 = vsel %vm715_vm0, %v1071_v11, %v2047_v4  ;;  %v2045_v5 = vpop.permute.xlu0 %2044 }
 0x335   : > { %2157 = vst.msk [vmem:[%s6836_s17 + $0x108] sm:$0xff] %vm748_vm1, %v2125_v20  ;;  %v2124_v55 = vsel %vm715_vm0, %v1066_v54, %v2045_v5  ;;  %3437 = vrot.lane.b32.xlu1 %v4603_v27, %s5158_s26  ;;  %v1126_v5 = vadd.f32 %v6630_v13, %v6621_v38  ;;  %v1136_v38 = vadd.f32 %v6630_v13, %v6625_v22  ;;  %v4609_v22 = vld [vmem:[%s5203_s19 + $0xb2] sm:$0xff] }
 0x336   : > { %2156 = vst.msk [vmem:[%s6836_s17 + $0x100] sm:$0xff] %vm748_vm1, %v2124_v55  ;;  %3435 = vrot.lane.b32.xlu0 %v4602_v58, %s5158_s26 }
 0x337   : > { %v2051_v16 = vpop.permute.xlu1 %2050 }
 0x338   : > { %v2127_v63 = vsel %vm715_vm0, %v1081_v31, %v2051_v16  ;;  %v2049_v24 = vpop.permute.xlu0 %2048  ;;  %v4606_v31 = vld [vmem:[%s5203_s19 + $0x92] sm:$0xff] }
 0x339   : > { %2159 = vst.msk [vmem:[%s6836_s17 + $0x128] sm:$0xff] %vm748_vm1, %v2127_v63  ;;  %v2126_v21 = vsel %vm715_vm0, %v1076_v53, %v2049_v24  ;;  %3217 = vrot.lane.b32.xlu1 %v4603_v27, %s5156_s20  ;;  %v1141_v63 = vadd.f32 %v6623_v0, %v6630_v13 }
 0x33a   : > { %2158 = vst.msk [vmem:[%s6836_s17 + $0x120] sm:$0xff] %vm748_vm1, %v2126_v21  ;;  %3215 = vrot.lane.b32.xlu0 %v4602_v58, %s5156_s20 }
 0x33b   : > { %v2055_v34 = vpop.permute.xlu1 %2054 }
 0x33c   : > { %v2129_v1 = vsel %vm715_vm0, %v1091_v50, %v2055_v34  ;;  %v2053_v18 = vpop.permute.xlu0 %2052 }
 0x33d   : > { %2161 = vst.msk [vmem:[%s6836_s17 + $0x148] sm:$0xff] %vm748_vm1, %v2129_v1  ;;  %v2128_v33 = vsel %vm715_vm0, %v1086_v60, %v2053_v18  ;;  %3313 = vrot.lane.b32.xlu1 %v6737_v49, %s5157_s21  ;;  %v4608_v1 = vld [vmem:[%s5203_s19 + $0xaa] sm:$0xff] }
 0x33e   : > { %2160 = vst.msk [vmem:[%s6836_s17 + $0x140] sm:$0xff] %vm748_vm1, %v2128_v33  ;;  %3311 = vrot.lane.b32.xlu0 %v6740_v36, %s5157_s21 }
 0x33f   : > { %v2059_v41 = vpop.permute.xlu1 %2058 }
 0x340   : > { %v2131_v15 = vsel %vm715_vm0, %v1101_v6, %v2059_v41  ;;  %v2057_v10 = vpop.permute.xlu0 %2056  ;;  %v4611_v41 = vld [vmem:[%s5203_s19 + $0xca] sm:$0xff] }
 0x341   : > { %2163 = vst.msk [vmem:[%s6836_s17 + $0x168] sm:$0xff] %vm748_vm1, %v2131_v15  ;;  %v2130_v37 = vsel %vm715_vm0, %v1096_v26, %v2057_v10  ;;  %3441 = vrot.lane.b32.xlu1 %v4605_v7, %s5158_s26  ;;  %v4610_v15 = vld [vmem:[%s5203_s19 + $0xc2] sm:$0xff] }
 0x342   : > { %2162 = vst.msk [vmem:[%s6836_s17 + $0x160] sm:$0xff] %vm748_vm1, %v2130_v37  ;;  %3439 = vrot.lane.b32.xlu0 %v4604_v2, %s5158_s26 }
 0x343   : > { %v2063_v30 = vpop.permute.xlu1 %2062 }
 0x344   : > { %v2133_v19 = vsel %vm715_vm0, %v1111_v62, %v2063_v30  ;;  %v2061_v11 = vpop.permute.xlu0 %2060 }
 0x345   : > { %2165 = vst.msk [vmem:[%s6836_s17 + $0x188] sm:$0xff] %vm748_vm1, %v2133_v19  ;;  %v2132_v27 = vsel %vm715_vm0, %v1106_v25, %v2061_v11  ;;  %3221 = vrot.lane.b32.xlu1 %v4605_v7, %s5156_s20  ;;  %v4613_v19 = vld [vmem:[%s5203_s19 + $0xe2] sm:$0xff] }
 0x346   : > { %2164 = vst.msk [vmem:[%s6836_s17 + $0x180] sm:$0xff] %vm748_vm1, %v2132_v27  ;;  %3219 = vrot.lane.b32.xlu0 %v4604_v2, %s5156_s20  ;;  %v4612_v27 = vld [vmem:[%s5203_s19 + $0xda] sm:$0xff] }
 0x347   : > { %v2067_v54 = vpop.permute.xlu1 %2066 }
 0x348   : > { %v2135_v4 = vsel %vm715_vm0, %v1121_v32, %v2067_v54  ;;  %v2065_v58 = vpop.permute.xlu0 %2064 }
 0x349   : > { %2167 = vst.msk [vmem:[%s6836_s17 + $0x1a8] sm:$0xff] %vm748_vm1, %v2135_v4  ;;  %v2134_v20 = vsel %vm715_vm0, %v1116_v47, %v2065_v58  ;;  %3317 = vrot.lane.b32.xlu1 %v6747_v44, %s5157_s21 }
 0x34a   : > { %2166 = vst.msk [vmem:[%s6836_s17 + $0x1a0] sm:$0xff] %vm748_vm1, %v2134_v20  ;;  %3315 = vrot.lane.b32.xlu0 %v6750_v35, %s5157_s21  ;;  %v4615_v20 = vld [vmem:[%s5203_s19 + $0xfa] sm:$0xff] }
 0x34b   : > { %v2071_v55 = vpop.permute.xlu1 %2070 }
 0x34c   : > { %v2137_v53 = vsel %vm715_vm0, %v1131_v42, %v2071_v55  ;;  %v2069_v16 = vpop.permute.xlu0 %2068 }
 0x34d   : > { %2169 = vst.msk [vmem:[%s6836_s17 + $0x1c8] sm:$0xff] %vm748_vm1, %v2137_v53  ;;  %v2136_v17 = vsel %vm715_vm0, %v1126_v5, %v2069_v16  ;;  %3445 = vrot.lane.b32.xlu1 %v4607_v59, %s5158_s26 }
 0x34e   : > { %2168 = vst.msk [vmem:[%s6836_s17 + $0x1c0] sm:$0xff] %vm748_vm1, %v2136_v17  ;;  %3443 = vrot.lane.b32.xlu0 %v4606_v31, %s5158_s26  ;;  %v4617_v17 = vld [vmem:[%s5203_s19 + $0x112] sm:$0xff] }
 0x34f   : > { %v2075_v24 = vpop.permute.xlu1 %2074 }
 0x350   : > { %v2139_v21 = vsel %vm715_vm0, %v1141_v63, %v2075_v24  ;;  %v2073_v50 = vpop.permute.xlu0 %2072 }
 0x351   : > { %2171 = vst.msk [vmem:[%s6836_s17 + $0x1e8] sm:$0xff] %vm748_vm1, %v2139_v21  ;;  %v2138_v60 = vsel %vm715_vm0, %v1136_v38, %v2073_v50  ;;  %3225 = vrot.lane.b32.xlu1 %v4607_v59, %s5156_s20  ;;  %v4614_v59 = vld [vmem:[%s5203_s19 + $0xf2] sm:$0xff]  ;;  %v4616_v38 = vld [vmem:[%s5203_s19 + $0x10a] sm:$0xff] }
 0x352   : > { %2170 = vst.msk [vmem:[%s6836_s17 + $0x1e0] sm:$0xff] %vm748_vm1, %v2138_v60  ;;  %3223 = vrot.lane.b32.xlu0 %v4606_v31, %s5156_s20 }
 0x353   : > { %v7052_v0 = vpop.permute.xlu1 %2337 }
 0x354   : > { %v7054_v34 = vpop.permute.xlu0 %2335 }
 0x355   : > { %3321 = vrot.lane.b32.xlu1 %v6757_v39, %s5157_s21 }
 0x356   : > { %3319 = vrot.lane.b32.xlu0 %v6760_v40, %s5157_s21 }
 0x357   : > { %v7061_v13 = vpop.permute.xlu1 %2341 }
 0x358   : > { %v7064_v18 = vpop.permute.xlu0 %2339 }
 0x359   : > { %3449 = vrot.lane.b32.xlu1 %v4609_v22, %s5158_s26 }
 0x35a   : > { %3447 = vrot.lane.b32.xlu0 %v4608_v1, %s5158_s26 }
 0x35b   : > { %v7068_v33 = vpop.permute.xlu1 %2345 }
 0x35c   : > { %v7070_v6 = vpop.permute.xlu0 %2343 }
 0x35d   : > { %3229 = vrot.lane.b32.xlu1 %v4609_v22, %s5156_s20 }
 0x35e   : > { %3227 = vrot.lane.b32.xlu0 %v4608_v1, %s5156_s20 }
 0x35f   : > { %v7074_v7 = vpop.permute.xlu1 %2349 }
 0x360   : > { %v7076_v26 = vpop.permute.xlu0 %2347 }
 0x361   : > { %3325 = vrot.lane.b32.xlu1 %v6767_v48, %s5157_s21 }
 0x362   : > { %3323 = vrot.lane.b32.xlu0 %v6770_v51, %s5157_s21 }
 0x363   : > { %v7083_v2 = vpop.permute.xlu1 %2353 }
 0x364   : > { %v7086_v10 = vpop.permute.xlu0 %2351 }
 0x365   : > { %3453 = vrot.lane.b32.xlu1 %v4611_v41, %s5158_s26 }
 0x366   : > { %3451 = vrot.lane.b32.xlu0 %v4610_v15, %s5158_s26 }
 0x367   : > { %v7090_v37 = vpop.permute.xlu1 %2357 }
 0x368   : > { %v7092_v62 = vpop.permute.xlu0 %2355 }
 0x369   : > { %3233 = vrot.lane.b32.xlu1 %v4611_v41, %s5156_s20 }
 0x36a   : > { %3231 = vrot.lane.b32.xlu0 %v4610_v15, %s5156_s20 }
 0x36b   : > { %v7096_v25 = vpop.permute.xlu1 %2361 }
 0x36c   : > { %v7098_v30 = vpop.permute.xlu0 %2359 }
 0x36d   : > { %3329 = vrot.lane.b32.xlu1 %v6777_v45, %s5157_s21 }
 0x36e   : > { %3327 = vrot.lane.b32.xlu0 %v6780_v28, %s5157_s21 }
 0x36f   : > { %v7105_v11 = vpop.permute.xlu1 %2365 }
 0x370   : > { %v7108_v32 = vpop.permute.xlu0 %2363 }
 0x371   : > { %3457 = vrot.lane.b32.xlu1 %v4613_v19, %s5158_s26 }
 0x372   : > { %3455 = vrot.lane.b32.xlu0 %v4612_v27, %s5158_s26 }
 0x373   : > { %v7112_v47 = vpop.permute.xlu1 %2369 }
 0x374   : > { %v7114_v54 = vpop.permute.xlu0 %2367 }
 0x375   : > { %3237 = vrot.lane.b32.xlu1 %v4613_v19, %s5156_s20 }
 0x376   : > { %3235 = vrot.lane.b32.xlu0 %v4612_v27, %s5156_s20 }
 0x377   : > { %v7118_v4 = vpop.permute.xlu1 %2373 }
 0x378   : > { %v7120_v58 = vpop.permute.xlu0 %2371 }
 0x379   : > { %3333 = vrot.lane.b32.xlu1 %v6787_v57, %s5157_s21 }
 0x37a   : > { %3331 = vrot.lane.b32.xlu0 %v6790_v23, %s5157_s21 }
 0x37b   : > { %v7127_v42 = vpop.permute.xlu1 %2377 }
 0x37c   : > { %8310 = vst [vmem:[#allocation72_spill] sm:$0xff] %v7127_v42  ;;  %v7130_v5 = vpop.permute.xlu0 %2375 }
 0x37d   : > { %8311 = vst [vmem:[#allocation73_spill] sm:$0xff] %v7130_v5  ;;  %3461 = vrot.lane.b32.xlu1 %v4615_v20, %s5158_s26  ;;  %v5130_v5 = vld [vmem:[%s5203_s19 + $0x109] sm:$0xff] }
 0x37e   : > { %3459 = vrot.lane.b32.xlu0 %v4614_v59, %s5158_s26 }
 0x37f   : > { %v7134_v55 = vpop.permute.xlu1 %2381 }
 0x380   : > { %8312 = vst [vmem:[#allocation6_spill] sm:$0xff] %v7134_v55  ;;  %v7136_v31 = vpop.permute.xlu0 %2379 }
 0x381   : > { %8313 = vst [vmem:[#allocation7_spill] sm:$0xff] %v7136_v31  ;;  %3241 = vrot.lane.b32.xlu1 %v4615_v20, %s5156_s20  ;;  %v8316_v20 = vld [vmem:[#allocation26_spill] sm:$0xff] }
 0x382   : > { %3239 = vrot.lane.b32.xlu0 %v4614_v59, %s5156_s20 }
 0x383   : > { %v7140_v53 = vpop.permute.xlu1 %2385 }
 0x384   : > { %8314 = vst [vmem:[#allocation44_spill] sm:$0xff] %v7140_v53  ;;  %v7142_v16 = vpop.permute.xlu0 %2383 }
 0x385   : > { %8315 = vst [vmem:[#allocation28_spill] sm:$0xff] %v7142_v16  ;;  %3337 = vrot.lane.b32.xlu1 %v6797_v61, %s5157_s21 }
 0x386   : > { %3335 = vrot.lane.b32.xlu0 %v6800_v56, %s5157_s21 }
 0x387   : > { %v3206_v63 = vpop.permute.xlu1 %3205 }
 0x388   : > { %v3204_v24 = vpop.permute.xlu0 %3203  ;;  %v3524_v60 = vsel %vm715_vm0, %v6697_v43, %v3206_v63  ;;  %v8317_v43 = vld [vmem:[#allocation43_spill] sm:$0xff] }
 0x389   : > { %3465 = vrot.lane.b32.xlu1 %v4617_v17, %s5158_s26  ;;  %v3523_v22 = vsel %vm715_vm0, %v6700_v12, %v3204_v24  ;;  %v4618_v63 = vld [vmem:[%s5203_s19 + $0x122] sm:$0xff] }
 0x38a   : > { %3463 = vrot.lane.b32.xlu0 %v4616_v38, %s5158_s26 }
 0x38b   : > { %v3302_v21 = vpop.permute.xlu1 %3301 }
 0x38c   : > { %v3300_v50 = vpop.permute.xlu0 %3299  ;;  %v3556_v19 = vsel %vm748_vm1, %v3524_v60, %v3302_v21 }
 0x38d   : > { %3245 = vrot.lane.b32.xlu1 %v4617_v17, %s5156_s20  ;;  %v3555_v41 = vsel %vm748_vm1, %v3523_v22, %v3300_v50  ;;  %v4619_v17 = vld [vmem:[%s5203_s19 + $0x12a] sm:$0xff] }
 0x38e   : > { %3243 = vrot.lane.b32.xlu0 %v4616_v38, %s5156_s20 }
 0x38f   : > { %v3430_v1 = vpop.permute.xlu1 %3429 }
 0x390   : > { %v3428_v15 = vpop.permute.xlu0 %3427  ;;  %v3588_v59 = vsel %vm781_vm2, %v3556_v19, %v3430_v1 }
 0x391   : > { %v3587_v27 = vsel %vm781_vm2, %v3555_v41, %v3428_v15  ;;  %3341 = vrot.lane.b32.xlu1 %v8316_v20, %s5157_s21 }
 0x392   : > { %3339 = vrot.lane.b32.xlu0 %v8317_v43, %s5157_s21  ;;  %4995 = vmatprep.mubr.msk.f32.mxu1 %vm822_vm3, %v3587_v27  ;;  %v8318_v27 = vld [vmem:[#allocation27_spill] sm:$0xff] }
 0x393   : > { %v3210_v12 = vpop.permute.xlu1 %3209  ;;  %4996 = vmatmul.mubr.msk.f32.vlgmr.msra.gmra.mrb[32].mxu1 %vm822_vm3, %v3588_v59  ;;  %v4621_v59 = vld [vmem:[%s5203_s19 + $0x142] sm:$0xff] }
 0x394   : > { %v3208_v38 = vpop.permute.xlu0 %3207  ;;  %v3526_v50 = vsel %vm715_vm0, %v6707_v52, %v3210_v12 }
 0x395   : > { %3469 = vrot.lane.b32.xlu1 %v4619_v17, %s5158_s26  ;;  %v3525_v60 = vsel %vm715_vm0, %v6710_v29, %v3208_v38 }
 0x396   : > { %3467 = vrot.lane.b32.xlu0 %v4618_v63, %s5158_s26 }
 0x397   : > { %v3306_v24 = vpop.permute.xlu1 %3305 }
 0x398   : > { %v3304_v21 = vpop.permute.xlu0 %3303  ;;  %v3558_v15 = vsel %vm748_vm1, %v3526_v50, %v3306_v24  ;;  %v7197_v24 = vld [vmem:[%s5203_s19 + $0x159] sm:$0xff] }
 0x399   : > { %3249 = vrot.lane.b32.xlu1 %v4619_v17, %s5156_s20  ;;  %v3557_v1 = vsel %vm748_vm1, %v3525_v60, %v3304_v21  ;;  %v4620_v17 = vld [vmem:[%s5203_s19 + $0x13a] sm:$0xff]  ;;  %v7202_v60 = vld [vmem:[%s5203_s19 + $0x151] sm:$0xff] }
 0x39a   : > { %3247 = vrot.lane.b32.xlu0 %v4618_v63, %s5156_s20 }
 0x39b   : > { %v3434_v22 = vpop.permute.xlu1 %3433 }
 0x39c   : > { %v3432_v41 = vpop.permute.xlu0 %3431  ;;  %v3590_v20 = vsel %vm781_vm2, %v3558_v15, %v3434_v22 }
 0x39d   : > { %v3589_v19 = vsel %vm781_vm2, %v3557_v1, %v3432_v41  ;;  %3345 = vrot.lane.b32.xlu1 %v8318_v27, %s5157_s21  ;;  %v4623_v27 = vld [vmem:[%s5203_s19 + $0x15a] sm:$0xff] }
 0x39e   : > { %3343 = vrot.lane.b32.xlu0 %v6827_v46, %s5157_s21  ;;  %4998 = vmatprep.mubr.msk.f32.mxu1 %vm822_vm3, %v3589_v19 }
 0x39f   : > { %v3214_v43 = vpop.permute.xlu1 %3213  ;;  %4999 = vmatmul.mubr.msk.f32.gmra.mrb[34].mxu1 %vm822_vm3, %v3590_v20 }
 0x3a0   : > { %v3212_v12 = vpop.permute.xlu0 %3211  ;;  %v3528_v46 = vsel %vm715_vm0, %v6717_v14, %v3214_v43 }
 0x3a1   : > { %3473 = vrot.lane.b32.xlu1 %v4621_v59, %s5158_s26  ;;  %v3527_v21 = vsel %vm715_vm0, %v6720_v3, %v3212_v12 }
 0x3a2   : > { %3471 = vrot.lane.b32.xlu0 %v4620_v17, %s5158_s26 }
 0x3a3   : > { %v3310_v63 = vpop.permute.xlu1 %3309 }
 0x3a4   : > { %v3308_v38 = vpop.permute.xlu0 %3307  ;;  %v3560_v41 = vsel %vm748_vm1, %v3528_v46, %v3310_v63 }
 0x3a5   : > { %3253 = vrot.lane.b32.xlu1 %v4621_v59, %s5156_s20  ;;  %v3559_v22 = vsel %vm748_vm1, %v3527_v21, %v3308_v38  ;;  %v4622_v59 = vld [vmem:[%s5203_s19 + $0x152] sm:$0xff] }
 0x3a6   : > { %3251 = vrot.lane.b32.xlu0 %v4620_v17, %s5156_s20  ;;  %v7223_v38 = vld [vmem:[%s5203_s19 + $0x171] sm:$0xff] }
 0x3a7   : > { %v3438_v50 = vpop.permute.xlu1 %3437 }
 0x3a8   : > { %v3436_v1 = vpop.permute.xlu0 %3435  ;;  %v3592_v19 = vsel %vm781_vm2, %v3560_v41, %v3438_v50  ;;  %v7228_v50 = vld [vmem:[%s5203_s19 + $0x169] sm:$0xff] }
 0x3a9   : > { %v3591_v15 = vsel %vm781_vm2, %v3559_v22, %v3436_v1  ;;  %3349 = vrot.lane.b32.xlu1 %v7197_v24, %s5157_s21 }
 0x3aa   : > { %3347 = vrot.lane.b32.xlu0 %v7202_v60, %s5157_s21  ;;  %5001 = vmatprep.mubr.msk.f32.mxu1 %vm822_vm3, %v3591_v15 }
 0x3ab   : > { %v3218_v20 = vpop.permute.xlu1 %3217  ;;  %5002 = vmatmul.mubr.msk.f32.gmra.mrb[36].mxu1 %vm822_vm3, %v3592_v19 }
 0x3ac   : > { %v3216_v43 = vpop.permute.xlu0 %3215  ;;  %v3530_v63 = vsel %vm715_vm0, %v6727_v8, %v3218_v20 }
 0x3ad   : > { %3477 = vrot.lane.b32.xlu1 %v4623_v27, %s5158_s26  ;;  %v3529_v46 = vsel %vm715_vm0, %v6730_v9, %v3216_v43 }
 0x3ae   : > { %3475 = vrot.lane.b32.xlu0 %v4622_v59, %s5158_s26 }
 0x3af   : > { %v3314_v17 = vpop.permute.xlu1 %3313 }
 0x3b0   : > { %v3312_v12 = vpop.permute.xlu0 %3311  ;;  %v3562_v41 = vsel %vm748_vm1, %v3530_v63, %v3314_v17 }
 0x3b1   : > { %3257 = vrot.lane.b32.xlu1 %v4623_v27, %s5156_s20  ;;  %v3561_v22 = vsel %vm748_vm1, %v3529_v46, %v3312_v12  ;;  %v4625_v27 = vld [vmem:[%s5203_s19 + $0x172] sm:$0xff]  ;;  %v7249_v46 = vld [vmem:[%s5203_s19 + $0x189] sm:$0xff] }
 0x3b2   : > { %3255 = vrot.lane.b32.xlu0 %v4622_v59, %s5156_s20  ;;  %v4624_v59 = vld [vmem:[%s5203_s19 + $0x16a] sm:$0xff] }
 0x3b3   : > { %v3442_v21 = vpop.permute.xlu1 %3441 }
 0x3b4   : > { %v3440_v1 = vpop.permute.xlu0 %3439  ;;  %v3594_v19 = vsel %vm781_vm2, %v3562_v41, %v3442_v21  ;;  %v4532_v41 = vld [vmem:[%s8021_s1 + $0x20] sm:$0xff] }
 0x3b5   : > { %v3593_v15 = vsel %vm781_vm2, %v3561_v22, %v3440_v1  ;;  %3353 = vrot.lane.b32.xlu1 %v7223_v38, %s5157_s21  ;;  %v7254_v1 = vld [vmem:[%s5203_s19 + $0x181] sm:$0xff] }
 0x3b6   : > { %3351 = vrot.lane.b32.xlu0 %v7228_v50, %s5157_s21  ;;  %5004 = vmatprep.mubr.msk.f32.mxu1 %vm822_vm3, %v3593_v15  ;;  %v4533_v15 = vld [vmem:[%s8021_s1 + $0x28] sm:$0xff] }
 0x3b7   : > { %v3222_v20 = vpop.permute.xlu1 %3221  ;;  %5005 = vmatmul.mubr.msk.f32.gmra.mrb[38].mxu1 %vm822_vm3, %v3594_v19 }
 0x3b8   : > { %v3220_v43 = vpop.permute.xlu0 %3219  ;;  %v3532_v63 = vsel %vm715_vm0, %v6737_v49, %v3222_v20  ;;  %v5051_v20 = vpack.c.bf16 %v4533_v15, %v4532_v41  ;;  %v7281_v41 = vld [vmem:[%s5203_s19 + $0x38] sm:$0xff] }
 0x3b9   : > { %3481 = vrot.lane.b32.xlu1 %v4625_v27, %s5158_s26  ;;  %v3531_v21 = vsel %vm715_vm0, %v6740_v36, %v3220_v43 }
 0x3ba   : > { %3479 = vrot.lane.b32.xlu0 %v4624_v59, %s5158_s26  ;;  %5052 = vmatprep.subr.bf16.mxu0 %v5051_v20 }
 0x3bb   : > { %v3318_v17 = vpop.permute.xlu1 %3317  ;;  %5054 = vmatpush3.bf16.msra.mxu0 %v5051_v20 }
 0x3bc   : > { %v3316_v12 = vpop.permute.xlu0 %3315 }
 0x3bd   : > { %3261 = vrot.lane.b32.xlu1 %v4625_v27, %s5156_s20  ;;  %v3563_v19 = vsel %vm748_vm1, %v3531_v21, %v3316_v12  ;;  %v4626_v12 = vld [vmem:[%s5203_s19 + $0x182] sm:$0xff] }
 0x3be   : > { %3259 = vrot.lane.b32.xlu0 %v4624_v59, %s5156_s20  ;;  %v3564_v59 = vsel %vm748_vm1, %v3532_v63, %v3318_v17  ;;  %v7274_v17 = vld [vmem:[%s5203_s19 + $0x30] sm:$0xff] }
 0x3bf   : > { %v3446_v22 = vpop.permute.xlu1 %3445 }
 0x3c0   : > { %v3444_v27 = vpop.permute.xlu0 %3443  ;;  %v3596_v53 = vsel %vm781_vm2, %v3564_v59, %v3446_v22  ;;  %v4627_v22 = vld [vmem:[%s5203_s19 + $0x18a] sm:$0xff] }
 0x3c1   : > { %v3595_v43 = vsel %vm781_vm2, %v3563_v19, %v3444_v27  ;;  %3357 = vrot.lane.b32.xlu1 %v7249_v46, %s5157_s21 }
 0x3c2   : > { %3355 = vrot.lane.b32.xlu0 %v7254_v1, %s5157_s21  ;;  %5007 = vmatprep.mubr.msk.f32.mxu1 %vm822_vm3, %v3595_v43 }
 0x3c3   : > { %v3226_v16 = vpop.permute.xlu1 %3225  ;;  %5008 = vmatmul.mubr.msk.f32.gmra.mrb[40].mxu1 %vm822_vm3, %v3596_v53 }
 0x3c4   : > { %v3224_v63 = vpop.permute.xlu0 %3223  ;;  %v3534_v53 = vsel %vm715_vm0, %v6747_v44, %v3226_v16 }
 0x3c5   : > { %2463 = vrot.lane.b32.xlu1 %v7274_v17, %s5157_s21  ;;  %v3533_v19 = vsel %vm715_vm0, %v6750_v35, %v3224_v63 }
 0x3c6   : > { %3483 = vrot.lane.b32.xlu0 %v4626_v12, %s5158_s26 }
 0x3c7   : > { %v3322_v21 = vpop.permute.xlu1 %3321 }
 0x3c8   : > { %v3320_v15 = vpop.permute.xlu0 %3319  ;;  %v3566_v43 = vsel %vm748_vm1, %v3534_v53, %v3322_v21  ;;  %v7303_v21 = vld [vmem:[%s5203_s19 + $0x1a1] sm:$0xff] }
 0x3c9   : > { %2465 = vrot.lane.b32.xlu1 %v7281_v41, %s5157_s21  ;;  %v3565_v20 = vsel %vm748_vm1, %v3533_v19, %v3320_v15  ;;  %v7306_v15 = vld [vmem:[%s5203_s19 + $0x199] sm:$0xff] }
 0x3ca   : > { %3485 = vrot.lane.b32.xlu0 %v4627_v22, %s5158_s26 }
 0x3cb   : > { %v3450_v27 = vpop.permute.xlu1 %3449 }
 0x3cc   : > { %v3448_v59 = vpop.permute.xlu0 %3447  ;;  %v3598_v31 = vsel %vm781_vm2, %v3566_v43, %v3450_v27 }
 0x3cd   : > { %v3597_v55 = vsel %vm781_vm2, %v3565_v20, %v3448_v59  ;;  %3263 = vrot.lane.b32.xlu1 %v4626_v12, %s5156_s20 }
 0x3ce   : > { %2591 = vrot.lane.b32.xlu0 %v6710_v29, %s5158_s26  ;;  %5010 = vmatprep.mubr.msk.f32.mxu1 %vm822_vm3, %v3597_v55 }
 0x3cf   : > { %v3230_v16 = vpop.permute.xlu1 %3229  ;;  %5011 = vmatmul.mubr.msk.f32.gmra.mrb[42].mxu1 %vm822_vm3, %v3598_v31  ;;  %v4628_v31 = vld [vmem:[%s5203_s19 + $0x19a] sm:$0xff] }
 0x3d0   : > { %v3228_v63 = vpop.permute.xlu0 %3227  ;;  %v3536_v29 = vsel %vm715_vm0, %v6757_v39, %v3230_v16 }
 0x3d1   : > { %3265 = vrot.lane.b32.xlu1 %v4627_v22, %s5156_s20  ;;  %v7318_v22 = vld [vmem:[%s5203_s19 + $0x48] sm:$0xff] }
 0x3d2   : > { %2593 = vrot.lane.b32.xlu0 %v6707_v52, %s5158_s26  ;;  %v3535_v52 = vsel %vm715_vm0, %v6760_v40, %v3228_v63  ;;  %v4629_v63 = vld [vmem:[%s5203_s19 + $0x1a2] sm:$0xff] }
 0x3d3   : > { %v3326_v12 = vpop.permute.xlu1 %3325 }
 0x3d4   : > { %v3324_v53 = vpop.permute.xlu0 %3323  ;;  %v3568_v20 = vsel %vm748_vm1, %v3536_v29, %v3326_v12 }
 0x3d5   : > { %3361 = vrot.lane.b32.xlu1 %v7303_v21, %s5157_s21  ;;  %v3567_v19 = vsel %vm748_vm1, %v3535_v52, %v3324_v53  ;;  %v7331_v53 = vld [vmem:[%s5203_s19 + $0x50] sm:$0xff] }
 0x3d6   : > { %3359 = vrot.lane.b32.xlu0 %v7306_v15, %s5157_s21 }
 0x3d7   : > { %v3454_v55 = vpop.permute.xlu1 %3453 }
 0x3d8   : > { %v3452_v27 = vpop.permute.xlu0 %3451  ;;  %v3600_v43 = vsel %vm781_vm2, %v3568_v20, %v3454_v55 }
 0x3d9   : > { %v3599_v59 = vsel %vm781_vm2, %v3567_v19, %v3452_v27  ;;  %2467 = vrot.lane.b32.xlu1 %v7318_v22, %s5157_s21  ;;  %v7345_v27 = vld [vmem:[%s5203_s19 + $0x68] sm:$0xff] }
 0x3da   : > { %3487 = vrot.lane.b32.xlu0 %v4628_v31, %s5158_s26  ;;  %5013 = vmatprep.mubr.msk.f32.mxu1 %vm822_vm3, %v3599_v59 }
 0x3db   : > { %v3234_v16 = vpop.permute.xlu1 %3233  ;;  %5014 = vmatmul.mubr.msk.f32.gmra.mrb[44].mxu1 %vm822_vm3, %v3600_v43  ;;  %v7349_v43 = vld [vmem:[%s5203_s19 + $0x60] sm:$0xff] }
 0x3dc   : > { %v3232_v12 = vpop.permute.xlu0 %3231  ;;  %v3538_v55 = vsel %vm715_vm0, %v6767_v48, %v3234_v16 }
 0x3dd   : > { %2469 = vrot.lane.b32.xlu1 %v7331_v53, %s5157_s21  ;;  %v3537_v31 = vsel %vm715_vm0, %v6770_v51, %v3232_v12  ;;  %v7365_v12 = vld [vmem:[%s5203_s19 + $0x80] sm:$0xff] }
 0x3de   : > { %3489 = vrot.lane.b32.xlu0 %v4629_v63, %s5158_s26 }
 0x3df   : > { %v3330_v29 = vpop.permute.xlu1 %3329 }
 0x3e0   : > { %v3328_v52 = vpop.permute.xlu0 %3327 }
 0x3e1   : > { %2597 = vrot.lane.b32.xlu1 %v6717_v14, %s5158_s26  ;;  %v3569_v20 = vsel %vm748_vm1, %v3537_v31, %v3328_v52  ;;  %v3570_v14 = vsel %vm748_vm1, %v3538_v55, %v3330_v29  ;;  %v7368_v52 = vld [vmem:[%s5203_s19 + $0x78] sm:$0xff] }
 0x3e2   : > { %2595 = vrot.lane.b32.xlu0 %v6720_v3, %s5158_s26 }
 0x3e3   : > { %v3458_v19 = vpop.permute.xlu1 %3457 }
 0x3e4   : > { %v3456_v59 = vpop.permute.xlu0 %3455  ;;  %v3602_v3 = vsel %vm781_vm2, %v3570_v14, %v3458_v19  ;;  %v7389_v14 = vld [vmem:[%s5203_s19 + $0x98] sm:$0xff] }
 0x3e5   : > { %v3601_v48 = vsel %vm781_vm2, %v3569_v20, %v3456_v59  ;;  %2473 = vrot.lane.b32.xlu1 %v7345_v27, %s5157_s21 }
 0x3e6   : > { %2471 = vrot.lane.b32.xlu0 %v7349_v43, %s5157_s21  ;;  %5016 = vmatprep.mubr.msk.f32.mxu1 %vm822_vm3, %v3601_v48 }
 0x3e7   : > { %v3238_v51 = vpop.permute.xlu1 %3237  ;;  %5017 = vmatmul.mubr.msk.f32.gmra.mrb[46].mxu1 %vm822_vm3, %v3602_v3  ;;  %v7392_v3 = vld [vmem:[%s5203_s19 + $0x90] sm:$0xff] }
 0x3e8   : > { %v3236_v16 = vpop.permute.xlu0 %3235  ;;  %v3540_v55 = vsel %vm715_vm0, %v6777_v45, %v3238_v51 }
 0x3e9   : > { %2601 = vrot.lane.b32.xlu1 %v6727_v8, %s5158_s26  ;;  %v3539_v8 = vsel %vm715_vm0, %v6780_v28, %v3236_v16 }
 0x3ea   : > { %2599 = vrot.lane.b32.xlu0 %v6730_v9, %s5158_s26 }
 0x3eb   : > { %v3334_v63 = vpop.permute.xlu1 %3333 }
 0x3ec   : > { %v3332_v29 = vpop.permute.xlu0 %3331  ;;  %v3572_v20 = vsel %vm748_vm1, %v3540_v55, %v3334_v63 }
 0x3ed   : > { %2477 = vrot.lane.b32.xlu1 %v7365_v12, %s5157_s21  ;;  %v3571_v31 = vsel %vm748_vm1, %v3539_v8, %v3332_v29  ;;  %v7407_v29 = vld [vmem:[%s5203_s19 + $0xb0] sm:$0xff] }
 0x3ee   : > { %2475 = vrot.lane.b32.xlu0 %v7368_v52, %s5157_s21 }
 0x3ef   : > { %v3462_v9 = vpop.permute.xlu1 %3461 }
 0x3f0   : > { %v3460_v19 = vpop.permute.xlu0 %3459  ;;  %v3604_v45 = vsel %vm781_vm2, %v3572_v20, %v3462_v9  ;;  %v7411_v9 = vld [vmem:[%s5203_s19 + $0xa8] sm:$0xff] }
 0x3f1   : > { %v3603_v59 = vsel %vm781_vm2, %v3571_v31, %v3460_v19  ;;  %2605 = vrot.lane.b32.xlu1 %v6737_v49, %s5158_s26  ;;  %v7427_v20 = vld [vmem:[%s5203_s19 + $0xc8] sm:$0xff] }
 0x3f2   : > { %2603 = vrot.lane.b32.xlu0 %v6740_v36, %s5158_s26  ;;  %5019 = vmatprep.mubr.msk.f32.mxu1 %vm822_vm3, %v3603_v59 }
 0x3f3   : > { %v3242_v28 = vpop.permute.xlu1 %3241  ;;  %5020 = vmatmul.mubr.msk.f32.gmra.mrb[48].mxu1 %vm822_vm3, %v3604_v45  ;;  %v7430_v45 = vld [vmem:[%s5203_s19 + $0xc0] sm:$0xff] }
 0x3f4   : > { %v3240_v48 = vpop.permute.xlu0 %3239  ;;  %v3542_v51 = vsel %vm715_vm0, %v6787_v57, %v3242_v28 }
 0x3f5   : > { %2481 = vrot.lane.b32.xlu1 %v7389_v14, %s5157_s21  ;;  %v3541_v16 = vsel %vm715_vm0, %v6790_v23, %v3240_v48 }
 0x3f6   : > { %2479 = vrot.lane.b32.xlu0 %v7392_v3, %s5157_s21 }
 0x3f7   : > { %v3338_v49 = vpop.permute.xlu1 %3337 }
 0x3f8   : > { %v3336_v36 = vpop.permute.xlu0 %3335 }
 0x3f9   : > { %2609 = vrot.lane.b32.xlu1 %v6747_v44, %s5158_s26  ;;  %v3573_v55 = vsel %vm748_vm1, %v3541_v16, %v3336_v36  ;;  %v3574_v44 = vsel %vm748_vm1, %v3542_v51, %v3338_v49  ;;  %v5119_v16 = vld [vmem:[%s5203_s19 + $0xc9] sm:$0xff] }
 0x3fa   : > { %2607 = vrot.lane.b32.xlu0 %v6750_v35, %s5158_s26 }
 0x3fb   : > { %v3466_v63 = vpop.permute.xlu1 %3465 }
 0x3fc   : > { %v3464_v8 = vpop.permute.xlu0 %3463  ;;  %v3606_v35 = vsel %vm781_vm2, %v3574_v44, %v3466_v63  ;;  %v5120_v63 = vld [vmem:[%s5203_s19 + $0xc1] sm:$0xff]  ;;  %v7454_v44 = vld [vmem:[%s5203_s19 + $0xd8] sm:$0xff] }
 0x3fd   : > { %v3605_v57 = vsel %vm781_vm2, %v3573_v55, %v3464_v8  ;;  %2485 = vrot.lane.b32.xlu1 %v7407_v29, %s5157_s21  ;;  %v7451_v55 = vld [vmem:[%s5203_s19 + $0xe0] sm:$0xff] }
 0x3fe   : > { %2483 = vrot.lane.b32.xlu0 %v7411_v9, %s5157_s21  ;;  %5022 = vmatprep.mubr.msk.f32.mxu1 %vm822_vm3, %v3605_v57 }
 0x3ff   : > { %v3246_v23 = vpop.permute.xlu1 %3245  ;;  %5023 = vmatmul.mubr.msk.f32.gmra.mrb[50].mxu1 %vm822_vm3, %v3606_v35 }
 0x400   : > { %v3244_v31 = vpop.permute.xlu0 %3243  ;;  %v3544_v28 = vsel %vm715_vm0, %v6797_v61, %v3246_v23  ;;  %v5121_v23 = vld [vmem:[%s5203_s19 + $0xe1] sm:$0xff] }
 0x401   : > { %2613 = vrot.lane.b32.xlu1 %v6757_v39, %s5158_s26  ;;  %v3543_v39 = vsel %vm715_vm0, %v6800_v56, %v3244_v31  ;;  %v5122_v31 = vld [vmem:[%s5203_s19 + $0x129] sm:$0xff] }
 0x402   : > { %2611 = vrot.lane.b32.xlu0 %v6760_v40, %s5158_s26 }
 0x403   : > { %v3342_v19 = vpop.permute.xlu1 %3341 }
 0x404   : > { %v3340_v59 = vpop.permute.xlu0 %3339  ;;  %v3576_v36 = vsel %vm748_vm1, %v3544_v28, %v3342_v19  ;;  %v5124_v28 = vld [vmem:[%s5203_s19 + $0x121] sm:$0xff] }
 0x405   : > { %2489 = vrot.lane.b32.xlu1 %v7427_v20, %s5157_s21  ;;  %v3575_v48 = vsel %vm748_vm1, %v3543_v39, %v3340_v59  ;;  %v5123_v59 = vld [vmem:[%s5203_s19 + $0xd9] sm:$0xff] }
 0x406   : > { %2487 = vrot.lane.b32.xlu0 %v7430_v45, %s5157_s21 }
 0x407   : > { %v3470_v40 = vpop.permute.xlu1 %3469 }
 0x408   : > { %v3468_v49 = vpop.permute.xlu0 %3467  ;;  %v3608_v61 = vsel %vm781_vm2, %v3576_v36, %v3470_v40 }
 0x409   : > { %v3607_v51 = vsel %vm781_vm2, %v3575_v48, %v3468_v49  ;;  %2617 = vrot.lane.b32.xlu1 %v5119_v16, %s5158_s26  ;;  %v7469_v48 = vld [vmem:[%s5203_s19 + $0xf8] sm:$0xff] }
 0x40a   : > { %2615 = vrot.lane.b32.xlu0 %v5120_v63, %s5158_s26  ;;  %5025 = vmatprep.mubr.msk.f32.mxu1 %vm822_vm3, %v3607_v51  ;;  %v7473_v51 = vld [vmem:[%s5203_s19 + $0xf0] sm:$0xff] }
 0x40b   : > { %v3250_v56 = vpop.permute.xlu1 %3249  ;;  %5026 = vmatmul.mubr.msk.f32.gmra.mrb[52].mxu1 %vm822_vm3, %v3608_v61 }
 0x40c   : > { %v3248_v8 = vpop.permute.xlu0 %3247  ;;  %v3546_v19 = vsel %vm715_vm0, %v5122_v31, %v3250_v56 }
 0x40d   : > { %2493 = vrot.lane.b32.xlu1 %v7451_v55, %s5157_s21  ;;  %v3545_v39 = vsel %vm715_vm0, %v5124_v28, %v3248_v8 }
 0x40e   : > { %2491 = vrot.lane.b32.xlu0 %v7454_v44, %s5157_s21 }
 0x40f   : > { %v3346_v57 = vpop.permute.xlu1 %3345 }
 0x410   : > { %v3344_v35 = vpop.permute.xlu0 %3343  ;;  %v3578_v16 = vsel %vm748_vm1, %v3546_v19, %v3346_v57  ;;  %v5125_v57 = vld [vmem:[%s5203_s19 + $0xf9] sm:$0xff]  ;;  %v7489_v19 = vld [vmem:[%s5203_s19 + $0x110] sm:$0xff] }
 0x411   : > { %2621 = vrot.lane.b32.xlu1 %v5121_v23, %s5158_s26  ;;  %v3577_v49 = vsel %vm748_vm1, %v3545_v39, %v3344_v35  ;;  %v5126_v35 = vld [vmem:[%s5203_s19 + $0xf1] sm:$0xff]  ;;  %8319 = vst [vmem:[#allocation45_spill] sm:$0xff] %v7489_v19  ;;  %v7492_v39 = vld [vmem:[%s5203_s19 + $0x108] sm:$0xff] }
 0x412   : > { %2619 = vrot.lane.b32.xlu0 %v5123_v59, %s5158_s26 }
 0x413   : > { %v3474_v40 = vpop.permute.xlu1 %3473 }
 0x414   : > { %v3472_v36 = vpop.permute.xlu0 %3471  ;;  %v3610_v63 = vsel %vm781_vm2, %v3578_v16, %v3474_v40  ;;  %v5127_v40 = vld [vmem:[%s5203_s19 + $0x141] sm:$0xff] }
 0x415   : > { %v3609_v61 = vsel %vm781_vm2, %v3577_v49, %v3472_v36  ;;  %2497 = vrot.lane.b32.xlu1 %v7469_v48, %s5157_s21  ;;  %v5128_v36 = vld [vmem:[%s5203_s19 + $0x139] sm:$0xff] }
 0x416   : > { %2495 = vrot.lane.b32.xlu0 %v7473_v51, %s5157_s21  ;;  %5028 = vmatprep.mubr.msk.f32.mxu1 %vm822_vm3, %v3609_v61 }
 0x417   : > { %v3254_v56 = vpop.permute.xlu1 %3253  ;;  %5029 = vmatmul.mubr.msk.f32.gmra.mrb[54].mxu1 %vm822_vm3, %v3610_v63 }
 0x418   : > { %v3252_v8 = vpop.permute.xlu0 %3251  ;;  %v3548_v49 = vsel %vm715_vm0, %v5127_v40, %v3254_v56 }
 0x419   : > { %2625 = vrot.lane.b32.xlu1 %v5125_v57, %s5158_s26  ;;  %v3547_v16 = vsel %vm715_vm0, %v5128_v36, %v3252_v8 }
 0x41a   : > { %2623 = vrot.lane.b32.xlu0 %v5126_v35, %s5158_s26 }
 0x41b   : > { %v3350_v23 = vpop.permute.xlu1 %3349 }
 0x41c   : > { %v3348_v59 = vpop.permute.xlu0 %3347  ;;  %v3580_v35 = vsel %vm748_vm1, %v3548_v49, %v3350_v23  ;;  %v7516_v49 = vld [vmem:[%s5203_s19 + $0x120] sm:$0xff] }
 0x41d   : > { %2501 = vrot.lane.b32.xlu1 %v7489_v19, %s5157_s21  ;;  %v3579_v63 = vsel %vm748_vm1, %v3547_v16, %v3348_v59  ;;  %v5129_v19 = vld [vmem:[%s5203_s19 + $0x111] sm:$0xff]  ;;  %v7513_v59 = vld [vmem:[%s5203_s19 + $0x128] sm:$0xff] }
 0x41e   : > { %2499 = vrot.lane.b32.xlu0 %v7492_v39, %s5157_s21  ;;  %8320 = vst [vmem:[#allocation29_spill] sm:$0xff] %v7513_v59 }
 0x41f   : > { %v3478_v61 = vpop.permute.xlu1 %3477 }
 0x420   : > { %v3476_v57 = vpop.permute.xlu0 %3475  ;;  %v3612_v56 = vsel %vm781_vm2, %v3580_v35, %v3478_v61 }
 0x421   : > { %v3611_v42 = vsel %vm781_vm2, %v3579_v63, %v3476_v57  ;;  %2629 = vrot.lane.b32.xlu1 %v5129_v19, %s5158_s26  ;;  %v7529_v63 = vld [vmem:[%s5203_s19 + $0x140] sm:$0xff] }
 0x422   : > { %2627 = vrot.lane.b32.xlu0 %v5130_v5, %s5158_s26  ;;  %5031 = vmatprep.mubr.msk.f32.mxu1 %vm822_vm3, %v3611_v42 }
 0x423   : > { %v3258_v8 = vpop.permute.xlu1 %3257  ;;  %5032 = vmatmul.mubr.msk.f32.gmra.mrb[56].mxu1 %vm822_vm3, %v3612_v56  ;;  %v7533_v56 = vld [vmem:[%s5203_s19 + $0x138] sm:$0xff] }
 0x424   : > { %v3256_v23 = vpop.permute.xlu0 %3255  ;;  %v3550_v42 = vsel %vm715_vm0, %v7197_v24, %v3258_v8 }
 0x425   : > { %2505 = vrot.lane.b32.xlu1 %v7513_v59, %s5157_s21  ;;  %v3549_v16 = vsel %vm715_vm0, %v7202_v60, %v3256_v23 }
 0x426   : > { %2503 = vrot.lane.b32.xlu0 %v7516_v49, %s5157_s21 }
 0x427   : > { %v3354_v19 = vpop.permute.xlu1 %3353 }
 0x428   : > { %v3352_v5 = vpop.permute.xlu0 %3351 }
 0x429   : > { %2633 = vrot.lane.b32.xlu1 %v5122_v31, %s5158_s26  ;;  %v3581_v57 = vsel %vm748_vm1, %v3549_v16, %v3352_v5  ;;  %v3582_v31 = vsel %vm748_vm1, %v3550_v42, %v3354_v19  ;;  %v7547_v19 = vld [vmem:[%s5203_s19 + $0x158] sm:$0xff]  ;;  %v7550_v42 = vld [vmem:[%s5203_s19 + $0x150] sm:$0xff] }
 0x42a   : > { %2631 = vrot.lane.b32.xlu0 %v5124_v28, %s5158_s26 }
 0x42b   : > { %v3482_v61 = vpop.permute.xlu1 %3481 }
 0x42c   : > { %v3480_v35 = vpop.permute.xlu0 %3479  ;;  %v3614_v28 = vsel %vm781_vm2, %v3582_v31, %v3482_v61 }
 0x42d   : > { %v3613_v59 = vsel %vm781_vm2, %v3581_v57, %v3480_v35  ;;  %2509 = vrot.lane.b32.xlu1 %v7529_v63, %s5157_s21 }
 0x42e   : > { %2507 = vrot.lane.b32.xlu0 %v7533_v56, %s5157_s21  ;;  %5034 = vmatprep.mubr.msk.f32.mxu1 %vm822_vm3, %v3613_v59 }
 0x42f   : > { %v3262_v8 = vpop.permute.xlu1 %3261  ;;  %5035 = vmatmul.mubr.msk.f32.gmra.mrb[58].mxu1 %vm822_vm3, %v3614_v28  ;;  %v4404_v28 = vld [vmem:[%s5203_s19 + $0x18] sm:$0xff] }
 0x430   : > { %v3260_v23 = vpop.permute.xlu0 %3259  ;;  %v3552_v57 = vsel %vm715_vm0, %v7223_v38, %v3262_v8  ;;  %v7576_v8 = vld [vmem:[%s5203_s19 + $0x170] sm:$0xff] }
 0x431   : > { %2637 = vrot.lane.b32.xlu1 %v5127_v40, %s5158_s26  ;;  %v3551_v59 = vsel %vm715_vm0, %v7228_v50, %v3260_v23 }
 0x432   : > { %2635 = vrot.lane.b32.xlu0 %v5128_v36, %s5158_s26 }
 0x433   : > { %v3358_v5 = vpop.permute.xlu1 %3357 }
 0x434   : > { %v3356_v16 = vpop.permute.xlu0 %3355  ;;  %v3584_v23 = vsel %vm748_vm1, %v3552_v57, %v3358_v5  ;;  %v4405_v5 = vld [vmem:[%s5203_s19 + $0x20] sm:$0xff] }
 0x435   : > { %2513 = vrot.lane.b32.xlu1 %v7547_v19, %s5157_s21  ;;  %v3583_v40 = vsel %vm748_vm1, %v3551_v59, %v3356_v16 }
 0x436   : > { %2511 = vrot.lane.b32.xlu0 %v7550_v42, %s5157_s21 }
 0x437   : > { %v2464_v61 = vpop.permute.xlu1 %2463 }
 0x438   : > { %v3484_v36 = vpop.permute.xlu0 %3483 }
 0x439   : > { %v3615_v35 = vsel %vm781_vm2, %v3583_v40, %v3484_v36  ;;  %2641 = vrot.lane.b32.xlu1 %v7197_v24, %s5158_s26  ;;  %v2687_v40 = vsel %vm715_vm0, %v4404_v28, %v7054_v34  ;;  %v2688_v34 = vsel %vm715_vm0, %v4405_v5, %v7052_v0  ;;  %v7605_v0 = vld [vmem:[%s5203_s19 + $0x188] sm:$0xff] }
 0x43a   : > { %2639 = vrot.lane.b32.xlu0 %v7202_v60, %s5158_s26  ;;  %5037 = vmatprep.mubr.msk.f32.mxu1 %vm822_vm3, %v3615_v35  ;;  %v7581_v35 = vld [vmem:[%s5203_s19 + $0x168] sm:$0xff]  ;;  %v2719_v57 = vsel %vm748_vm1, %v2687_v40, %v2464_v61 }
 0x43b   : > { %v2466_v31 = vpop.permute.xlu1 %2465 }
 0x43c   : > { %v3486_v16 = vpop.permute.xlu0 %3485 }
 0x43d   : > { %v3616_v59 = vsel %vm781_vm2, %v3584_v23, %v3486_v16  ;;  %2389 = vrot.lane.b32.xlu1 %v7197_v24, %s5156_s20 }
 0x43e   : > { %2387 = vrot.lane.b32.xlu0 %v7202_v60, %s5156_s20  ;;  %5038 = vmatmul.mubr.msk.f32.gmra.mrb[60].mxu1 %vm822_vm3, %v3616_v59  ;;  %v2720_v60 = vsel %vm748_vm1, %v2688_v34, %v2466_v31 }
 0x43f   : > { %v3264_v36 = vpop.permute.xlu1 %3263 }
 0x440   : > { %v2592_v23 = vpop.permute.xlu0 %2591  ;;  %v3553_v31 = vsel %vm715_vm0, %v7254_v1, %v3264_v36 }
 0x441   : > { %v2751_v16 = vsel %vm781_vm2, %v2719_v57, %v2592_v23  ;;  %2517 = vrot.lane.b32.xlu1 %v7576_v8, %s5157_s21  ;;  %v7610_v57 = vld [vmem:[%s5203_s19 + $0x180] sm:$0xff] }
 0x442   : > { %2515 = vrot.lane.b32.xlu0 %v7581_v35, %s5157_s21  ;;  %4943 = vmatprep.mubr.msk.f32.mxu0 %vm822_vm3, %v2751_v16 }
 0x443   : > { %v3266_v24 = vpop.permute.xlu1 %3265 }
 0x444   : > { %v2594_v61 = vpop.permute.xlu0 %2593  ;;  %v3554_v34 = vsel %vm715_vm0, %v7249_v46, %v3266_v24  ;;  %v2689_v24 = vsel %vm715_vm0, %v7274_v17, %v7064_v18  ;;  %v4499_v18 = vld [vmem:[%s5203_s19 + $0x1a0] sm:$0xff] }
 0x445   : > { %v2752_v28 = vsel %vm781_vm2, %v2720_v60, %v2594_v61  ;;  %2645 = vrot.lane.b32.xlu1 %v7223_v38, %s5158_s26 }
 0x446   : > { %2643 = vrot.lane.b32.xlu0 %v7228_v50, %s5158_s26  ;;  %4944 = vmatmul.mubr.msk.f32.vlgmr.msra.gmra.mrb[32].mxu0 %vm822_vm3, %v2752_v28 }
 0x447   : > { %v3362_v59 = vpop.permute.xlu1 %3361 }
 0x448   : > { %v3360_v40 = vpop.permute.xlu0 %3359 }
 0x449   : > { %2393 = vrot.lane.b32.xlu1 %v7223_v38, %s5156_s20  ;;  %v3585_v23 = vsel %vm748_vm1, %v3553_v31, %v3360_v40 }
 0x44a   : > { %2391 = vrot.lane.b32.xlu0 %v7228_v50, %s5156_s20  ;;  %v3586_v50 = vsel %vm748_vm1, %v3554_v34, %v3362_v59  ;;  %v2690_v59 = vsel %vm715_vm0, %v7281_v41, %v7061_v13  ;;  %v4498_v13 = vld [vmem:[%s5203_s19 + $0x198] sm:$0xff] }
 0x44b   : > { %v2468_v5 = vpop.permute.xlu1 %2467 }
 0x44c   : > { %v3488_v16 = vpop.permute.xlu0 %3487  ;;  %v2721_v40 = vsel %vm748_vm1, %v2689_v24, %v2468_v5 }
 0x44d   : > { %v3617_v60 = vsel %vm781_vm2, %v3585_v23, %v3488_v16  ;;  %2521 = vrot.lane.b32.xlu1 %v7605_v0, %s5157_s21 }
 0x44e   : > { %2519 = vrot.lane.b32.xlu0 %v7610_v57, %s5157_s21  ;;  %5040 = vmatprep.mubr.msk.f32.mxu1 %vm822_vm3, %v3617_v60 }
 0x44f   : > { %v2470_v38 = vpop.permute.xlu1 %2469 }
 0x450   : > { %v3490_v36 = vpop.permute.xlu0 %3489  ;;  %v2722_v23 = vsel %vm748_vm1, %v2690_v59, %v2470_v38 }
 0x451   : > { %v3618_v61 = vsel %vm781_vm2, %v3586_v50, %v3490_v36  ;;  %2649 = vrot.lane.b32.xlu1 %v7249_v46, %s5158_s26 }
 0x452   : > { %2647 = vrot.lane.b32.xlu0 %v7254_v1, %s5158_s26  ;;  %5041 = vmatmul.mubr.msk.f32.gmra.mrb[62].mxu1 %vm822_vm3, %v3618_v61 }
 0x453   : > { %v2598_v28 = vpop.permute.xlu1 %2597 }
 0x454   : > { %v2596_v31 = vpop.permute.xlu0 %2595  ;;  %v2754_v34 = vsel %vm781_vm2, %v2722_v23, %v2598_v28 }
 0x455   : > { %v2753_v16 = vsel %vm781_vm2, %v2721_v40, %v2596_v31  ;;  %2397 = vrot.lane.b32.xlu1 %v7249_v46, %s5156_s20  ;;  %v2691_v46 = vsel %vm715_vm0, %v7318_v22, %v7070_v6  ;;  %v2693_v22 = vsel %vm715_vm0, %v7349_v43, %v7076_v26  ;;  %v7678_v26 = vld [vmem:[%s8022_s2] ss:$0 sm:$0xff] }
 0x456   : > { %2395 = vrot.lane.b32.xlu0 %v7254_v1, %s5156_s20  ;;  %4946 = vmatprep.mubr.msk.f32.mxu0 %vm822_vm3, %v2753_v16  ;;  %v2692_v1 = vsel %vm715_vm0, %v7331_v53, %v7068_v33 }
 0x457   : > { %v2474_v17 = vpop.permute.xlu1 %2473  ;;  %4947 = vmatmul.mubr.msk.f32.gmra.mrb[34].mxu0 %vm822_vm3, %v2754_v34  ;;  %v2695_v34 = vsel %vm715_vm0, %v7368_v52, %v7086_v10 }
 0x458   : > { %v2472_v41 = vpop.permute.xlu0 %2471  ;;  %v2724_v50 = vsel %vm748_vm1, %v2692_v1, %v2474_v17  ;;  %v2696_v17 = vsel %vm715_vm0, %v7365_v12, %v7083_v2  ;;  %v2697_v2 = vsel %vm715_vm0, %v7392_v3, %v7092_v62 }
 0x459   : > { %2525 = vrot.lane.b32.xlu1 %v4499_v18, %s5157_s21  ;;  %v2723_v60 = vsel %vm748_vm1, %v2691_v46, %v2472_v41 }
 0x45a   : > { %2523 = vrot.lane.b32.xlu0 %v4498_v13, %s5157_s21 }
 0x45b   : > { %v2602_v5 = vpop.permute.xlu1 %2601 }
 0x45c   : > { %v2600_v38 = vpop.permute.xlu0 %2599  ;;  %v2756_v61 = vsel %vm781_vm2, %v2724_v50, %v2602_v5 }
 0x45d   : > { %v2755_v36 = vsel %vm781_vm2, %v2723_v60, %v2600_v38  ;;  %2653 = vrot.lane.b32.xlu1 %v7303_v21, %s5158_s26  ;;  %v2694_v21 = vsel %vm715_vm0, %v7345_v27, %v7074_v7 }
 0x45e   : > { %2651 = vrot.lane.b32.xlu0 %v7306_v15, %s5158_s26  ;;  %4949 = vmatprep.mubr.msk.f32.mxu0 %vm822_vm3, %v2755_v36  ;;  %v2698_v36 = vsel %vm715_vm0, %v7389_v14, %v7090_v37  ;;  %v2699_v14 = vsel %vm715_vm0, %v7411_v9, %v7098_v30 }
 0x45f   : > { %v2478_v6 = vpop.permute.xlu1 %2477  ;;  %4950 = vmatmul.mubr.msk.f32.gmra.mrb[36].mxu0 %vm822_vm3, %v2756_v61 }
 0x460   : > { %v2476_v33 = vpop.permute.xlu0 %2475  ;;  %v2726_v15 = vsel %vm748_vm1, %v2694_v21, %v2478_v6 }
 0x461   : > { %v2725_v24 = vsel %vm748_vm1, %v2693_v22, %v2476_v33 }
 0x463   : > { %v2606_v53 = vpop.permute.xlu1 %2605 }
 0x464   : > { %v2604_v28 = vpop.permute.xlu0 %2603  ;;  %v2758_v40 = vsel %vm781_vm2, %v2726_v15, %v2606_v53 }
 0x465   : > { %v2757_v59 = vsel %vm781_vm2, %v2725_v24, %v2604_v28  ;;  %v2700_v24 = vsel %vm715_vm0, %v7407_v29, %v7096_v25 }
 0x466   : > { %4952 = vmatprep.mubr.msk.f32.mxu0 %vm822_vm3, %v2757_v59  ;;  %v4997_v31 = vpop.f32.mrb[32].mxu1 }
 0x467   : > { %v3790_v43 = vadd.f32 %v7678_v26, %v4997_v31  ;;  %v2482_v7 = vpop.permute.xlu1 %2481  ;;  %4953 = vmatmul.mubr.msk.f32.gmra.mrb[38].mxu0 %vm822_vm3, %v2758_v40  ;;  %v3784_v27 = vpop.f32.mrb[33].mxu1 }
 0x468   : > { %v3785_v23 = vadd.f32 %v7678_v26, %v3784_v27  ;;  %v2480_v16 = vpop.permute.xlu0 %2479  ;;  %v2728_v46 = vsel %vm748_vm1, %v2696_v17, %v2482_v7  ;;  %v2701_v27 = vsel %vm715_vm0, %v7430_v45, %v7108_v32 }
 0x469   : > { %3977 = vrot.lane.b32.xlu1 %v3790_v43, %s5156_s20  ;;  %v2727_v13 = vsel %vm748_vm1, %v2695_v34, %v2480_v16  ;;  %v2702_v16 = vsel %vm715_vm0, %v7427_v20, %v7105_v11  ;;  %v2703_v11 = vsel %vm715_vm0, %v7454_v44, %v7114_v54 }
 0x46a   : > { %3975 = vrot.lane.b32.xlu0 %v3785_v23, %s5156_s20 }
 0x46b   : > { %v2610_v18 = vpop.permute.xlu1 %2609 }
 0x46c   : > { %v2608_v41 = vpop.permute.xlu0 %2607  ;;  %v2760_v1 = vsel %vm781_vm2, %v2728_v46, %v2610_v18 }
 0x46d   : > { %v2759_v5 = vsel %vm781_vm2, %v2727_v13, %v2608_v41 }
 0x46e   : > { %4955 = vmatprep.mubr.msk.f32.mxu0 %vm822_vm3, %v2759_v5 }
 0x46f   : > { %v2486_v60 = vpop.permute.xlu1 %2485  ;;  %4956 = vmatmul.mubr.msk.f32.gmra.mrb[40].mxu0 %vm822_vm3, %v2760_v1 }
 0x470   : > { %v2484_v10 = vpop.permute.xlu0 %2483  ;;  %v2730_v22 = vsel %vm748_vm1, %v2698_v36, %v2486_v60  ;;  %v2704_v60 = vsel %vm715_vm0, %v7451_v55, %v7112_v47  ;;  %v2705_v55 = vsel %vm715_vm0, %v7473_v51, %v7120_v58  ;;  %v2706_v36 = vsel %vm715_vm0, %v7469_v48, %v7118_v4 }
 0x471   : > { %v2729_v61 = vsel %vm748_vm1, %v2697_v2, %v2484_v10 }
 0x472   : > { %v5000_v52 = vpop.f32.mrb[34].mxu1 }
 0x473   : > { %v3800_v12 = vadd.f32 %v7678_v26, %v5000_v52  ;;  %v2614_v38 = vpop.permute.xlu1 %2613  ;;  %v3794_v50 = vpop.f32.mrb[35].mxu1 }
 0x474   : > { %v3795_v6 = vadd.f32 %v7678_v26, %v3794_v50  ;;  %v2612_v33 = vpop.permute.xlu0 %2611  ;;  %v2762_v62 = vsel %vm781_vm2, %v2730_v22, %v2614_v38 }
 0x475   : > { %v2761_v53 = vsel %vm781_vm2, %v2729_v61, %v2612_v33  ;;  %3981 = vrot.lane.b32.xlu1 %v3800_v12, %s5156_s20 }
 0x476   : > { %3979 = vrot.lane.b32.xlu0 %v3795_v6, %s5156_s20  ;;  %4958 = vmatprep.mubr.msk.f32.mxu0 %vm822_vm3, %v2761_v53 }
 0x477   : > { %v2490_v3 = vpop.permute.xlu1 %2489  ;;  %4959 = vmatmul.mubr.msk.f32.gmra.mrb[42].mxu0 %vm822_vm3, %v2762_v62 }
 0x478   : > { %v2488_v37 = vpop.permute.xlu0 %2487  ;;  %v2732_v59 = vsel %vm748_vm1, %v2700_v24, %v2490_v3  ;;  %v8322_v24 = vld [vmem:[#allocation72_spill] sm:$0xff] }
 0x479   : > { %v2731_v28 = vsel %vm748_vm1, %v2699_v14, %v2488_v37  ;;  %v8321_v37 = vld [vmem:[#allocation73_spill] sm:$0xff] }
 0x47a   : > { %v2707_v14 = vsel %vm715_vm0, %v7492_v39, %v8321_v37 }
 0x47b   : > { %v2618_v21 = vpop.permute.xlu1 %2617 }
 0x47c   : > { %v2616_v15 = vpop.permute.xlu0 %2615  ;;  %v2764_v31 = vsel %vm781_vm2, %v2732_v59, %v2618_v21 }
 0x47d   : > { %v2763_v40 = vsel %vm781_vm2, %v2731_v28, %v2616_v15  ;;  %v8323_v28 = vld [vmem:[#allocation45_spill] sm:$0xff] }
 0x47e   : > { %4961 = vmatprep.mubr.msk.f32.mxu0 %vm822_vm3, %v2763_v40  ;;  %v5003_v43 = vpop.f32.mrb[36].mxu1  ;;  %v2708_v15 = vsel %vm715_vm0, %v8323_v28, %v8322_v24 }
 0x47f   : > { %v3810_v7 = vadd.f32 %v7678_v26, %v5003_v43  ;;  %v2494_v30 = vpop.permute.xlu1 %2493  ;;  %4962 = vmatmul.mubr.msk.f32.gmra.mrb[44].mxu0 %vm822_vm3, %v2764_v31  ;;  %v3804_v9 = vpop.f32.mrb[37].mxu1 }
 0x480   : > { %v3805_v25 = vadd.f32 %v7678_v26, %v3804_v9  ;;  %v2492_v29 = vpop.permute.xlu0 %2491  ;;  %v2734_v17 = vsel %vm748_vm1, %v2702_v16, %v2494_v30 }
 0x481   : > { %3985 = vrot.lane.b32.xlu1 %v3810_v7, %s5156_s20  ;;  %v2733_v34 = vsel %vm748_vm1, %v2701_v27, %v2492_v29 }
 0x482   : > { %3983 = vrot.lane.b32.xlu0 %v3805_v25, %s5156_s20  ;;  %v8324_v25 = vld [vmem:[#allocation7_spill] sm:$0xff] }
 0x483   : > { %v2622_v23 = vpop.permute.xlu1 %2621  ;;  %v2709_v29 = vsel %vm715_vm0, %v7516_v49, %v8324_v25 }
 0x484   : > { %v2620_v18 = vpop.permute.xlu0 %2619  ;;  %v2766_v41 = vsel %vm781_vm2, %v2734_v17, %v2622_v23 }
 0x485   : > { %v2765_v13 = vsel %vm781_vm2, %v2733_v34, %v2620_v18  ;;  %v8325_v34 = vld [vmem:[#allocation6_spill] sm:$0xff]  ;;  %v8326_v18 = vld [vmem:[#allocation29_spill] sm:$0xff] }
 0x486   : > { %4964 = vmatprep.mubr.msk.f32.mxu0 %vm822_vm3, %v2765_v13  ;;  %v2710_v17 = vsel %vm715_vm0, %v8326_v18, %v8325_v34 }
 0x487   : > { %v2498_v46 = vpop.permute.xlu1 %2497  ;;  %4965 = vmatmul.mubr.msk.f32.gmra.mrb[46].mxu0 %vm822_vm3, %v2766_v41 }
 0x488   : > { %v2496_v32 = vpop.permute.xlu0 %2495  ;;  %v2736_v12 = vsel %vm748_vm1, %v2704_v60, %v2498_v46 }
 0x489   : > { %v2735_v10 = vsel %vm748_vm1, %v2703_v11, %v2496_v32 }
 0x48a   : > { %v5006_v45 = vpop.f32.mrb[38].mxu1 }
 0x48b   : > { %v3820_v20 = vadd.f32 %v7678_v26, %v5006_v45  ;;  %v2626_v5 = vpop.permute.xlu1 %2625  ;;  %v3814_v1 = vpop.f32.mrb[39].mxu1 }
 0x48c   : > { %v3815_v52 = vadd.f32 %v7678_v26, %v3814_v1  ;;  %v2624_v2 = vpop.permute.xlu0 %2623  ;;  %v2768_v54 = vsel %vm781_vm2, %v2736_v12, %v2626_v5  ;;  %v8327_v5 = vld [vmem:[#allocation28_spill] sm:$0xff] }
 0x48d   : > { %v2767_v38 = vsel %vm781_vm2, %v2735_v10, %v2624_v2  ;;  %3989 = vrot.lane.b32.xlu1 %v3820_v20, %s5156_s20  ;;  %v2711_v1 = vsel %vm715_vm0, %v7533_v56, %v8327_v5  ;;  %v8328_v10 = vld [vmem:[#allocation44_spill] sm:$0xff] }
 0x48e   : > { %3987 = vrot.lane.b32.xlu0 %v3815_v52, %s5156_s20  ;;  %4967 = vmatprep.mubr.msk.f32.mxu0 %vm822_vm3, %v2767_v38  ;;  %v2712_v52 = vsel %vm715_vm0, %v7529_v63, %v8328_v10 }
 0x48f   : > { %v2502_v44 = vpop.permute.xlu1 %2501  ;;  %4968 = vmatmul.mubr.msk.f32.gmra.mrb[48].mxu0 %vm822_vm3, %v2768_v54 }
 0x490   : > { %v2500_v47 = vpop.permute.xlu0 %2499  ;;  %v2738_v33 = vsel %vm748_vm1, %v2706_v36, %v2502_v44 }
 0x491   : > { %v2737_v61 = vsel %vm748_vm1, %v2705_v55, %v2500_v47 }
 0x493   : > { %v2630_v50 = vpop.permute.xlu1 %2629 }
 0x494   : > { %v2628_v6 = vpop.permute.xlu0 %2627  ;;  %v2770_v53 = vsel %vm781_vm2, %v2738_v33, %v2630_v50 }
 0x495   : > { %v2769_v22 = vsel %vm781_vm2, %v2737_v61, %v2628_v6 }
 0x496   : > { %4970 = vmatprep.mubr.msk.f32.mxu0 %vm822_vm3, %v2769_v22  ;;  %v5009_v62 = vpop.f32.mrb[40].mxu1 }
 0x497   : > { %v3830_v3 = vadd.f32 %v7678_v26, %v5009_v62  ;;  %v2506_v58 = vpop.permute.xlu1 %2505  ;;  %4971 = vmatmul.mubr.msk.f32.gmra.mrb[50].mxu0 %vm822_vm3, %v2770_v53  ;;  %v3824_v51 = vpop.f32.mrb[41].mxu1 }
 0x498   : > { %v3825_v4 = vadd.f32 %v7678_v26, %v3824_v51  ;;  %v2504_v48 = vpop.permute.xlu0 %2503  ;;  %v2740_v31 = vsel %vm748_vm1, %v2708_v15, %v2506_v58 }
 0x499   : > { %3993 = vrot.lane.b32.xlu1 %v3830_v3, %s5156_s20  ;;  %v2739_v59 = vsel %vm748_vm1, %v2707_v14, %v2504_v48 }
 0x49a   : > { %3991 = vrot.lane.b32.xlu0 %v3825_v4, %s5156_s20 }
 0x49b   : > { %v2634_v21 = vpop.permute.xlu1 %2633 }
 0x49c   : > { %v2632_v40 = vpop.permute.xlu0 %2631  ;;  %v2772_v7 = vsel %vm781_vm2, %v2740_v31, %v2634_v21 }
 0x49d   : > { %v2771_v43 = vsel %vm781_vm2, %v2739_v59, %v2632_v40 }
 0x49e   : > { %4973 = vmatprep.mubr.msk.f32.mxu0 %vm822_vm3, %v2771_v43 }
 0x49f   : > { %v2510_v30 = vpop.permute.xlu1 %2509  ;;  %4974 = vmatmul.mubr.msk.f32.gmra.mrb[52].mxu0 %vm822_vm3, %v2772_v7 }
 0x4a0   : > { %v2508_v39 = vpop.permute.xlu0 %2507  ;;  %v2742_v32 = vsel %vm748_vm1, %v2710_v17, %v2510_v30 }
 0x4a1   : > { %v2741_v13 = vsel %vm748_vm1, %v2709_v29, %v2508_v39 }
 0x4a2   : > { %v5012_v9 = vpop.f32.mrb[42].mxu1 }
 0x4a3   : > { %v3840_v27 = vadd.f32 %v7678_v26, %v5012_v9  ;;  %v2638_v23 = vpop.permute.xlu1 %2637  ;;  %v3834_v16 = vpop.f32.mrb[43].mxu1 }
 0x4a4   : > { %v3835_v41 = vadd.f32 %v7678_v26, %v3834_v16  ;;  %v2636_v46 = vpop.permute.xlu0 %2635  ;;  %v2774_v49 = vsel %vm781_vm2, %v2742_v32, %v2638_v23 }
 0x4a5   : > { %v2773_v45 = vsel %vm781_vm2, %v2741_v13, %v2636_v46  ;;  %3997 = vrot.lane.b32.xlu1 %v3840_v27, %s5156_s20 }
 0x4a6   : > { %3995 = vrot.lane.b32.xlu0 %v3835_v41, %s5156_s20  ;;  %4976 = vmatprep.mubr.msk.f32.mxu0 %vm822_vm3, %v2773_v45 }
 0x4a7   : > { %v2514_v11 = vpop.permute.xlu1 %2513  ;;  %4977 = vmatmul.mubr.msk.f32.gmra.mrb[54].mxu0 %vm822_vm3, %v2774_v49 }
 0x4a8   : > { %v2512_v20 = vpop.permute.xlu0 %2511  ;;  %v2744_v38 = vsel %vm748_vm1, %v2712_v52, %v2514_v11 }
 0x4a9   : > { %v2743_v2 = vsel %vm748_vm1, %v2711_v1, %v2512_v20 }
 0x4ab   : > { %v2642_v60 = vpop.permute.xlu1 %2641 }
 0x4ac   : > { %v2640_v12 = vpop.permute.xlu0 %2639  ;;  %v2776_v44 = vsel %vm781_vm2, %v2744_v38, %v2642_v60 }
 0x4ad   : > { %v2775_v54 = vsel %vm781_vm2, %v2743_v2, %v2640_v12 }
 0x4ae   : > { %4979 = vmatprep.mubr.msk.f32.mxu0 %vm822_vm3, %v2775_v54  ;;  %v5015_v47 = vpop.f32.mrb[44].mxu1 }
 0x4af   : > { %v3850_v55 = vadd.f32 %v7678_v26, %v5015_v47  ;;  %v2390_v56 = vpop.permute.xlu1 %2389  ;;  %4980 = vmatmul.mubr.msk.f32.gmra.mrb[56].mxu0 %vm822_vm3, %v2776_v44  ;;  %v3844_v50 = vpop.f32.mrb[45].mxu1 }
 0x4b0   : > { %v3845_v63 = vadd.f32 %v7678_v26, %v3844_v50  ;;  %v2388_v36 = vpop.permute.xlu0 %2387  ;;  %v2714_v33 = vsel %vm715_vm0, %v7547_v19, %v2390_v56 }
 0x4b1   : > { %4001 = vrot.lane.b32.xlu1 %v3850_v55, %s5156_s20  ;;  %v2713_v22 = vsel %vm715_vm0, %v7550_v42, %v2388_v36 }
 0x4b2   : > { %3999 = vrot.lane.b32.xlu0 %v3845_v63, %s5156_s20 }
 0x4b3   : > { %v2518_v61 = vpop.permute.xlu1 %2517 }
 0x4b4   : > { %v2516_v6 = vpop.permute.xlu0 %2515  ;;  %v2746_v58 = vsel %vm748_vm1, %v2714_v33, %v2518_v61 }
 0x4b5   : > { %v2745_v62 = vsel %vm748_vm1, %v2713_v22, %v2516_v6 }
 0x4b7   : > { %v2646_v53 = vpop.permute.xlu1 %2645 }
 0x4b8   : > { %v2644_v3 = vpop.permute.xlu0 %2643  ;;  %v2778_v4 = vsel %vm781_vm2, %v2746_v58, %v2646_v53 }
 0x4b9   : > { %v2777_v51 = vsel %vm781_vm2, %v2745_v62, %v2644_v3 }
 0x4ba   : > { %4982 = vmatprep.mubr.msk.f32.mxu0 %vm822_vm3, %v2777_v51  ;;  %v5018_v48 = vpop.f32.mrb[46].mxu1 }
 0x4bb   : > { %v3860_v37 = vadd.f32 %v7678_v26, %v5018_v48  ;;  %v2394_v14 = vpop.permute.xlu1 %2393  ;;  %4983 = vmatmul.mubr.msk.f32.gmra.mrb[58].mxu0 %vm822_vm3, %v2778_v4  ;;  %v3854_v19 = vpop.f32.mrb[47].mxu1 }
 0x4bc   : > { %v3855_v42 = vadd.f32 %v7678_v26, %v3854_v19  ;;  %v2392_v21 = vpop.permute.xlu0 %2391  ;;  %v2716_v15 = vsel %vm715_vm0, %v7576_v8, %v2394_v14 }
 0x4bd   : > { %4005 = vrot.lane.b32.xlu1 %v3860_v37, %s5156_s20  ;;  %v2715_v59 = vsel %vm715_vm0, %v7581_v35, %v2392_v21 }
 0x4be   : > { %4003 = vrot.lane.b32.xlu0 %v3855_v42, %s5156_s20 }
 0x4bf   : > { %v2522_v24 = vpop.permute.xlu1 %2521 }
 0x4c0   : > { %v2520_v28 = vpop.permute.xlu0 %2519  ;;  %v2748_v7 = vsel %vm748_vm1, %v2716_v15, %v2522_v24 }
 0x4c1   : > { %v2747_v31 = vsel %vm748_vm1, %v2715_v59, %v2520_v28 }
 0x4c3   : > { %v2650_v40 = vpop.permute.xlu1 %2649 }
 0x4c4   : > { %v2648_v43 = vpop.permute.xlu0 %2647  ;;  %v2780_v39 = vsel %vm781_vm2, %v2748_v7, %v2650_v40 }
 0x4c5   : > { %v2779_v30 = vsel %vm781_vm2, %v2747_v31, %v2648_v43 }
 0x4c6   : > { %4985 = vmatprep.mubr.msk.f32.mxu0 %vm822_vm3, %v2779_v30  ;;  %v5021_v9 = vpop.f32.mrb[48].mxu1 }
 0x4c7   : > { %v3870_v25 = vadd.f32 %v7678_v26, %v5021_v9  ;;  %v2398_v29 = vpop.permute.xlu1 %2397  ;;  %4986 = vmatmul.mubr.msk.f32.gmra.mrb[60].mxu0 %vm822_vm3, %v2780_v39  ;;  %v3864_v8 = vpop.f32.mrb[49].mxu1 }
 0x4c8   : > { %v3865_v35 = vadd.f32 %v7678_v26, %v3864_v8  ;;  %v2396_v27 = vpop.permute.xlu0 %2395  ;;  %v2718_v34 = vsel %vm715_vm0, %v7605_v0, %v2398_v29 }
 0x4c9   : > { %4009 = vrot.lane.b32.xlu1 %v3870_v25, %s5156_s20  ;;  %v2717_v18 = vsel %vm715_vm0, %v7610_v57, %v2396_v27 }
 0x4ca   : > { %4007 = vrot.lane.b32.xlu0 %v3865_v35, %s5156_s20 }
 0x4cb   : > { %v2526_v23 = vpop.permute.xlu1 %2525 }
 0x4cc   : > { %v2524_v16 = vpop.permute.xlu0 %2523  ;;  %v2750_v46 = vsel %vm748_vm1, %v2718_v34, %v2526_v23 }
 0x4cd   : > { %v2749_v13 = vsel %vm748_vm1, %v2717_v18, %v2524_v16 }
 0x4cf   : > { %v2654_v17 = vpop.permute.xlu1 %2653 }
 0x4d0   : > { %v2652_v41 = vpop.permute.xlu0 %2651  ;;  %v2782_v45 = vsel %vm781_vm2, %v2750_v46, %v2654_v17 }
 0x4d1   : > { %v2781_v32 = vsel %vm781_vm2, %v2749_v13, %v2652_v41 }
 0x4d2   : > { %4988 = vmatprep.mubr.msk.f32.mxu0 %vm822_vm3, %v2781_v32  ;;  %v5024_v49 = vpop.f32.mrb[50].mxu1 }
 0x4d3   : > { %v3880_v11 = vadd.f32 %v7678_v26, %v5024_v49  ;;  %4989 = vmatmul.mubr.msk.f32.gmra.mrb[62].mxu0 %vm822_vm3, %v2782_v45  ;;  %v3874_v0 = vpop.f32.mrb[51].mxu1 }
 0x4d4   : > { %v3875_v57 = vadd.f32 %v7678_v26, %v3874_v0 }
 0x4d5   : > { %4013 = vrot.lane.b32.xlu1 %v3880_v11, %s5156_s20 }
 0x4d6   : > { %4011 = vrot.lane.b32.xlu0 %v3875_v57, %s5156_s20 }
 0x4db   : > { %v3978_v3 = vpop.permute.xlu1 %3977 }
 0x4dc   : > { %v3976_v51 = vpop.permute.xlu0 %3975 }
 0x4de   : > { %v5027_v20 = vpop.f32.mrb[52].mxu1 }
 0x4df   : > { %v3890_v5 = vadd.f32 %v7678_v26, %v5027_v20  ;;  %v3884_v1 = vpop.f32.mrb[53].mxu1 }
 0x4e0   : > { %v3885_v60 = vadd.f32 %v7678_v26, %v3884_v1 }
 0x4e1   : > { %4017 = vrot.lane.b32.xlu1 %v3890_v5, %s5156_s20 }
 0x4e2   : > { %4015 = vrot.lane.b32.xlu0 %v3885_v60, %s5156_s20 }
 0x4e7   : > { %v3982_v15 = vpop.permute.xlu1 %3981 }
 0x4e8   : > { %v3980_v40 = vpop.permute.xlu0 %3979 }
 0x4ea   : > { %v5030_v10 = vpop.f32.mrb[54].mxu1 }
 0x4eb   : > { %v3900_v52 = vadd.f32 %v7678_v26, %v5030_v10  ;;  %v3894_v2 = vpop.f32.mrb[55].mxu1 }
 0x4ec   : > { %v3895_v12 = vadd.f32 %v7678_v26, %v3894_v2 }
 0x4ed   : > { %4021 = vrot.lane.b32.xlu1 %v3900_v52, %s5156_s20 }
 0x4ee   : > { %4019 = vrot.lane.b32.xlu0 %v3895_v12, %s5156_s20 }
 0x4f3   : > { %v3986_v9 = vpop.permute.xlu1 %3985 }
 0x4f4   : > { %v3984_v29 = vpop.permute.xlu0 %3983 }
 0x4f6   : > { %v5033_v38 = vpop.f32.mrb[56].mxu1 }
 0x4f7   : > { %v3910_v54 = vadd.f32 %v7678_v26, %v5033_v38  ;;  %v3904_v44 = vpop.f32.mrb[57].mxu1 }
 0x4f8   : > { %v3905_v47 = vadd.f32 %v7678_v26, %v3904_v44 }
 0x4f9   : > { %4025 = vrot.lane.b32.xlu1 %v3910_v54, %s5156_s20 }
 0x4fa   : > { %4023 = vrot.lane.b32.xlu0 %v3905_v47, %s5156_s20 }
 0x4ff   : > { %v3990_v34 = vpop.permute.xlu1 %3989 }
 0x500   : > { %v3988_v17 = vpop.permute.xlu0 %3987 }
 0x502   : > { %v5036_v55 = vpop.f32.mrb[58].mxu1 }
 0x503   : > { %v3920_v56 = vadd.f32 %v7678_v26, %v5036_v55  ;;  %v3914_v50 = vpop.f32.mrb[59].mxu1 }
 0x504   : > { %v3915_v63 = vadd.f32 %v7678_v26, %v3914_v50 }
 0x505   : > { %4029 = vrot.lane.b32.xlu1 %v3920_v56, %s5156_s20 }
 0x506   : > { %4027 = vrot.lane.b32.xlu0 %v3915_v63, %s5156_s20 }
 0x50b   : > { %v3994_v49 = vpop.permute.xlu1 %3993 }
 0x50c   : > { %v3992_v0 = vpop.permute.xlu0 %3991 }
 0x511   : > { %v5039_v36 = vpop.f32.mrb[60].mxu1 }
 0x512   : > { %v3930_v61 = vadd.f32 %v7678_v26, %v5039_v36  ;;  %v3924_v6 = vpop.f32.mrb[61].mxu1 }
 0x513   : > { %v3925_v33 = vadd.f32 %v7678_v26, %v3924_v6 }
 0x514   : > { %4033 = vrot.lane.b32.xlu1 %v3930_v61, %s5156_s20 }
 0x515   : > { %4031 = vrot.lane.b32.xlu0 %v3925_v33, %s5156_s20 }
 0x517   : > { %v3998_v10 = vpop.permute.xlu1 %3997 }
 0x518   : > { %v3996_v2 = vpop.permute.xlu0 %3995 }
 0x519   : > { %v4945_v22 = vpop.f32.mrb[32].mxu0 }
 0x51a   : > { %v2954_v53 = vadd.f32 %v7678_v26, %v4945_v22  ;;  %v2948_v62 = vpop.f32.mrb[33].mxu0 }
 0x51b   : > { %v2949_v58 = vadd.f32 %v7678_v26, %v2948_v62 }
 0x51c   : > { %v4072_v4 = vsel %vm715_vm0, %v2954_v53, %v3978_v3 }
 0x51d   : > { %4665 = vst.msk [vmem:[%s6836_s17 + $0x18] sm:$0xff] %vm748_vm1, %v4072_v4  ;;  %v4071_v48 = vsel %vm715_vm0, %v2949_v58, %v3976_v51 }
 0x51e   : > { %4664 = vst.msk [vmem:[%s6836_s17 + $0x10] sm:$0xff] %vm748_vm1, %v4071_v48 }
 0x523   : > { %v4002_v55 = vpop.permute.xlu1 %4001 }
 0x524   : > { %v4000_v50 = vpop.permute.xlu0 %3999 }
 0x525   : > { %v5042_v37 = vpop.f32.mrb[62].mxu1 }
 0x526   : > { %v3940_v14 = vadd.f32 %v7678_v26, %v5042_v37  ;;  %v3934_v19 = vpop.f32.mrb[63].mxu1 }
 0x527   : > { %v3935_v42 = vadd.f32 %v7678_v26, %v3934_v19 }
 0x528   : > { %4037 = vrot.lane.b32.xlu1 %v3940_v14, %s5156_s20 }
 0x529   : > { %4035 = vrot.lane.b32.xlu0 %v3935_v42, %s5156_s20 }
 0x52a   : > { %v4948_v21 = vpop.f32.mrb[34].mxu0 }
 0x52b   : > { %v2964_v24 = vadd.f32 %v7678_v26, %v4948_v21  ;;  %v2958_v28 = vpop.f32.mrb[35].mxu0 }
 0x52c   : > { %v2959_v59 = vadd.f32 %v7678_v26, %v2958_v28 }
 0x52d   : > { %v4074_v31 = vsel %vm715_vm0, %v2964_v24, %v3982_v15 }
 0x52e   : > { %4667 = vst.msk [vmem:[%s6836_s17 + $0x38] sm:$0xff] %vm748_vm1, %v4074_v31  ;;  %v4073_v43 = vsel %vm715_vm0, %v2959_v59, %v3980_v40 }
 0x52f   : > { %4666 = vst.msk [vmem:[%s6836_s17 + $0x30] sm:$0xff] %vm748_vm1, %v4073_v43  ;;  %v4006_v22 = vpop.permute.xlu1 %4005 }
 0x530   : > { %v4004_v62 = vpop.permute.xlu0 %4003 }
 0x532   : > { %v4951_v7 = vpop.f32.mrb[36].mxu0 }
 0x533   : > { %v2974_v30 = vadd.f32 %v7678_v26, %v4951_v7  ;;  %v2968_v39 = vpop.f32.mrb[37].mxu0 }
 0x534   : > { %v2969_v25 = vadd.f32 %v7678_v26, %v2968_v39 }
 0x535   : > { %v4076_v8 = vsel %vm715_vm0, %v2974_v30, %v3986_v9 }
 0x536   : > { %4669 = vst.msk [vmem:[%s6836_s17 + $0x58] sm:$0xff] %vm748_vm1, %v4076_v8  ;;  %v4075_v35 = vsel %vm715_vm0, %v2969_v25, %v3984_v29 }
 0x537   : > { %4668 = vst.msk [vmem:[%s6836_s17 + $0x50] sm:$0xff] %vm748_vm1, %v4075_v35 }
 0x53a   : > { %v4954_v27 = vpop.f32.mrb[38].mxu0 }
 0x53b   : > { %v2984_v23 = vadd.f32 %v7678_v26, %v4954_v27  ;;  %v2978_v16 = vpop.f32.mrb[39].mxu0  ;;  %v4010_v37 = vpop.permute.xlu1 %4009 }
 0x53c   : > { %v2979_v18 = vadd.f32 %v7678_v26, %v2978_v16  ;;  %v4008_v19 = vpop.permute.xlu0 %4007 }
 0x53d   : > { %v4078_v13 = vsel %vm715_vm0, %v2984_v23, %v3990_v34 }
 0x53e   : > { %4671 = vst.msk [vmem:[%s6836_s17 + $0x78] sm:$0xff] %vm748_vm1, %v4078_v13  ;;  %v4077_v41 = vsel %vm715_vm0, %v2979_v18, %v3988_v17 }
 0x53f   : > { %4670 = vst.msk [vmem:[%s6836_s17 + $0x70] sm:$0xff] %vm748_vm1, %v4077_v41 }
 0x542   : > { %v4957_v46 = vpop.f32.mrb[40].mxu0 }
 0x543   : > { %v2994_v32 = vadd.f32 %v7678_v26, %v4957_v46  ;;  %v2988_v45 = vpop.f32.mrb[41].mxu0 }
 0x544   : > { %v2989_v11 = vadd.f32 %v7678_v26, %v2988_v45 }
 0x545   : > { %v4080_v57 = vsel %vm715_vm0, %v2994_v32, %v3994_v49 }
 0x546   : > { %4673 = vst.msk [vmem:[%s6836_s17 + $0x98] sm:$0xff] %vm748_vm1, %v4080_v57  ;;  %v4079_v20 = vsel %vm715_vm0, %v2989_v11, %v3992_v0 }
 0x547   : > { %4672 = vst.msk [vmem:[%s6836_s17 + $0x90] sm:$0xff] %vm748_vm1, %v4079_v20  ;;  %v4014_v59 = vpop.permute.xlu1 %4013 }
 0x548   : > { %v4012_v31 = vpop.permute.xlu0 %4011 }
 0x54a   : > { %v4960_v5 = vpop.f32.mrb[42].mxu0 }
 0x54b   : > { %v3004_v1 = vadd.f32 %v7678_v26, %v4960_v5  ;;  %v2998_v60 = vpop.f32.mrb[43].mxu0 }
 0x54c   : > { %v2999_v52 = vadd.f32 %v7678_v26, %v2998_v60 }
 0x54d   : > { %v4082_v12 = vsel %vm715_vm0, %v3004_v1, %v3998_v10 }
 0x54e   : > { %4675 = vst.msk [vmem:[%s6836_s17 + $0xb8] sm:$0xff] %vm748_vm1, %v4082_v12  ;;  %v4081_v38 = vsel %vm715_vm0, %v2999_v52, %v3996_v2 }
 0x54f   : > { %4674 = vst.msk [vmem:[%s6836_s17 + $0xb0] sm:$0xff] %vm748_vm1, %v4081_v38 }
 0x552   : > { %v4963_v54 = vpop.f32.mrb[44].mxu0 }
 0x553   : > { %v3014_v44 = vadd.f32 %v7678_v26, %v4963_v54  ;;  %v3008_v47 = vpop.f32.mrb[45].mxu0  ;;  %v4018_v25 = vpop.permute.xlu1 %4017 }
 0x554   : > { %v3009_v56 = vadd.f32 %v7678_v26, %v3008_v47  ;;  %v4016_v8 = vpop.permute.xlu0 %4015 }
 0x555   : > { %v4084_v63 = vsel %vm715_vm0, %v3014_v44, %v4002_v55 }
 0x556   : > { %4677 = vst.msk [vmem:[%s6836_s17 + $0xd8] sm:$0xff] %vm748_vm1, %v4084_v63  ;;  %v4083_v36 = vsel %vm715_vm0, %v3009_v56, %v4000_v50 }
 0x557   : > { %4676 = vst.msk [vmem:[%s6836_s17 + $0xd0] sm:$0xff] %vm748_vm1, %v4083_v36 }
 0x55a   : > { %v4966_v61 = vpop.f32.mrb[46].mxu0 }
 0x55b   : > { %v3024_v6 = vadd.f32 %v7678_v26, %v4966_v61  ;;  %v3018_v33 = vpop.f32.mrb[47].mxu0 }
 0x55c   : > { %v3019_v53 = vadd.f32 %v7678_v26, %v3018_v33 }
 0x55d   : > { %v4086_v3 = vsel %vm715_vm0, %v3024_v6, %v4006_v22 }
 0x55e   : > { %4679 = vst.msk [vmem:[%s6836_s17 + $0xf8] sm:$0xff] %vm748_vm1, %v4086_v3  ;;  %v4085_v58 = vsel %vm715_vm0, %v3019_v53, %v4004_v62 }
 0x55f   : > { %4678 = vst.msk [vmem:[%s6836_s17 + $0xf0] sm:$0xff] %vm748_vm1, %v4085_v58  ;;  %v4022_v18 = vpop.permute.xlu1 %4021 }
 0x560   : > { %v4020_v13 = vpop.permute.xlu0 %4019 }
 0x562   : > { %v4969_v51 = vpop.f32.mrb[48].mxu0 }
 0x563   : > { %v3034_v4 = vadd.f32 %v7678_v26, %v4969_v51  ;;  %v3028_v48 = vpop.f32.mrb[49].mxu0 }
 0x564   : > { %v3029_v14 = vadd.f32 %v7678_v26, %v3028_v48 }
 0x565   : > { %v4088_v42 = vsel %vm715_vm0, %v3034_v4, %v4010_v37 }
 0x566   : > { %4681 = vst.msk [vmem:[%s6836_s17 + $0x118] sm:$0xff] %vm748_vm1, %v4088_v42  ;;  %v4087_v21 = vsel %vm715_vm0, %v3029_v14, %v4008_v19 }
 0x567   : > { %4680 = vst.msk [vmem:[%s6836_s17 + $0x110] sm:$0xff] %vm748_vm1, %v4087_v21 }
 0x56a   : > { %v4972_v24 = vpop.f32.mrb[50].mxu0 }
 0x56b   : > { %v3044_v28 = vadd.f32 %v7678_v26, %v4972_v24  ;;  %v3038_v15 = vpop.f32.mrb[51].mxu0  ;;  %v4026_v11 = vpop.permute.xlu1 %4025 }
 0x56c   : > { %v3039_v40 = vadd.f32 %v7678_v26, %v3038_v15  ;;  %v4024_v57 = vpop.permute.xlu0 %4023 }
 0x56d   : > { %v4090_v43 = vsel %vm715_vm0, %v3044_v28, %v4014_v59 }
 0x56e   : > { %4683 = vst.msk [vmem:[%s6836_s17 + $0x138] sm:$0xff] %vm748_vm1, %v4090_v43  ;;  %v4089_v7 = vsel %vm715_vm0, %v3039_v40, %v4012_v31 }
 0x56f   : > { %4682 = vst.msk [vmem:[%s6836_s17 + $0x130] sm:$0xff] %vm748_vm1, %v4089_v7 }
 0x572   : > { %v4975_v30 = vpop.f32.mrb[52].mxu0 }
 0x573   : > { %v3054_v39 = vadd.f32 %v7678_v26, %v4975_v30  ;;  %v3048_v9 = vpop.f32.mrb[53].mxu0 }
 0x574   : > { %v3049_v29 = vadd.f32 %v7678_v26, %v3048_v9 }
 0x575   : > { %v4092_v35 = vsel %vm715_vm0, %v3054_v39, %v4018_v25 }
 0x576   : > { %4685 = vst.msk [vmem:[%s6836_s17 + $0x158] sm:$0xff] %vm748_vm1, %v4092_v35  ;;  %v4091_v27 = vsel %vm715_vm0, %v3049_v29, %v4016_v8 }
 0x577   : > { %4684 = vst.msk [vmem:[%s6836_s17 + $0x150] sm:$0xff] %vm748_vm1, %v4091_v27  ;;  %v4030_v52 = vpop.permute.xlu1 %4029 }
 0x578   : > { %v4028_v12 = vpop.permute.xlu0 %4027 }
 0x57a   : > { %v4978_v23 = vpop.f32.mrb[54].mxu0 }
 0x57b   : > { %v3064_v16 = vadd.f32 %v7678_v26, %v4978_v23  ;;  %v3058_v34 = vpop.f32.mrb[55].mxu0 }
 0x57c   : > { %v3059_v17 = vadd.f32 %v7678_v26, %v3058_v34 }
 0x57d   : > { %v4094_v41 = vsel %vm715_vm0, %v3064_v16, %v4022_v18 }
 0x57e   : > { %4687 = vst.msk [vmem:[%s6836_s17 + $0x178] sm:$0xff] %vm748_vm1, %v4094_v41  ;;  %v4093_v46 = vsel %vm715_vm0, %v3059_v17, %v4020_v13 }
 0x57f   : > { %4686 = vst.msk [vmem:[%s6836_s17 + $0x170] sm:$0xff] %vm748_vm1, %v4093_v46 }
 0x582   : > { %v4981_v32 = vpop.f32.mrb[56].mxu0 }
 0x583   : > { %v3074_v45 = vadd.f32 %v7678_v26, %v4981_v32  ;;  %v3068_v49 = vpop.f32.mrb[57].mxu0 }
 0x584   : > { %v3069_v0 = vadd.f32 %v7678_v26, %v3068_v49 }
 0x585   : > { %v4096_v20 = vsel %vm715_vm0, %v3074_v45, %v4026_v11 }
 0x586   : > { %4689 = vst.msk [vmem:[%s6836_s17 + $0x198] sm:$0xff] %vm748_vm1, %v4096_v20  ;;  %v4095_v5 = vsel %vm715_vm0, %v3069_v0, %v4024_v57  ;;  %v4034_v56 = vpop.permute.xlu1 %4033 }
 0x587   : > { %4688 = vst.msk [vmem:[%s6836_s17 + $0x190] sm:$0xff] %vm748_vm1, %v4095_v5  ;;  %v4032_v63 = vpop.permute.xlu0 %4031 }
 0x58e   : > { %v4984_v1 = vpop.f32.mrb[58].mxu0 }
 0x58f   : > { %v3084_v60 = vadd.f32 %v7678_v26, %v4984_v1  ;;  %v3078_v10 = vpop.f32.mrb[59].mxu0 }
 0x590   : > { %v3079_v2 = vadd.f32 %v7678_v26, %v3078_v10 }
 0x591   : > { %v4098_v38 = vsel %vm715_vm0, %v3084_v60, %v4030_v52 }
 0x592   : > { %4691 = vst.msk [vmem:[%s6836_s17 + $0x1b8] sm:$0xff] %vm748_vm1, %v4098_v38  ;;  %v4097_v54 = vsel %vm715_vm0, %v3079_v2, %v4028_v12 }
 0x593   : > { %4690 = vst.msk [vmem:[%s6836_s17 + $0x1b0] sm:$0xff] %vm748_vm1, %v4097_v54 }
 0x59a   : > { %v4987_v44 = vpop.f32.mrb[60].mxu0  ;;  %v4038_v53 = vpop.permute.xlu1 %4037 }
 0x59b   : > { %v3094_v47 = vadd.f32 %v7678_v26, %v4987_v44  ;;  %v3088_v55 = vpop.f32.mrb[61].mxu0  ;;  %v4036_v3 = vpop.permute.xlu0 %4035 }
 0x59c   : > { %v3089_v50 = vadd.f32 %v7678_v26, %v3088_v55 }
 0x59d   : > { %v4100_v36 = vsel %vm715_vm0, %v3094_v47, %v4034_v56 }
 0x59e   : > { %4693 = vst.msk [vmem:[%s6836_s17 + $0x1d8] sm:$0xff] %vm748_vm1, %v4100_v36  ;;  %v4099_v61 = vsel %vm715_vm0, %v3089_v50, %v4032_v63 }
 0x59f   : > { %4692 = vst.msk [vmem:[%s6836_s17 + $0x1d0] sm:$0xff] %vm748_vm1, %v4099_v61 }
 0x5a6   : > { %v4990_v6 = vpop.f32.mrb[62].mxu0 }
 0x5a7   : > { %v3104_v33 = vadd.f32 %v7678_v26, %v4990_v6  ;;  %v3098_v22 = vpop.f32.mrb[63].mxu0 }
 0x5a8   : > { %v3099_v62 = vadd.f32 %v7678_v26, %v3098_v22 }
 0x5a9   : > { %v4102_v58 = vsel %vm715_vm0, %v3104_v33, %v4038_v53 }
 0x5aa   : > { %4695 = vst.msk [vmem:[%s6836_s17 + $0x1f8] sm:$0xff] %vm748_vm1, %v4102_v58  ;;  %v4101_v51 = vsel %vm715_vm0, %v3099_v62, %v4036_v3 }
 0x5ab   : > { %4694 = vst.msk [vmem:[%s6836_s17 + $0x1f0] sm:$0xff] %vm748_vm1, %v4101_v51 }
 0x5ac PF: > { %s13_s14 = sadd.s32 1, %s5154_s14   ;;  %s8329_s12 = smov %s5150_s13 }
 0x5ad   : > { %p10_p5 = scmp.ge.s32.totalorder %s13_s14, 4   ;;  %s8330_s13 = smov %s8332_s15 }
 0x5af   :  { %12 = sbr.rel (!%p10_p5) target bundleno = 2 (0x2), region = 69 }

</bundles_post_ra>
